<compile_context>
chip_gen: v7x
topology: tpu7x:2x2x1
jax: 0.10.0
libtpu: 0.0.40
codegen_flags: <defaults>
</compile_context>

<pallas_src>
import jax
import jax.numpy as jnp
import numpy as np
from jax.experimental import pallas as pl
from jax.experimental.pallas import tpu as pltpu

LN_EPS = 1e-5    # nn.LayerNorm default
BN_EPS = 1e-5    # nn.BatchNorm1d default
INIT_STD = 1.0
MIN_STD = 0.1


def _round_up(n, m=128):
    return ((n + m - 1) // m) * m


def _softplus(z):
    # numerically stable softplus, used by kernel and reference
    return jnp.maximum(z, 0.0) + jnp.log(1.0 + jnp.exp(-jnp.abs(z)))


def _masked_layernorm(x, gamma, beta, mask, n):
    """LayerNorm over the first `n` (true) lanes of a lane-padded tensor.

    Padded lanes of `x` are zero and padded gamma/beta are zero, so the
    result keeps zeros in the padded lanes.
    """
    mu = jnp.sum(x * mask, axis=-1, keepdims=True) / n
    d = (x - mu) * mask
    var = jnp.sum(d * d, axis=-1, keepdims=True) / n
    return (x - mu) * jax.lax.rsqrt(var + LN_EPS) * gamma + beta


def _make_kernel(*, B, TB, H, A, v_num, mxu_dtype):
    def kernel(
        x_ref,
        # value branch resblock + post-LN
        vr_ln_g, vr_ln_b, vr_w1, vr_b1, vr_w2, vr_b2, v_ln_g, v_ln_b,
        # policy branch resblock + post-LN
        pr_ln_g, pr_ln_b, pr_w1, pr_b1, pr_w2, pr_b2, p_ln_g, p_ln_b,
        # value heads (stacked over v_num)
        v_wm, v_bm, v_bn_g, v_bn_b, v_wf, v_bf,
        # policy head
        p_wm, p_bm, p_bn_g, p_bn_b, p_wf, p_bf,
        # outputs
        values_ref, policy_ref,
        # scratch (persist across grid steps)
        zv_scr, zp_scr, v_sum, v_ssq, p_sum, p_ssq,
    ):
        phase = pl.program_id(0)
        tile = pl.program_id(1)
        H_pad = x_ref.shape[-1]
        row0 = pl.multiple_of(tile * TB, TB)

        feat_mask = (jax.lax.broadcasted_iota(jnp.int32, (1, H_pad), 1) < H
                     ).astype(jnp.float32)

        def resblock(x, g, b, w1_ref, b1_ref, w2_ref, b2_ref):
            h = _masked_layernorm(x, g, b, feat_mask, H)
            h = jnp.dot(h.astype(mxu_dtype), w1_ref[...],
                        preferred_element_type=jnp.float32) + b1_ref[...]
            h = jnp.maximum(h, 0.0)
            h = jnp.dot(h.astype(mxu_dtype), w2_ref[...],
                        preferred_element_type=jnp.float32) + b2_ref[...]
            return h + x

        @pl.when(jnp.logical_and(phase == 0, tile == 0))
        def _init():
            v_sum[...] = jnp.zeros_like(v_sum)
            v_ssq[...] = jnp.zeros_like(v_ssq)
            p_sum[...] = jnp.zeros_like(p_sum)
            p_ssq[...] = jnp.zeros_like(p_ssq)

        # ---------- phase 0: trunks + hidden linears + BN statistics ----------
        @pl.when(phase == 0)
        def _stats_phase():
            x = x_ref[...].astype(jnp.float32)

            hv = resblock(x, vr_ln_g[...], vr_ln_b[...], vr_w1, vr_b1, vr_w2, vr_b2)
            hv = _masked_layernorm(hv, v_ln_g[...], v_ln_b[...], feat_mask, H)
            hp = resblock(x, pr_ln_g[...], pr_ln_b[...], pr_w1, pr_b1, pr_w2, pr_b2)
            hp = _masked_layernorm(hp, p_ln_g[...], p_ln_b[...], feat_mask, H)
            hv = hv.astype(mxu_dtype)
            hp = hp.astype(mxu_dtype)

            for v in range(v_num):   # v_num is a small static int
                zv = jnp.dot(hv, v_wm[v, :, :],
                             preferred_element_type=jnp.float32) + v_bm[v, :, :]
                zv_scr[v, pl.ds(row0, TB), :] = zv
                v_sum[v, :, :] = v_sum[v, :, :] + jnp.sum(zv, axis=0, keepdims=True)
                v_ssq[v, :, :] = v_ssq[v, :, :] + jnp.sum(zv * zv, axis=0, keepdims=True)

            zp = jnp.dot(hp, p_wm[...],
                         preferred_element_type=jnp.float32) + p_bm[...]
            zp_scr[pl.ds(row0, TB), :] = zp
            p_sum[...] = p_sum[...] + jnp.sum(zp, axis=0, keepdims=True)
            p_ssq[...] = p_ssq[...] + jnp.sum(zp * zp, axis=0, keepdims=True)

            # no final result yet; keep the output blocks well-defined
            values_ref[...] = jnp.zeros_like(values_ref)
            policy_ref[...] = jnp.zeros_like(policy_ref)

        # ---------- phase 1: BatchNorm (whole-batch stats) + output heads ----------
        @pl.when(phase == 1)
        def _final_phase():
            inv_b = 1.0 / float(B)

            for v in range(v_num):
                zv = zv_scr[v, pl.ds(row0, TB), :]
                mu = v_sum[v, :, :] * inv_b
                var = jnp.maximum(v_ssq[v, :, :] * inv_b - mu * mu, 0.0)
                zn = (zv - mu) * jax.lax.rsqrt(var + BN_EPS) * v_bn_g[v, :, :] + v_bn_b[v, :, :]
                zn = jnp.maximum(zn, 0.0)
                out_v = jnp.dot(zn.astype(mxu_dtype), v_wf[v, :, :],
                                preferred_element_type=jnp.float32) + v_bf[v, :, :]
                values_ref[v, :, :] = out_v.astype(values_ref.dtype)

            zp = zp_scr[pl.ds(row0, TB), :]
            mu_p = p_sum[...] * inv_b
            var_p = jnp.maximum(p_ssq[...] * inv_b - mu_p * mu_p, 0.0)
            zn_p = (zp - mu_p) * jax.lax.rsqrt(var_p + BN_EPS) * p_bn_g[...] + p_bn_b[...]
            zn_p = jnp.maximum(zn_p, 0.0)
            pol = jnp.dot(zn_p.astype(mxu_dtype), p_wf[...],
                          preferred_element_type=jnp.float32) + p_bf[...]

            # squashed-gaussian head: mean cols < A, std cols >= A (padded cols sliced off)
            col = jax.lax.broadcasted_iota(jnp.int32, pol.shape, 1)
            mean_part = 5.0 * jnp.tanh(pol * (1.0 / 5.0))
            std_part = _softplus(pol + INIT_STD) + MIN_STD
            policy_ref[...] = jnp.where(col < A, mean_part, std_part).astype(policy_ref.dtype)

    return kernel


# ----------------------------------------------------------------------------
# parameter construction / lane-padding
# ----------------------------------------------------------------------------
def init_params(key, hidden_shape, val_net_shape, pi_net_shape, action_shape,
                full_support_size, v_num):
    """Synthetic params in logical (unpadded) layout; Linear weights are (in, out)."""
    assert len(val_net_shape) == 1 and len(pi_net_shape) == 1  # TODO(synk): multi-layer mlp hidden stacks
    H = hidden_shape
    Mv, Mp = val_net_shape[0], pi_net_shape[0]
    R, P = full_support_size, 2 * action_shape

    n_lin = 6 + 2 * v_num
    keys = iter(jax.random.split(key, 2 * n_lin))

    def lin(fan_in, fan_out):
        bound = 1.0 / (fan_in ** 0.5)     # PyTorch nn.Linear default init
        w = jax.random.uniform(next(keys), (fan_in, fan_out), jnp.float32, -bound, bound)
        b = jax.random.uniform(next(keys), (fan_out,), jnp.float32, -bound, bound)
        return w, b

    vr_w1, vr_b1 = lin(H, H); vr_w2, vr_b2 = lin(H, H)
    pr_w1, pr_b1 = lin(H, H); pr_w2, pr_b2 = lin(H, H)
    v_wm, v_bm, v_wf, v_bf = [], [], [], []
    for _ in range(v_num):
        wm, bm = lin(H, Mv); wf, bf = lin(Mv, R)
        v_wm.append(wm); v_bm.append(bm); v_wf.append(wf); v_bf.append(bf)
    p_wm, p_bm = lin(H, Mp)
    p_wf, p_bf = lin(Mp, P)

    ones = lambda *s: jnp.ones(s, jnp.float32)
    zeros = lambda *s: jnp.zeros(s, jnp.float32)
    return dict(
        vr_ln_g=ones(H), vr_ln_b=zeros(H), vr_w1=vr_w1, vr_b1=vr_b1,
        vr_w2=vr_w2, vr_b2=vr_b2, v_ln_g=ones(H), v_ln_b=zeros(H),
        pr_ln_g=ones(H), pr_ln_b=zeros(H), pr_w1=pr_w1, pr_b1=pr_b1,
        pr_w2=pr_w2, pr_b2=pr_b2, p_ln_g=ones(H), p_ln_b=zeros(H),
        v_wm=jnp.stack(v_wm), v_bm=jnp.stack(v_bm),
        v_bn_g=ones(v_num, Mv), v_bn_b=zeros(v_num, Mv),
        v_wf=jnp.stack(v_wf), v_bf=jnp.stack(v_bf),
        p_wm=p_wm, p_bm=p_bm, p_bn_g=ones(Mp), p_bn_b=zeros(Mp),
        p_wf=p_wf, p_bf=p_bf,
    )


def _pad2(a, r, c, dtype):
    a = jnp.asarray(a, jnp.float32)
    return jnp.pad(a, ((0, r - a.shape[0]), (0, c - a.shape[1]))).astype(dtype)


def _pad_row(a, c):
    a = jnp.asarray(a, jnp.float32).reshape(1, -1)
    return jnp.pad(a, ((0, 0), (0, c - a.shape[1])))


def _pad3(a, r, c, dtype):
    a = jnp.asarray(a, jnp.float32)
    return jnp.pad(a, ((0, 0), (0, r - a.shape[1]), (0, c - a.shape[2]))).astype(dtype)


def _pad3_row(a, c):
    a = jnp.asarray(a, jnp.float32)[:, None, :]
    return jnp.pad(a, ((0, 0), (0, 0), (0, c - a.shape[2])))


def pack_params(p, mxu_dtype=jnp.float32):
    """Zero-pad every feature dim to a multiple of 128 lanes (lane-dense I/O,
    unmasked stores).  Weights may be stored in bf16 (mxu_dtype) on v6e/v7x;
    biases / LN / BN params stay f32."""
    H = p["vr_w1"].shape[0]
    Mv = p["v_wm"].shape[2]
    Mp = p["p_wm"].shape[1]
    R = p["v_wf"].shape[2]
    P = p["p_wf"].shape[1]
    v_num = p["v_wm"].shape[0]
    Hp, Mvp, Mpp, Rp, Pp = map(_round_up, (H, Mv, Mp, R, P))

    packed = dict(
        vr_ln_g=_pad_row(p["vr_ln_g"], Hp), vr_ln_b=_pad_row(p["vr_ln_b"], Hp),
        vr_w1=_pad2(p["vr_w1"], Hp, Hp, mxu_dtype), vr_b1=_pad_row(p["vr_b1"], Hp),
        vr_w2=_pad2(p["vr_w2"], Hp, Hp, mxu_dtype), vr_b2=_pad_row(p["vr_b2"], Hp),
        v_ln_g=_pad_row(p["v_ln_g"], Hp), v_ln_b=_pad_row(p["v_ln_b"], Hp),
        pr_ln_g=_pad_row(p["pr_ln_g"], Hp), pr_ln_b=_pad_row(p["pr_ln_b"], Hp),
        pr_w1=_pad2(p["pr_w1"], Hp, Hp, mxu_dtype), pr_b1=_pad_row(p["pr_b1"], Hp),
        pr_w2=_pad2(p["pr_w2"], Hp, Hp, mxu_dtype), pr_b2=_pad_row(p["pr_b2"], Hp),
        p_ln_g=_pad_row(p["p_ln_g"], Hp), p_ln_b=_pad_row(p["p_ln_b"], Hp),
        v_wm=_pad3(p["v_wm"], Hp, Mvp, mxu_dtype), v_bm=_pad3_row(p["v_bm"], Mvp),
        v_bn_g=_pad3_row(p["v_bn_g"], Mvp), v_bn_b=_pad3_row(p["v_bn_b"], Mvp),
        v_wf=_pad3(p["v_wf"], Mvp, Rp, mxu_dtype), v_bf=_pad3_row(p["v_bf"], Rp),
        p_wm=_pad2(p["p_wm"], Hp, Mpp, mxu_dtype), p_bm=_pad_row(p["p_bm"], Mpp),
        p_bn_g=_pad_row(p["p_bn_g"], Mpp), p_bn_b=_pad_row(p["p_bn_b"], Mpp),
        p_wf=_pad2(p["p_wf"], Mpp, Pp, mxu_dtype), p_bf=_pad_row(p["p_bf"], Pp),
    )
    packed["meta"] = dict(H=H, A=P // 2, R=R, v_num=v_num, mxu_dtype=mxu_dtype)
    return packed


# ----------------------------------------------------------------------------
# wrapper
# ----------------------------------------------------------------------------
def value_policy_forward(x, packed, *, tile_b=256):
    meta = packed["meta"]
    H, A, R, v_num = meta["H"], meta["A"], meta["R"], meta["v_num"]
    B = x.shape[0]
    assert x.shape[1] == H

    H_pad = packed["vr_ln_g"].shape[-1]
    M_pad = packed["v_wm"].shape[-1]
    Mp_pad = packed["p_wm"].shape[-1]
    R_pad = packed["v_wf"].shape[-1]
    P_pad = packed["p_wf"].shape[-1]

    TB = min(tile_b, B)
    # TODO(synk): ragged / non-multiple-of-8 batches need row masking of the BN sums.
    assert B % 8 == 0 and TB % 8 == 0 and B % TB == 0

    x_pad = jnp.pad(x.astype(jnp.float32), ((0, 0), (0, H_pad - H)))

    args = (
        x_pad,
        packed["vr_ln_g"], packed["vr_ln_b"], packed["vr_w1"], packed["vr_b1"],
        packed["vr_w2"], packed["vr_b2"], packed["v_ln_g"], packed["v_ln_b"],
        packed["pr_ln_g"], packed["pr_ln_b"], packed["pr_w1"], packed["pr_b1"],
        packed["pr_w2"], packed["pr_b2"], packed["p_ln_g"], packed["p_ln_b"],
        packed["v_wm"], packed["v_bm"], packed["v_bn_g"], packed["v_bn_b"],
        packed["v_wf"], packed["v_bf"],
        packed["p_wm"], packed["p_bm"], packed["p_bn_g"], packed["p_bn_b"],
        packed["p_wf"], packed["p_bf"],
    )

    def const_spec(a):
        # constant block index across all grid steps -> DMA'd once, VMEM-resident
        nd = a.ndim
        return pl.BlockSpec(a.shape, lambda p, t, _nd=nd: (0,) * _nd)

    in_specs = [
        # x: batch-tiled in phase 0; pinned to block 0 in phase 1 (unused there)
        pl.BlockSpec((TB, H_pad), lambda p, t: ((1 - p) * t, 0)),
    ] + [const_spec(a) for a in args[1:]]

    out_specs = [
        pl.BlockSpec((v_num, TB, R_pad), lambda p, t: (0, t, 0)),
        pl.BlockSpec((TB, P_pad), lambda p, t: (t, 0)),
    ]
    out_shape = (
        jax.ShapeDtypeStruct((v_num, B, R_pad), jnp.float32),
        jax.ShapeDtypeStruct((B, P_pad), jnp.float32),
    )

    scratch_shapes = [
        pltpu.VMEM((v_num, B, M_pad), jnp.float32),   # pre-BN value activations
        pltpu.VMEM((B, Mp_pad), jnp.float32),         # pre-BN policy activations
        pltpu.VMEM((v_num, 1, M_pad), jnp.float32),   # BN sum   (value heads)
        pltpu.VMEM((v_num, 1, M_pad), jnp.float32),   # BN sumsq (value heads)
        pltpu.VMEM((1, Mp_pad), jnp.float32),         # BN sum   (policy head)
        pltpu.VMEM((1, Mp_pad), jnp.float32),         # BN sumsq (policy head)
    ]

    kernel = _make_kernel(B=B, TB=TB, H=H, A=A, v_num=v_num,
                          mxu_dtype=meta["mxu_dtype"])

    values_pad, policy_pad = pl.pallas_call(
        kernel,
        out_shape=out_shape,
        grid_spec=pltpu.PrefetchScalarGridSpec(
            num_scalar_prefetch=0,
            grid=(2, B // TB),           # (phase, batch tile); last axis innermost
            in_specs=in_specs,
            out_specs=out_specs,
            scratch_shapes=scratch_shapes,
        ),
        compiler_params=pltpu.CompilerParams(
            # phase 1 needs BN stats accumulated over ALL batch tiles of phase 0,
            # so both axes must stay sequential ("arbitrary").
            dimension_semantics=("arbitrary", "arbitrary"),
            vmem_limit_bytes=32 * 1024 * 1024,
        ),
    )(*args)

    values = values_pad[:, :, :R]
    policy = policy_pad[:, : 2 * A]
    return values, policy


# ----------------------------------------------------------------------------
# pure-JAX reference (training-mode BatchNorm, biased variances)
# ----------------------------------------------------------------------------
def reference_forward(x, p, A, v_num):
    hi = jax.lax.Precision.HIGHEST

    def ln(h, g, b):
        mu = h.mean(-1, keepdims=True)
        var = ((h - mu) ** 2).mean(-1, keepdims=True)
        return (h - mu) / jnp.sqrt(var + LN_EPS) * g + b

    def dot(a, w):
        return jnp.dot(a, w, precision=hi)

    def resblock(h, g, b, w1, b1, w2, b2):
        o = ln(h, g, b)
        o = jnp.maximum(dot(o, w1) + b1, 0.0)
        return dot(o, w2) + b2 + h

    def bn(z, g, b):
        mu = z.mean(0, keepdims=True)
        var = ((z - mu) ** 2).mean(0, keepdims=True)
        return (z - mu) / jnp.sqrt(var + BN_EPS) * g + b

    hv = ln(resblock(x, p["vr_ln_g"], p["vr_ln_b"], p["vr_w1"], p["vr_b1"],
                     p["vr_w2"], p["vr_b2"]), p["v_ln_g"], p["v_ln_b"])
    hp = ln(resblock(x, p["pr_ln_g"], p["pr_ln_b"], p["pr_w1"], p["pr_b1"],
                     p["pr_w2"], p["pr_b2"]), p["p_ln_g"], p["p_ln_b"])

    values = []
    for v in range(v_num):
        z = dot(hv, p["v_wm"][v]) + p["v_bm"][v]
        z = jnp.maximum(bn(z, p["v_bn_g"][v], p["v_bn_b"][v]), 0.0)
        values.append(dot(z, p["v_wf"][v]) + p["v_bf"][v])
    values = jnp.stack(values)

    z = dot(hp, p["p_wm"]) + p["p_bm"]
    z = jnp.maximum(bn(z, p["p_bn_g"], p["p_bn_b"]), 0.0)
    pol = dot(z, p["p_wf"]) + p["p_bf"]
    mean = 5.0 * jnp.tanh(pol[:, :A] / 5.0)
    std = _softplus(pol[:, A:] + INIT_STD) + MIN_STD
    return values, jnp.concatenate([mean, std], axis=-1)


if __name__ == "__main__":
    # Small shapes consistent with the module:
    #   hidden_shape=32, val_net_shape=[32], pi_net_shape=[32],
    #   action_shape=4, full_support_size=21, v_num=2, batch=16
    B, H = 16, 32
    val_net_shape, pi_net_shape = [32], [32]
    A, R, V_NUM = 4, 21, 2

    key = jax.random.PRNGKey(0)
    kx, kp = jax.random.split(key)
    x = jax.random.normal(kx, (B, H), jnp.float32)
    params = init_params(kp, H, val_net_shape, pi_net_shape, A, R, V_NUM)
    # mxu_dtype=jnp.bfloat16 halves weight DMA and uses the bf16 MXU on v6e/v7x;
    # keep f32 here to match the PyTorch reference numerics exactly.
    packed = pack_params(params, mxu_dtype=jnp.float32)

    # tile_b=8 -> 2 batch tiles, exercising cross-tile BatchNorm statistics.
    values, policy = value_policy_forward(x, packed, tile_b=8)
    jax.block_until_ready((values, policy))
    assert values.shape == (V_NUM, B, R) and values.dtype == jnp.float32
    assert policy.shape == (B, 2 * A) and policy.dtype == jnp.float32

    values_ref, policy_ref = reference_forward(x, params, A, V_NUM)
    np.testing.assert_allclose(np.asarray(values), np.asarray(values_ref),
                               atol=2e-2, rtol=2e-2)
    np.testing.assert_allclose(np.asarray(policy), np.asarray(policy_ref),
                               atol=2e-2, rtol=2e-2)
    print("KERNEL_OK")
</pallas_src>

<mosaic_0001>
module attributes {stable_mosaic.version = 11 : i64} {
  func.func @kernel(%arg0: i32, %arg1: i32, %arg2: memref<8x128xf32, #tpu.memory_space<vmem>>, %arg3: memref<1x128xf32, #tpu.memory_space<vmem>>, %arg4: memref<1x128xf32, #tpu.memory_space<vmem>>, %arg5: memref<128x128xf32, #tpu.memory_space<vmem>>, %arg6: memref<1x128xf32, #tpu.memory_space<vmem>>, %arg7: memref<128x128xf32, #tpu.memory_space<vmem>>, %arg8: memref<1x128xf32, #tpu.memory_space<vmem>>, %arg9: memref<1x128xf32, #tpu.memory_space<vmem>>, %arg10: memref<1x128xf32, #tpu.memory_space<vmem>>, %arg11: memref<1x128xf32, #tpu.memory_space<vmem>>, %arg12: memref<1x128xf32, #tpu.memory_space<vmem>>, %arg13: memref<128x128xf32, #tpu.memory_space<vmem>>, %arg14: memref<1x128xf32, #tpu.memory_space<vmem>>, %arg15: memref<128x128xf32, #tpu.memory_space<vmem>>, %arg16: memref<1x128xf32, #tpu.memory_space<vmem>>, %arg17: memref<1x128xf32, #tpu.memory_space<vmem>>, %arg18: memref<1x128xf32, #tpu.memory_space<vmem>>, %arg19: memref<2x128x128xf32, #tpu.memory_space<vmem>>, %arg20: memref<2x1x128xf32, #tpu.memory_space<vmem>>, %arg21: memref<2x1x128xf32, #tpu.memory_space<vmem>>, %arg22: memref<2x1x128xf32, #tpu.memory_space<vmem>>, %arg23: memref<2x128x128xf32, #tpu.memory_space<vmem>>, %arg24: memref<2x1x128xf32, #tpu.memory_space<vmem>>, %arg25: memref<128x128xf32, #tpu.memory_space<vmem>>, %arg26: memref<1x128xf32, #tpu.memory_space<vmem>>, %arg27: memref<1x128xf32, #tpu.memory_space<vmem>>, %arg28: memref<1x128xf32, #tpu.memory_space<vmem>>, %arg29: memref<128x128xf32, #tpu.memory_space<vmem>>, %arg30: memref<1x128xf32, #tpu.memory_space<vmem>>, %arg31: memref<2x8x128xf32, #tpu.memory_space<vmem>>, %arg32: memref<8x128xf32, #tpu.memory_space<vmem>>, %arg33: memref<2x16x128xf32, #tpu.memory_space<vmem>>, %arg34: memref<16x128xf32, #tpu.memory_space<vmem>>, %arg35: memref<2x1x128xf32, #tpu.memory_space<vmem>>, %arg36: memref<2x1x128xf32, #tpu.memory_space<vmem>>, %arg37: memref<1x128xf32, #tpu.memory_space<vmem>>, %arg38: memref<1x128xf32, #tpu.memory_space<vmem>>) attributes {dimension_semantics = [#tpu.dimension_semantics<arbitrary>, #tpu.dimension_semantics<arbitrary>], iteration_bounds = array<i64: 2, 2>, scalar_prefetch = 0 : i64, scratch_operands = 6 : i64, tpu.core_type = #tpu.core_type<tc>, window_params = [{transform_indices = @transform_0, window_bounds = array<i64: 8, 128>}, {pipeline_mode = #tpu.pipeline_mode<synchronous>, transform_indices = @transform_1, window_bounds = array<i64: 1, 128>}, {pipeline_mode = #tpu.pipeline_mode<synchronous>, transform_indices = @transform_2, window_bounds = array<i64: 1, 128>}, {pipeline_mode = #tpu.pipeline_mode<synchronous>, transform_indices = @transform_3, window_bounds = array<i64: 128, 128>}, {pipeline_mode = #tpu.pipeline_mode<synchronous>, transform_indices = @transform_4, window_bounds = array<i64: 1, 128>}, {pipeline_mode = #tpu.pipeline_mode<synchronous>, transform_indices = @transform_5, window_bounds = array<i64: 128, 128>}, {pipeline_mode = #tpu.pipeline_mode<synchronous>, transform_indices = @transform_6, window_bounds = array<i64: 1, 128>}, {pipeline_mode = #tpu.pipeline_mode<synchronous>, transform_indices = @transform_7, window_bounds = array<i64: 1, 128>}, {pipeline_mode = #tpu.pipeline_mode<synchronous>, transform_indices = @transform_8, window_bounds = array<i64: 1, 128>}, {pipeline_mode = #tpu.pipeline_mode<synchronous>, transform_indices = @transform_9, window_bounds = array<i64: 1, 128>}, {pipeline_mode = #tpu.pipeline_mode<synchronous>, transform_indices = @transform_10, window_bounds = array<i64: 1, 128>}, {pipeline_mode = #tpu.pipeline_mode<synchronous>, transform_indices = @transform_11, window_bounds = array<i64: 128, 128>}, {pipeline_mode = #tpu.pipeline_mode<synchronous>, transform_indices = @transform_12, window_bounds = array<i64: 1, 128>}, {pipeline_mode = #tpu.pipeline_mode<synchronous>, transform_indices = @transform_13, window_bounds = array<i64: 128, 128>}, {pipeline_mode = #tpu.pipeline_mode<synchronous>, transform_indices = @transform_14, window_bounds = array<i64: 1, 128>}, {pipeline_mode = #tpu.pipeline_mode<synchronous>, transform_indices = @transform_15, window_bounds = array<i64: 1, 128>}, {pipeline_mode = #tpu.pipeline_mode<synchronous>, transform_indices = @transform_16, window_bounds = array<i64: 1, 128>}, {pipeline_mode = #tpu.pipeline_mode<synchronous>, transform_indices = @transform_17, window_bounds = array<i64: 2, 128, 128>}, {pipeline_mode = #tpu.pipeline_mode<synchronous>, transform_indices = @transform_18, window_bounds = array<i64: 2, 1, 128>}, {pipeline_mode = #tpu.pipeline_mode<synchronous>, transform_indices = @transform_19, window_bounds = array<i64: 2, 1, 128>}, {pipeline_mode = #tpu.pipeline_mode<synchronous>, transform_indices = @transform_20, window_bounds = array<i64: 2, 1, 128>}, {pipeline_mode = #tpu.pipeline_mode<synchronous>, transform_indices = @transform_21, window_bounds = array<i64: 2, 128, 128>}, {pipeline_mode = #tpu.pipeline_mode<synchronous>, transform_indices = @transform_22, window_bounds = array<i64: 2, 1, 128>}, {pipeline_mode = #tpu.pipeline_mode<synchronous>, transform_indices = @transform_23, window_bounds = array<i64: 128, 128>}, {pipeline_mode = #tpu.pipeline_mode<synchronous>, transform_indices = @transform_24, window_bounds = array<i64: 1, 128>}, {pipeline_mode = #tpu.pipeline_mode<synchronous>, transform_indices = @transform_25, window_bounds = array<i64: 1, 128>}, {pipeline_mode = #tpu.pipeline_mode<synchronous>, transform_indices = @transform_26, window_bounds = array<i64: 1, 128>}, {pipeline_mode = #tpu.pipeline_mode<synchronous>, transform_indices = @transform_27, window_bounds = array<i64: 128, 128>}, {pipeline_mode = #tpu.pipeline_mode<synchronous>, transform_indices = @transform_28, window_bounds = array<i64: 1, 128>}, {transform_indices = @transform_29, window_bounds = array<i64: 2, 8, 128>}, {transform_indices = @transform_30, window_bounds = array<i64: 8, 128>}]} {
    %c8_i32 = arith.constant 8 : i32
    %0 = arith.muli %arg1, %c8_i32 : i32
    %1 = tpu.assume_multiple %0, 8 : i32
    %2 = tpu.iota {dimensions = array<i32: 1>} : vector<1x128xi32>
    %c32_i32 = arith.constant 32 : i32
    %3 = vector.broadcast %c32_i32 : i32 to vector<1x128xi32>
    %4 = arith.cmpi slt, %2, %3 : vector<1x128xi32>
    %5 = arith.extui %4 : vector<1x128xi1> to vector<1x128xi32>
    %6 = arith.sitofp %5 : vector<1x128xi32> to vector<1x128xf32>
    %c0_i32 = arith.constant 0 : i32
    %7 = arith.cmpi eq, %arg0, %c0_i32 : i32
    %c0_i32_0 = arith.constant 0 : i32
    %8 = arith.cmpi eq, %arg1, %c0_i32_0 : i32
    %9 = arith.andi %7, %8 : i1
    %10 = arith.extui %9 : i1 to i32
    %c0_i32_1 = arith.constant 0 : i32
    %11 = arith.cmpi ne, %10, %c0_i32_1 : i32
    scf.if %11 {
      %cst = arith.constant 0.000000e+00 : f32
      %18 = vector.broadcast %cst : f32 to vector<2x1x128xf32>
      %c0 = arith.constant 0 : index
      %c0_5 = arith.constant 0 : index
      %c0_6 = arith.constant 0 : index
      %19 = vector.load %arg35[%c0, %c0_5, %c0_6] : memref<2x1x128xf32, #tpu.memory_space<vmem>>, vector<2x1x128xf32>
      tpu.vector_store %arg35[%c0, %c0_5, %c0_6], %18 {strides = array<i32>} : memref<2x1x128xf32, #tpu.memory_space<vmem>>, vector<2x1x128xf32>,
      %cst_7 = arith.constant 0.000000e+00 : f32
      %20 = vector.broadcast %cst_7 : f32 to vector<2x1x128xf32>
      %c0_8 = arith.constant 0 : index
      %c0_9 = arith.constant 0 : index
      %c0_10 = arith.constant 0 : index
      %21 = vector.load %arg36[%c0_8, %c0_9, %c0_10] : memref<2x1x128xf32, #tpu.memory_space<vmem>>, vector<2x1x128xf32>
      tpu.vector_store %arg36[%c0_8, %c0_9, %c0_10], %20 {strides = array<i32>} : memref<2x1x128xf32, #tpu.memory_space<vmem>>, vector<2x1x128xf32>,
      %cst_11 = arith.constant 0.000000e+00 : f32
      %22 = vector.broadcast %cst_11 : f32 to vector<1x128xf32>
      %c0_12 = arith.constant 0 : index
      %c0_13 = arith.constant 0 : index
      %23 = vector.load %arg37[%c0_12, %c0_13] : memref<1x128xf32, #tpu.memory_space<vmem>>, vector<1x128xf32>
      tpu.vector_store %arg37[%c0_12, %c0_13], %22 {strides = array<i32>} : memref<1x128xf32, #tpu.memory_space<vmem>>, vector<1x128xf32>,
      %cst_14 = arith.constant 0.000000e+00 : f32
      %24 = vector.broadcast %cst_14 : f32 to vector<1x128xf32>
      %c0_15 = arith.constant 0 : index
      %c0_16 = arith.constant 0 : index
      %25 = vector.load %arg38[%c0_15, %c0_16] : memref<1x128xf32, #tpu.memory_space<vmem>>, vector<1x128xf32>
      tpu.vector_store %arg38[%c0_15, %c0_16], %24 {strides = array<i32>} : memref<1x128xf32, #tpu.memory_space<vmem>>, vector<1x128xf32>,
    } else {
    }
    %c0_i32_2 = arith.constant 0 : i32
    %12 = arith.cmpi eq, %arg0, %c0_i32_2 : i32
    %13 = arith.extui %12 : i1 to i32
    %c0_i32_3 = arith.constant 0 : i32
    %14 = arith.cmpi ne, %13, %c0_i32_3 : i32
    scf.if %14 {
      %c0 = arith.constant 0 : index
      %c0_5 = arith.constant 0 : index
      %18 = vector.load %arg2[%c0, %c0_5] : memref<8x128xf32, #tpu.memory_space<vmem>>, vector<8x128xf32>
      %c0_6 = arith.constant 0 : index
      %c0_7 = arith.constant 0 : index
      %19 = vector.load %arg3[%c0_6, %c0_7] : memref<1x128xf32, #tpu.memory_space<vmem>>, vector<1x128xf32>
      %c0_8 = arith.constant 0 : index
      %c0_9 = arith.constant 0 : index
      %20 = vector.load %arg4[%c0_8, %c0_9] : memref<1x128xf32, #tpu.memory_space<vmem>>, vector<1x128xf32>
      %21 = vector.broadcast %6 : vector<1x128xf32> to vector<8x128xf32>
      %22 = arith.mulf %18, %21 : vector<8x128xf32>
      %cst = arith.constant dense<0.000000e+00> : vector<8xf32>
      %23 = vector.multi_reduction <add>, %22, %cst [1] : vector<8x128xf32> to vector<8xf32>
      %24 = vector.shape_cast %23 : vector<8xf32> to vector<8x1xf32>
      %cst_10 = arith.constant 3.200000e+01 : f32
      %25 = vector.broadcast %cst_10 : f32 to vector<8x1xf32>
      %26 = arith.divf %24, %25 : vector<8x1xf32>
      %27 = vector.broadcast %26 : vector<8x1xf32> to vector<8x128xf32>
      %28 = arith.subf %18, %27 : vector<8x128xf32>
      %29 = vector.broadcast %6 : vector<1x128xf32> to vector<8x128xf32>
      %30 = arith.mulf %28, %29 : vector<8x128xf32>
      %31 = arith.mulf %30, %30 : vector<8x128xf32>
      %cst_11 = arith.constant dense<0.000000e+00> : vector<8xf32>
      %32 = vector.multi_reduction <add>, %31, %cst_11 [1] : vector<8x128xf32> to vector<8xf32>
      %33 = vector.shape_cast %32 : vector<8xf32> to vector<8x1xf32>
      %cst_12 = arith.constant 3.200000e+01 : f32
      %34 = vector.broadcast %cst_12 : f32 to vector<8x1xf32>
      %35 = arith.divf %33, %34 : vector<8x1xf32>
      %36 = vector.broadcast %26 : vector<8x1xf32> to vector<8x128xf32>
      %37 = arith.subf %18, %36 : vector<8x128xf32>
      %cst_13 = arith.constant 9.99999974E-6 : f32
      %38 = vector.broadcast %cst_13 : f32 to vector<8x1xf32>
      %39 = arith.addf %35, %38 : vector<8x1xf32>
      %40 = math.rsqrt %39 : vector<8x1xf32>
      %41 = vector.broadcast %40 : vector<8x1xf32> to vector<8x128xf32>
      %42 = arith.mulf %37, %41 : vector<8x128xf32>
      %43 = vector.broadcast %19 : vector<1x128xf32> to vector<8x128xf32>
      %44 = arith.mulf %42, %43 : vector<8x128xf32>
      %45 = vector.broadcast %20 : vector<1x128xf32> to vector<8x128xf32>
      %46 = arith.addf %44, %45 : vector<8x128xf32>
      %c0_14 = arith.constant 0 : index
      %c0_15 = arith.constant 0 : index
      %47 = vector.load %arg5[%c0_14, %c0_15] : memref<128x128xf32, #tpu.memory_space<vmem>>, vector<128x128xf32>
      %cst_16 = arith.constant dense<0.000000e+00> : vector<8x128xf32>
      %48 = tpu.matmul %46, %47, %cst_16 {dimension_numbers = #tpu.dot_dimension_numbers<[1], [0], [0], [1], [0, 0, 1, 1], [], []>} : vector<8x128xf32>, vector<128x128xf32>, vector<8x128xf32> -> vector<8x128xf32>
      %c0_17 = arith.constant 0 : index
      %c0_18 = arith.constant 0 : index
      %49 = vector.load %arg6[%c0_17, %c0_18] : memref<1x128xf32, #tpu.memory_space<vmem>>, vector<1x128xf32>
      %50 = vector.broadcast %49 : vector<1x128xf32> to vector<8x128xf32>
      %51 = arith.addf %48, %50 : vector<8x128xf32>
      %cst_19 = arith.constant 0.000000e+00 : f32
      %52 = vector.broadcast %cst_19 : f32 to vector<8x128xf32>
      %53 = arith.maximumf %51, %52 : vector<8x128xf32>
      %c0_20 = arith.constant 0 : index
      %c0_21 = arith.constant 0 : index
      %54 = vector.load %arg7[%c0_20, %c0_21] : memref<128x128xf32, #tpu.memory_space<vmem>>, vector<128x128xf32>
      %cst_22 = arith.constant dense<0.000000e+00> : vector<8x128xf32>
      %55 = tpu.matmul %53, %54, %cst_22 {dimension_numbers = #tpu.dot_dimension_numbers<[1], [0], [0], [1], [0, 0, 1, 1], [], []>} : vector<8x128xf32>, vector<128x128xf32>, vector<8x128xf32> -> vector<8x128xf32>
      %c0_23 = arith.constant 0 : index
      %c0_24 = arith.constant 0 : index
      %56 = vector.load %arg8[%c0_23, %c0_24] : memref<1x128xf32, #tpu.memory_space<vmem>>, vector<1x128xf32>
      %57 = vector.broadcast %56 : vector<1x128xf32> to vector<8x128xf32>
      %58 = arith.addf %55, %57 : vector<8x128xf32>
      %59 = arith.addf %58, %18 : vector<8x128xf32>
      %c0_25 = arith.constant 0 : index
      %c0_26 = arith.constant 0 : index
      %60 = vector.load %arg9[%c0_25, %c0_26] : memref<1x128xf32, #tpu.memory_space<vmem>>, vector<1x128xf32>
      %c0_27 = arith.constant 0 : index
      %c0_28 = arith.constant 0 : index
      %61 = vector.load %arg10[%c0_27, %c0_28] : memref<1x128xf32, #tpu.memory_space<vmem>>, vector<1x128xf32>
      %62 = vector.broadcast %6 : vector<1x128xf32> to vector<8x128xf32>
      %63 = arith.mulf %59, %62 : vector<8x128xf32>
      %cst_29 = arith.constant dense<0.000000e+00> : vector<8xf32>
      %64 = vector.multi_reduction <add>, %63, %cst_29 [1] : vector<8x128xf32> to vector<8xf32>
      %65 = vector.shape_cast %64 : vector<8xf32> to vector<8x1xf32>
      %cst_30 = arith.constant 3.200000e+01 : f32
      %66 = vector.broadcast %cst_30 : f32 to vector<8x1xf32>
      %67 = arith.divf %65, %66 : vector<8x1xf32>
      %68 = vector.broadcast %67 : vector<8x1xf32> to vector<8x128xf32>
      %69 = arith.subf %59, %68 : vector<8x128xf32>
      %70 = vector.broadcast %6 : vector<1x128xf32> to vector<8x128xf32>
      %71 = arith.mulf %69, %70 : vector<8x128xf32>
      %72 = arith.mulf %71, %71 : vector<8x128xf32>
      %cst_31 = arith.constant dense<0.000000e+00> : vector<8xf32>
      %73 = vector.multi_reduction <add>, %72, %cst_31 [1] : vector<8x128xf32> to vector<8xf32>
      %74 = vector.shape_cast %73 : vector<8xf32> to vector<8x1xf32>
      %cst_32 = arith.constant 3.200000e+01 : f32
      %75 = vector.broadcast %cst_32 : f32 to vector<8x1xf32>
      %76 = arith.divf %74, %75 : vector<8x1xf32>
      %77 = vector.broadcast %67 : vector<8x1xf32> to vector<8x128xf32>
      %78 = arith.subf %59, %77 : vector<8x128xf32>
      %cst_33 = arith.constant 9.99999974E-6 : f32
      %79 = vector.broadcast %cst_33 : f32 to vector<8x1xf32>
      %80 = arith.addf %76, %79 : vector<8x1xf32>
      %81 = math.rsqrt %80 : vector<8x1xf32>
      %82 = vector.broadcast %81 : vector<8x1xf32> to vector<8x128xf32>
      %83 = arith.mulf %78, %82 : vector<8x128xf32>
      %84 = vector.broadcast %60 : vector<1x128xf32> to vector<8x128xf32>
      %85 = arith.mulf %83, %84 : vector<8x128xf32>
      %86 = vector.broadcast %61 : vector<1x128xf32> to vector<8x128xf32>
      %87 = arith.addf %85, %86 : vector<8x128xf32>
      %c0_34 = arith.constant 0 : index
      %c0_35 = arith.constant 0 : index
      %88 = vector.load %arg11[%c0_34, %c0_35] : memref<1x128xf32, #tpu.memory_space<vmem>>, vector<1x128xf32>
      %c0_36 = arith.constant 0 : index
      %c0_37 = arith.constant 0 : index
      %89 = vector.load %arg12[%c0_36, %c0_37] : memref<1x128xf32, #tpu.memory_space<vmem>>, vector<1x128xf32>
      %90 = vector.broadcast %6 : vector<1x128xf32> to vector<8x128xf32>
      %91 = arith.mulf %18, %90 : vector<8x128xf32>
      %cst_38 = arith.constant dense<0.000000e+00> : vector<8xf32>
      %92 = vector.multi_reduction <add>, %91, %cst_38 [1] : vector<8x128xf32> to vector<8xf32>
      %93 = vector.shape_cast %92 : vector<8xf32> to vector<8x1xf32>
      %cst_39 = arith.constant 3.200000e+01 : f32
      %94 = vector.broadcast %cst_39 : f32 to vector<8x1xf32>
      %95 = arith.divf %93, %94 : vector<8x1xf32>
      %96 = vector.broadcast %95 : vector<8x1xf32> to vector<8x128xf32>
      %97 = arith.subf %18, %96 : vector<8x128xf32>
      %98 = vector.broadcast %6 : vector<1x128xf32> to vector<8x128xf32>
      %99 = arith.mulf %97, %98 : vector<8x128xf32>
      %100 = arith.mulf %99, %99 : vector<8x128xf32>
      %cst_40 = arith.constant dense<0.000000e+00> : vector<8xf32>
      %101 = vector.multi_reduction <add>, %100, %cst_40 [1] : vector<8x128xf32> to vector<8xf32>
      %102 = vector.shape_cast %101 : vector<8xf32> to vector<8x1xf32>
      %cst_41 = arith.constant 3.200000e+01 : f32
      %103 = vector.broadcast %cst_41 : f32 to vector<8x1xf32>
      %104 = arith.divf %102, %103 : vector<8x1xf32>
      %105 = vector.broadcast %95 : vector<8x1xf32> to vector<8x128xf32>
      %106 = arith.subf %18, %105 : vector<8x128xf32>
      %cst_42 = arith.constant 9.99999974E-6 : f32
      %107 = vector.broadcast %cst_42 : f32 to vector<8x1xf32>
      %108 = arith.addf %104, %107 : vector<8x1xf32>
      %109 = math.rsqrt %108 : vector<8x1xf32>
      %110 = vector.broadcast %109 : vector<8x1xf32> to vector<8x128xf32>
      %111 = arith.mulf %106, %110 : vector<8x128xf32>
      %112 = vector.broadcast %88 : vector<1x128xf32> to vector<8x128xf32>
      %113 = arith.mulf %111, %112 : vector<8x128xf32>
      %114 = vector.broadcast %89 : vector<1x128xf32> to vector<8x128xf32>
      %115 = arith.addf %113, %114 : vector<8x128xf32>
      %c0_43 = arith.constant 0 : index
      %c0_44 = arith.constant 0 : index
      %116 = vector.load %arg13[%c0_43, %c0_44] : memref<128x128xf32, #tpu.memory_space<vmem>>, vector<128x128xf32>
      %cst_45 = arith.constant dense<0.000000e+00> : vector<8x128xf32>
      %117 = tpu.matmul %115, %116, %cst_45 {dimension_numbers = #tpu.dot_dimension_numbers<[1], [0], [0], [1], [0, 0, 1, 1], [], []>} : vector<8x128xf32>, vector<128x128xf32>, vector<8x128xf32> -> vector<8x128xf32>
      %c0_46 = arith.constant 0 : index
      %c0_47 = arith.constant 0 : index
      %118 = vector.load %arg14[%c0_46, %c0_47] : memref<1x128xf32, #tpu.memory_space<vmem>>, vector<1x128xf32>
      %119 = vector.broadcast %118 : vector<1x128xf32> to vector<8x128xf32>
      %120 = arith.addf %117, %119 : vector<8x128xf32>
      %cst_48 = arith.constant 0.000000e+00 : f32
      %121 = vector.broadcast %cst_48 : f32 to vector<8x128xf32>
      %122 = arith.maximumf %120, %121 : vector<8x128xf32>
      %c0_49 = arith.constant 0 : index
      %c0_50 = arith.constant 0 : index
      %123 = vector.load %arg15[%c0_49, %c0_50] : memref<128x128xf32, #tpu.memory_space<vmem>>, vector<128x128xf32>
      %cst_51 = arith.constant dense<0.000000e+00> : vector<8x128xf32>
      %124 = tpu.matmul %122, %123, %cst_51 {dimension_numbers = #tpu.dot_dimension_numbers<[1], [0], [0], [1], [0, 0, 1, 1], [], []>} : vector<8x128xf32>, vector<128x128xf32>, vector<8x128xf32> -> vector<8x128xf32>
      %c0_52 = arith.constant 0 : index
      %c0_53 = arith.constant 0 : index
      %125 = vector.load %arg16[%c0_52, %c0_53] : memref<1x128xf32, #tpu.memory_space<vmem>>, vector<1x128xf32>
      %126 = vector.broadcast %125 : vector<1x128xf32> to vector<8x128xf32>
      %127 = arith.addf %124, %126 : vector<8x128xf32>
      %128 = arith.addf %127, %18 : vector<8x128xf32>
      %c0_54 = arith.constant 0 : index
      %c0_55 = arith.constant 0 : index
      %129 = vector.load %arg17[%c0_54, %c0_55] : memref<1x128xf32, #tpu.memory_space<vmem>>, vector<1x128xf32>
      %c0_56 = arith.constant 0 : index
      %c0_57 = arith.constant 0 : index
      %130 = vector.load %arg18[%c0_56, %c0_57] : memref<1x128xf32, #tpu.memory_space<vmem>>, vector<1x128xf32>
      %131 = vector.broadcast %6 : vector<1x128xf32> to vector<8x128xf32>
      %132 = arith.mulf %128, %131 : vector<8x128xf32>
      %cst_58 = arith.constant dense<0.000000e+00> : vector<8xf32>
      %133 = vector.multi_reduction <add>, %132, %cst_58 [1] : vector<8x128xf32> to vector<8xf32>
      %134 = vector.shape_cast %133 : vector<8xf32> to vector<8x1xf32>
      %cst_59 = arith.constant 3.200000e+01 : f32
      %135 = vector.broadcast %cst_59 : f32 to vector<8x1xf32>
      %136 = arith.divf %134, %135 : vector<8x1xf32>
      %137 = vector.broadcast %136 : vector<8x1xf32> to vector<8x128xf32>
      %138 = arith.subf %128, %137 : vector<8x128xf32>
      %139 = vector.broadcast %6 : vector<1x128xf32> to vector<8x128xf32>
      %140 = arith.mulf %138, %139 : vector<8x128xf32>
      %141 = arith.mulf %140, %140 : vector<8x128xf32>
      %cst_60 = arith.constant dense<0.000000e+00> : vector<8xf32>
      %142 = vector.multi_reduction <add>, %141, %cst_60 [1] : vector<8x128xf32> to vector<8xf32>
      %143 = vector.shape_cast %142 : vector<8xf32> to vector<8x1xf32>
      %cst_61 = arith.constant 3.200000e+01 : f32
      %144 = vector.broadcast %cst_61 : f32 to vector<8x1xf32>
      %145 = arith.divf %143, %144 : vector<8x1xf32>
      %146 = vector.broadcast %136 : vector<8x1xf32> to vector<8x128xf32>
      %147 = arith.subf %128, %146 : vector<8x128xf32>
      %cst_62 = arith.constant 9.99999974E-6 : f32
      %148 = vector.broadcast %cst_62 : f32 to vector<8x1xf32>
      %149 = arith.addf %145, %148 : vector<8x1xf32>
      %150 = math.rsqrt %149 : vector<8x1xf32>
      %151 = vector.broadcast %150 : vector<8x1xf32> to vector<8x128xf32>
      %152 = arith.mulf %147, %151 : vector<8x128xf32>
      %153 = vector.broadcast %129 : vector<1x128xf32> to vector<8x128xf32>
      %154 = arith.mulf %152, %153 : vector<8x128xf32>
      %155 = vector.broadcast %130 : vector<1x128xf32> to vector<8x128xf32>
      %156 = arith.addf %154, %155 : vector<8x128xf32>
      %c0_63 = arith.constant 0 : index
      %c0_64 = arith.constant 0 : index
      %c0_65 = arith.constant 0 : index
      %157 = vector.load %arg19[%c0_63, %c0_64, %c0_65] : memref<2x128x128xf32, #tpu.memory_space<vmem>>, vector<1x128x128xf32>
      %158 = vector.shape_cast %157 : vector<1x128x128xf32> to vector<128x128xf32>
      %cst_66 = arith.constant dense<0.000000e+00> : vector<8x128xf32>
      %159 = tpu.matmul %87, %158, %cst_66 {dimension_numbers = #tpu.dot_dimension_numbers<[1], [0], [0], [1], [0, 0, 1, 1], [], []>} : vector<8x128xf32>, vector<128x128xf32>, vector<8x128xf32> -> vector<8x128xf32>
      %c0_67 = arith.constant 0 : index
      %c0_68 = arith.constant 0 : index
      %c0_69 = arith.constant 0 : index
      %160 = vector.load %arg20[%c0_67, %c0_68, %c0_69] : memref<2x1x128xf32, #tpu.memory_space<vmem>>, vector<1x1x128xf32>
      %161 = vector.shape_cast %160 : vector<1x1x128xf32> to vector<1x128xf32>
      %162 = vector.broadcast %161 : vector<1x128xf32> to vector<8x128xf32>
      %163 = arith.addf %159, %162 : vector<8x128xf32>
      %c0_70 = arith.constant 0 : index
      %164 = arith.index_cast %1 : i32 to index
      %c0_71 = arith.constant 0 : index
      %165 = vector.load %arg33[%c0_70, %164, %c0_71] : memref<2x16x128xf32, #tpu.memory_space<vmem>>, vector<1x8x128xf32>
      %166 = vector.shape_cast %165 : vector<1x8x128xf32> to vector<8x128xf32>
      %167 = vector.shape_cast %163 : vector<8x128xf32> to vector<1x8x128xf32>
      tpu.vector_store %arg33[%c0_70, %164, %c0_71], %167 {strides = array<i32>} : memref<2x16x128xf32, #tpu.memory_space<vmem>>, vector<1x8x128xf32>,
      %c0_72 = arith.constant 0 : index
      %c0_73 = arith.constant 0 : index
      %c0_74 = arith.constant 0 : index
      %168 = vector.load %arg35[%c0_72, %c0_73, %c0_74] : memref<2x1x128xf32, #tpu.memory_space<vmem>>, vector<1x1x128xf32>
      %169 = vector.shape_cast %168 : vector<1x1x128xf32> to vector<1x128xf32>
      %cst_75 = arith.constant dense<0.000000e+00> : vector<128xf32>
      %170 = vector.multi_reduction <add>, %163, %cst_75 [0] : vector<8x128xf32> to vector<128xf32>
      %171 = vector.shape_cast %170 : vector<128xf32> to vector<1x128xf32>
      %172 = arith.addf %169, %171 : vector<1x128xf32>
      %c0_76 = arith.constant 0 : index
      %c0_77 = arith.constant 0 : index
      %c0_78 = arith.constant 0 : index
      %173 = vector.load %arg35[%c0_76, %c0_77, %c0_78] : memref<2x1x128xf32, #tpu.memory_space<vmem>>, vector<1x1x128xf32>
      %174 = vector.shape_cast %173 : vector<1x1x128xf32> to vector<1x128xf32>
      %175 = vector.shape_cast %172 : vector<1x128xf32> to vector<1x1x128xf32>
      tpu.vector_store %arg35[%c0_76, %c0_77, %c0_78], %175 {strides = array<i32>} : memref<2x1x128xf32, #tpu.memory_space<vmem>>, vector<1x1x128xf32>,
      %c0_79 = arith.constant 0 : index
      %c0_80 = arith.constant 0 : index
      %c0_81 = arith.constant 0 : index
      %176 = vector.load %arg36[%c0_79, %c0_80, %c0_81] : memref<2x1x128xf32, #tpu.memory_space<vmem>>, vector<1x1x128xf32>
      %177 = vector.shape_cast %176 : vector<1x1x128xf32> to vector<1x128xf32>
      %178 = arith.mulf %163, %163 : vector<8x128xf32>
      %cst_82 = arith.constant dense<0.000000e+00> : vector<128xf32>
      %179 = vector.multi_reduction <add>, %178, %cst_82 [0] : vector<8x128xf32> to vector<128xf32>
      %180 = vector.shape_cast %179 : vector<128xf32> to vector<1x128xf32>
      %181 = arith.addf %177, %180 : vector<1x128xf32>
      %c0_83 = arith.constant 0 : index
      %c0_84 = arith.constant 0 : index
      %c0_85 = arith.constant 0 : index
      %182 = vector.load %arg36[%c0_83, %c0_84, %c0_85] : memref<2x1x128xf32, #tpu.memory_space<vmem>>, vector<1x1x128xf32>
      %183 = vector.shape_cast %182 : vector<1x1x128xf32> to vector<1x128xf32>
      %184 = vector.shape_cast %181 : vector<1x128xf32> to vector<1x1x128xf32>
      tpu.vector_store %arg36[%c0_83, %c0_84, %c0_85], %184 {strides = array<i32>} : memref<2x1x128xf32, #tpu.memory_space<vmem>>, vector<1x1x128xf32>,
      %c1 = arith.constant 1 : index
      %c0_86 = arith.constant 0 : index
      %c0_87 = arith.constant 0 : index
      %185 = vector.load %arg19[%c1, %c0_86, %c0_87] : memref<2x128x128xf32, #tpu.memory_space<vmem>>, vector<1x128x128xf32>
      %186 = vector.shape_cast %185 : vector<1x128x128xf32> to vector<128x128xf32>
      %cst_88 = arith.constant dense<0.000000e+00> : vector<8x128xf32>
      %187 = tpu.matmul %87, %186, %cst_88 {dimension_numbers = #tpu.dot_dimension_numbers<[1], [0], [0], [1], [0, 0, 1, 1], [], []>} : vector<8x128xf32>, vector<128x128xf32>, vector<8x128xf32> -> vector<8x128xf32>
      %c1_89 = arith.constant 1 : index
      %c0_90 = arith.constant 0 : index
      %c0_91 = arith.constant 0 : index
      %188 = vector.load %arg20[%c1_89, %c0_90, %c0_91] : memref<2x1x128xf32, #tpu.memory_space<vmem>>, vector<1x1x128xf32>
      %189 = vector.shape_cast %188 : vector<1x1x128xf32> to vector<1x128xf32>
      %190 = vector.broadcast %189 : vector<1x128xf32> to vector<8x128xf32>
      %191 = arith.addf %187, %190 : vector<8x128xf32>
      %c1_92 = arith.constant 1 : index
      %192 = arith.index_cast %1 : i32 to index
      %c0_93 = arith.constant 0 : index
      %193 = vector.load %arg33[%c1_92, %192, %c0_93] : memref<2x16x128xf32, #tpu.memory_space<vmem>>, vector<1x8x128xf32>
      %194 = vector.shape_cast %193 : vector<1x8x128xf32> to vector<8x128xf32>
      %195 = vector.shape_cast %191 : vector<8x128xf32> to vector<1x8x128xf32>
      tpu.vector_store %arg33[%c1_92, %192, %c0_93], %195 {strides = array<i32>} : memref<2x16x128xf32, #tpu.memory_space<vmem>>, vector<1x8x128xf32>,
      %c1_94 = arith.constant 1 : index
      %c0_95 = arith.constant 0 : index
      %c0_96 = arith.constant 0 : index
      %196 = vector.load %arg35[%c1_94, %c0_95, %c0_96] : memref<2x1x128xf32, #tpu.memory_space<vmem>>, vector<1x1x128xf32>
      %197 = vector.shape_cast %196 : vector<1x1x128xf32> to vector<1x128xf32>
      %cst_97 = arith.constant dense<0.000000e+00> : vector<128xf32>
      %198 = vector.multi_reduction <add>, %191, %cst_97 [0] : vector<8x128xf32> to vector<128xf32>
      %199 = vector.shape_cast %198 : vector<128xf32> to vector<1x128xf32>
      %200 = arith.addf %197, %199 : vector<1x128xf32>
      %c1_98 = arith.constant 1 : index
      %c0_99 = arith.constant 0 : index
      %c0_100 = arith.constant 0 : index
      %201 = vector.load %arg35[%c1_98, %c0_99, %c0_100] : memref<2x1x128xf32, #tpu.memory_space<vmem>>, vector<1x1x128xf32>
      %202 = vector.shape_cast %201 : vector<1x1x128xf32> to vector<1x128xf32>
      %203 = vector.shape_cast %200 : vector<1x128xf32> to vector<1x1x128xf32>
      tpu.vector_store %arg35[%c1_98, %c0_99, %c0_100], %203 {strides = array<i32>} : memref<2x1x128xf32, #tpu.memory_space<vmem>>, vector<1x1x128xf32>,
      %c1_101 = arith.constant 1 : index
      %c0_102 = arith.constant 0 : index
      %c0_103 = arith.constant 0 : index
      %204 = vector.load %arg36[%c1_101, %c0_102, %c0_103] : memref<2x1x128xf32, #tpu.memory_space<vmem>>, vector<1x1x128xf32>
      %205 = vector.shape_cast %204 : vector<1x1x128xf32> to vector<1x128xf32>
      %206 = arith.mulf %191, %191 : vector<8x128xf32>
      %cst_104 = arith.constant dense<0.000000e+00> : vector<128xf32>
      %207 = vector.multi_reduction <add>, %206, %cst_104 [0] : vector<8x128xf32> to vector<128xf32>
      %208 = vector.shape_cast %207 : vector<128xf32> to vector<1x128xf32>
      %209 = arith.addf %205, %208 : vector<1x128xf32>
      %c1_105 = arith.constant 1 : index
      %c0_106 = arith.constant 0 : index
      %c0_107 = arith.constant 0 : index
      %210 = vector.load %arg36[%c1_105, %c0_106, %c0_107] : memref<2x1x128xf32, #tpu.memory_space<vmem>>, vector<1x1x128xf32>
      %211 = vector.shape_cast %210 : vector<1x1x128xf32> to vector<1x128xf32>
      %212 = vector.shape_cast %209 : vector<1x128xf32> to vector<1x1x128xf32>
      tpu.vector_store %arg36[%c1_105, %c0_106, %c0_107], %212 {strides = array<i32>} : memref<2x1x128xf32, #tpu.memory_space<vmem>>, vector<1x1x128xf32>,
      %c0_108 = arith.constant 0 : index
      %c0_109 = arith.constant 0 : index
      %213 = vector.load %arg25[%c0_108, %c0_109] : memref<128x128xf32, #tpu.memory_space<vmem>>, vector<128x128xf32>
      %cst_110 = arith.constant dense<0.000000e+00> : vector<8x128xf32>
      %214 = tpu.matmul %156, %213, %cst_110 {dimension_numbers = #tpu.dot_dimension_numbers<[1], [0], [0], [1], [0, 0, 1, 1], [], []>} : vector<8x128xf32>, vector<128x128xf32>, vector<8x128xf32> -> vector<8x128xf32>
      %c0_111 = arith.constant 0 : index
      %c0_112 = arith.constant 0 : index
      %215 = vector.load %arg26[%c0_111, %c0_112] : memref<1x128xf32, #tpu.memory_space<vmem>>, vector<1x128xf32>
      %216 = vector.broadcast %215 : vector<1x128xf32> to vector<8x128xf32>
      %217 = arith.addf %214, %216 : vector<8x128xf32>
      %218 = arith.index_cast %1 : i32 to index
      %c0_113 = arith.constant 0 : index
      %219 = vector.load %arg34[%218, %c0_113] : memref<16x128xf32, #tpu.memory_space<vmem>>, vector<8x128xf32>
      tpu.vector_store %arg34[%218, %c0_113], %217 {strides = array<i32>} : memref<16x128xf32, #tpu.memory_space<vmem>>, vector<8x128xf32>,
      %c0_114 = arith.constant 0 : index
      %c0_115 = arith.constant 0 : index
      %220 = vector.load %arg37[%c0_114, %c0_115] : memref<1x128xf32, #tpu.memory_space<vmem>>, vector<1x128xf32>
      %cst_116 = arith.constant dense<0.000000e+00> : vector<128xf32>
      %221 = vector.multi_reduction <add>, %217, %cst_116 [0] : vector<8x128xf32> to vector<128xf32>
      %222 = vector.shape_cast %221 : vector<128xf32> to vector<1x128xf32>
      %223 = arith.addf %220, %222 : vector<1x128xf32>
      %c0_117 = arith.constant 0 : index
      %c0_118 = arith.constant 0 : index
      %224 = vector.load %arg37[%c0_117, %c0_118] : memref<1x128xf32, #tpu.memory_space<vmem>>, vector<1x128xf32>
      tpu.vector_store %arg37[%c0_117, %c0_118], %223 {strides = array<i32>} : memref<1x128xf32, #tpu.memory_space<vmem>>, vector<1x128xf32>,
      %c0_119 = arith.constant 0 : index
      %c0_120 = arith.constant 0 : index
      %225 = vector.load %arg38[%c0_119, %c0_120] : memref<1x128xf32, #tpu.memory_space<vmem>>, vector<1x128xf32>
      %226 = arith.mulf %217, %217 : vector<8x128xf32>
      %cst_121 = arith.constant dense<0.000000e+00> : vector<128xf32>
      %227 = vector.multi_reduction <add>, %226, %cst_121 [0] : vector<8x128xf32> to vector<128xf32>
      %228 = vector.shape_cast %227 : vector<128xf32> to vector<1x128xf32>
      %229 = arith.addf %225, %228 : vector<1x128xf32>
      %c0_122 = arith.constant 0 : index
      %c0_123 = arith.constant 0 : index
      %230 = vector.load %arg38[%c0_122, %c0_123] : memref<1x128xf32, #tpu.memory_space<vmem>>, vector<1x128xf32>
      tpu.vector_store %arg38[%c0_122, %c0_123], %229 {strides = array<i32>} : memref<1x128xf32, #tpu.memory_space<vmem>>, vector<1x128xf32>,
      %cst_124 = arith.constant 0.000000e+00 : f32
      %231 = vector.broadcast %cst_124 : f32 to vector<2x8x128xf32>
      %c0_125 = arith.constant 0 : index
      %c0_126 = arith.constant 0 : index
      %c0_127 = arith.constant 0 : index
      %232 = vector.load %arg31[%c0_125, %c0_126, %c0_127] : memref<2x8x128xf32, #tpu.memory_space<vmem>>, vector<2x8x128xf32>
      tpu.vector_store %arg31[%c0_125, %c0_126, %c0_127], %231 {strides = array<i32>} : memref<2x8x128xf32, #tpu.memory_space<vmem>>, vector<2x8x128xf32>,
      %cst_128 = arith.constant 0.000000e+00 : f32
      %233 = vector.broadcast %cst_128 : f32 to vector<8x128xf32>
      %c0_129 = arith.constant 0 : index
      %c0_130 = arith.constant 0 : index
      %234 = vector.load %arg32[%c0_129, %c0_130] : memref<8x128xf32, #tpu.memory_space<vmem>>, vector<8x128xf32>
      tpu.vector_store %arg32[%c0_129, %c0_130], %233 {strides = array<i32>} : memref<8x128xf32, #tpu.memory_space<vmem>>, vector<8x128xf32>,
    } else {
    }
    %c1_i32 = arith.constant 1 : i32
    %15 = arith.cmpi eq, %arg0, %c1_i32 : i32
    %16 = arith.extui %15 : i1 to i32
    %c0_i32_4 = arith.constant 0 : i32
    %17 = arith.cmpi ne, %16, %c0_i32_4 : i32
    scf.if %17 {
      %c0 = arith.constant 0 : index
      %18 = arith.index_cast %1 : i32 to index
      %c0_5 = arith.constant 0 : index
      %19 = vector.load %arg33[%c0, %18, %c0_5] : memref<2x16x128xf32, #tpu.memory_space<vmem>>, vector<1x8x128xf32>
      %20 = vector.shape_cast %19 : vector<1x8x128xf32> to vector<8x128xf32>
      %c0_6 = arith.constant 0 : index
      %c0_7 = arith.constant 0 : index
      %c0_8 = arith.constant 0 : index
      %21 = vector.load %arg35[%c0_6, %c0_7, %c0_8] : memref<2x1x128xf32, #tpu.memory_space<vmem>>, vector<1x1x128xf32>
      %22 = vector.shape_cast %21 : vector<1x1x128xf32> to vector<1x128xf32>
      %cst = arith.constant 6.250000e-02 : f32
      %23 = vector.broadcast %cst : f32 to vector<1x128xf32>
      %24 = arith.mulf %22, %23 : vector<1x128xf32>
      %c0_9 = arith.constant 0 : index
      %c0_10 = arith.constant 0 : index
      %c0_11 = arith.constant 0 : index
      %25 = vector.load %arg36[%c0_9, %c0_10, %c0_11] : memref<2x1x128xf32, #tpu.memory_space<vmem>>, vector<1x1x128xf32>
      %26 = vector.shape_cast %25 : vector<1x1x128xf32> to vector<1x128xf32>
      %cst_12 = arith.constant 6.250000e-02 : f32
      %27 = vector.broadcast %cst_12 : f32 to vector<1x128xf32>
      %28 = arith.mulf %26, %27 : vector<1x128xf32>
      %29 = arith.mulf %24, %24 : vector<1x128xf32>
      %30 = arith.subf %28, %29 : vector<1x128xf32>
      %cst_13 = arith.constant 0.000000e+00 : f32
      %31 = vector.broadcast %cst_13 : f32 to vector<1x128xf32>
      %32 = arith.maximumf %30, %31 : vector<1x128xf32>
      %33 = vector.broadcast %24 : vector<1x128xf32> to vector<8x128xf32>
      %34 = arith.subf %20, %33 : vector<8x128xf32>
      %cst_14 = arith.constant 9.99999974E-6 : f32
      %35 = vector.broadcast %cst_14 : f32 to vector<1x128xf32>
      %36 = arith.addf %32, %35 : vector<1x128xf32>
      %37 = math.rsqrt %36 : vector<1x128xf32>
      %38 = vector.broadcast %37 : vector<1x128xf32> to vector<8x128xf32>
      %39 = arith.mulf %34, %38 : vector<8x128xf32>
      %c0_15 = arith.constant 0 : index
      %c0_16 = arith.constant 0 : index
      %c0_17 = arith.constant 0 : index
      %40 = vector.load %arg21[%c0_15, %c0_16, %c0_17] : memref<2x1x128xf32, #tpu.memory_space<vmem>>, vector<1x1x128xf32>
      %41 = vector.shape_cast %40 : vector<1x1x128xf32> to vector<1x128xf32>
      %42 = vector.broadcast %41 : vector<1x128xf32> to vector<8x128xf32>
      %43 = arith.mulf %39, %42 : vector<8x128xf32>
      %c0_18 = arith.constant 0 : index
      %c0_19 = arith.constant 0 : index
      %c0_20 = arith.constant 0 : index
      %44 = vector.load %arg22[%c0_18, %c0_19, %c0_20] : memref<2x1x128xf32, #tpu.memory_space<vmem>>, vector<1x1x128xf32>
      %45 = vector.shape_cast %44 : vector<1x1x128xf32> to vector<1x128xf32>
      %46 = vector.broadcast %45 : vector<1x128xf32> to vector<8x128xf32>
      %47 = arith.addf %43, %46 : vector<8x128xf32>
      %cst_21 = arith.constant 0.000000e+00 : f32
      %48 = vector.broadcast %cst_21 : f32 to vector<8x128xf32>
      %49 = arith.maximumf %47, %48 : vector<8x128xf32>
      %c0_22 = arith.constant 0 : index
      %c0_23 = arith.constant 0 : index
      %c0_24 = arith.constant 0 : index
      %50 = vector.load %arg23[%c0_22, %c0_23, %c0_24] : memref<2x128x128xf32, #tpu.memory_space<vmem>>, vector<1x128x128xf32>
      %51 = vector.shape_cast %50 : vector<1x128x128xf32> to vector<128x128xf32>
      %cst_25 = arith.constant dense<0.000000e+00> : vector<8x128xf32>
      %52 = tpu.matmul %49, %51, %cst_25 {dimension_numbers = #tpu.dot_dimension_numbers<[1], [0], [0], [1], [0, 0, 1, 1], [], []>} : vector<8x128xf32>, vector<128x128xf32>, vector<8x128xf32> -> vector<8x128xf32>
      %c0_26 = arith.constant 0 : index
      %c0_27 = arith.constant 0 : index
      %c0_28 = arith.constant 0 : index
      %53 = vector.load %arg24[%c0_26, %c0_27, %c0_28] : memref<2x1x128xf32, #tpu.memory_space<vmem>>, vector<1x1x128xf32>
      %54 = vector.shape_cast %53 : vector<1x1x128xf32> to vector<1x128xf32>
      %55 = vector.broadcast %54 : vector<1x128xf32> to vector<8x128xf32>
      %56 = arith.addf %52, %55 : vector<8x128xf32>
      %c0_29 = arith.constant 0 : index
      %c0_30 = arith.constant 0 : index
      %c0_31 = arith.constant 0 : index
      %57 = vector.load %arg31[%c0_29, %c0_30, %c0_31] : memref<2x8x128xf32, #tpu.memory_space<vmem>>, vector<1x8x128xf32>
      %58 = vector.shape_cast %57 : vector<1x8x128xf32> to vector<8x128xf32>
      %59 = vector.shape_cast %56 : vector<8x128xf32> to vector<1x8x128xf32>
      tpu.vector_store %arg31[%c0_29, %c0_30, %c0_31], %59 {strides = array<i32>} : memref<2x8x128xf32, #tpu.memory_space<vmem>>, vector<1x8x128xf32>,
      %c1 = arith.constant 1 : index
      %60 = arith.index_cast %1 : i32 to index
      %c0_32 = arith.constant 0 : index
      %61 = vector.load %arg33[%c1, %60, %c0_32] : memref<2x16x128xf32, #tpu.memory_space<vmem>>, vector<1x8x128xf32>
      %62 = vector.shape_cast %61 : vector<1x8x128xf32> to vector<8x128xf32>
      %c1_33 = arith.constant 1 : index
      %c0_34 = arith.constant 0 : index
      %c0_35 = arith.constant 0 : index
      %63 = vector.load %arg35[%c1_33, %c0_34, %c0_35] : memref<2x1x128xf32, #tpu.memory_space<vmem>>, vector<1x1x128xf32>
      %64 = vector.shape_cast %63 : vector<1x1x128xf32> to vector<1x128xf32>
      %cst_36 = arith.constant 6.250000e-02 : f32
      %65 = vector.broadcast %cst_36 : f32 to vector<1x128xf32>
      %66 = arith.mulf %64, %65 : vector<1x128xf32>
      %c1_37 = arith.constant 1 : index
      %c0_38 = arith.constant 0 : index
      %c0_39 = arith.constant 0 : index
      %67 = vector.load %arg36[%c1_37, %c0_38, %c0_39] : memref<2x1x128xf32, #tpu.memory_space<vmem>>, vector<1x1x128xf32>
      %68 = vector.shape_cast %67 : vector<1x1x128xf32> to vector<1x128xf32>
      %cst_40 = arith.constant 6.250000e-02 : f32
      %69 = vector.broadcast %cst_40 : f32 to vector<1x128xf32>
      %70 = arith.mulf %68, %69 : vector<1x128xf32>
      %71 = arith.mulf %66, %66 : vector<1x128xf32>
      %72 = arith.subf %70, %71 : vector<1x128xf32>
      %cst_41 = arith.constant 0.000000e+00 : f32
      %73 = vector.broadcast %cst_41 : f32 to vector<1x128xf32>
      %74 = arith.maximumf %72, %73 : vector<1x128xf32>
      %75 = vector.broadcast %66 : vector<1x128xf32> to vector<8x128xf32>
      %76 = arith.subf %62, %75 : vector<8x128xf32>
      %cst_42 = arith.constant 9.99999974E-6 : f32
      %77 = vector.broadcast %cst_42 : f32 to vector<1x128xf32>
      %78 = arith.addf %74, %77 : vector<1x128xf32>
      %79 = math.rsqrt %78 : vector<1x128xf32>
      %80 = vector.broadcast %79 : vector<1x128xf32> to vector<8x128xf32>
      %81 = arith.mulf %76, %80 : vector<8x128xf32>
      %c1_43 = arith.constant 1 : index
      %c0_44 = arith.constant 0 : index
      %c0_45 = arith.constant 0 : index
      %82 = vector.load %arg21[%c1_43, %c0_44, %c0_45] : memref<2x1x128xf32, #tpu.memory_space<vmem>>, vector<1x1x128xf32>
      %83 = vector.shape_cast %82 : vector<1x1x128xf32> to vector<1x128xf32>
      %84 = vector.broadcast %83 : vector<1x128xf32> to vector<8x128xf32>
      %85 = arith.mulf %81, %84 : vector<8x128xf32>
      %c1_46 = arith.constant 1 : index
      %c0_47 = arith.constant 0 : index
      %c0_48 = arith.constant 0 : index
      %86 = vector.load %arg22[%c1_46, %c0_47, %c0_48] : memref<2x1x128xf32, #tpu.memory_space<vmem>>, vector<1x1x128xf32>
      %87 = vector.shape_cast %86 : vector<1x1x128xf32> to vector<1x128xf32>
      %88 = vector.broadcast %87 : vector<1x128xf32> to vector<8x128xf32>
      %89 = arith.addf %85, %88 : vector<8x128xf32>
      %cst_49 = arith.constant 0.000000e+00 : f32
      %90 = vector.broadcast %cst_49 : f32 to vector<8x128xf32>
      %91 = arith.maximumf %89, %90 : vector<8x128xf32>
      %c1_50 = arith.constant 1 : index
      %c0_51 = arith.constant 0 : index
      %c0_52 = arith.constant 0 : index
      %92 = vector.load %arg23[%c1_50, %c0_51, %c0_52] : memref<2x128x128xf32, #tpu.memory_space<vmem>>, vector<1x128x128xf32>
      %93 = vector.shape_cast %92 : vector<1x128x128xf32> to vector<128x128xf32>
      %cst_53 = arith.constant dense<0.000000e+00> : vector<8x128xf32>
      %94 = tpu.matmul %91, %93, %cst_53 {dimension_numbers = #tpu.dot_dimension_numbers<[1], [0], [0], [1], [0, 0, 1, 1], [], []>} : vector<8x128xf32>, vector<128x128xf32>, vector<8x128xf32> -> vector<8x128xf32>
      %c1_54 = arith.constant 1 : index
      %c0_55 = arith.constant 0 : index
      %c0_56 = arith.constant 0 : index
      %95 = vector.load %arg24[%c1_54, %c0_55, %c0_56] : memref<2x1x128xf32, #tpu.memory_space<vmem>>, vector<1x1x128xf32>
      %96 = vector.shape_cast %95 : vector<1x1x128xf32> to vector<1x128xf32>
      %97 = vector.broadcast %96 : vector<1x128xf32> to vector<8x128xf32>
      %98 = arith.addf %94, %97 : vector<8x128xf32>
      %c1_57 = arith.constant 1 : index
      %c0_58 = arith.constant 0 : index
      %c0_59 = arith.constant 0 : index
      %99 = vector.load %arg31[%c1_57, %c0_58, %c0_59] : memref<2x8x128xf32, #tpu.memory_space<vmem>>, vector<1x8x128xf32>
      %100 = vector.shape_cast %99 : vector<1x8x128xf32> to vector<8x128xf32>
      %101 = vector.shape_cast %98 : vector<8x128xf32> to vector<1x8x128xf32>
      tpu.vector_store %arg31[%c1_57, %c0_58, %c0_59], %101 {strides = array<i32>} : memref<2x8x128xf32, #tpu.memory_space<vmem>>, vector<1x8x128xf32>,
      %102 = arith.index_cast %1 : i32 to index
      %c0_60 = arith.constant 0 : index
      %103 = vector.load %arg34[%102, %c0_60] : memref<16x128xf32, #tpu.memory_space<vmem>>, vector<8x128xf32>
      %c0_61 = arith.constant 0 : index
      %c0_62 = arith.constant 0 : index
      %104 = vector.load %arg37[%c0_61, %c0_62] : memref<1x128xf32, #tpu.memory_space<vmem>>, vector<1x128xf32>
      %cst_63 = arith.constant 6.250000e-02 : f32
      %105 = vector.broadcast %cst_63 : f32 to vector<1x128xf32>
      %106 = arith.mulf %104, %105 : vector<1x128xf32>
      %c0_64 = arith.constant 0 : index
      %c0_65 = arith.constant 0 : index
      %107 = vector.load %arg38[%c0_64, %c0_65] : memref<1x128xf32, #tpu.memory_space<vmem>>, vector<1x128xf32>
      %cst_66 = arith.constant 6.250000e-02 : f32
      %108 = vector.broadcast %cst_66 : f32 to vector<1x128xf32>
      %109 = arith.mulf %107, %108 : vector<1x128xf32>
      %110 = arith.mulf %106, %106 : vector<1x128xf32>
      %111 = arith.subf %109, %110 : vector<1x128xf32>
      %cst_67 = arith.constant 0.000000e+00 : f32
      %112 = vector.broadcast %cst_67 : f32 to vector<1x128xf32>
      %113 = arith.maximumf %111, %112 : vector<1x128xf32>
      %114 = vector.broadcast %106 : vector<1x128xf32> to vector<8x128xf32>
      %115 = arith.subf %103, %114 : vector<8x128xf32>
      %cst_68 = arith.constant 9.99999974E-6 : f32
      %116 = vector.broadcast %cst_68 : f32 to vector<1x128xf32>
      %117 = arith.addf %113, %116 : vector<1x128xf32>
      %118 = math.rsqrt %117 : vector<1x128xf32>
      %119 = vector.broadcast %118 : vector<1x128xf32> to vector<8x128xf32>
      %120 = arith.mulf %115, %119 : vector<8x128xf32>
      %c0_69 = arith.constant 0 : index
      %c0_70 = arith.constant 0 : index
      %121 = vector.load %arg27[%c0_69, %c0_70] : memref<1x128xf32, #tpu.memory_space<vmem>>, vector<1x128xf32>
      %122 = vector.broadcast %121 : vector<1x128xf32> to vector<8x128xf32>
      %123 = arith.mulf %120, %122 : vector<8x128xf32>
      %c0_71 = arith.constant 0 : index
      %c0_72 = arith.constant 0 : index
      %124 = vector.load %arg28[%c0_71, %c0_72] : memref<1x128xf32, #tpu.memory_space<vmem>>, vector<1x128xf32>
      %125 = vector.broadcast %124 : vector<1x128xf32> to vector<8x128xf32>
      %126 = arith.addf %123, %125 : vector<8x128xf32>
      %cst_73 = arith.constant 0.000000e+00 : f32
      %127 = vector.broadcast %cst_73 : f32 to vector<8x128xf32>
      %128 = arith.maximumf %126, %127 : vector<8x128xf32>
      %c0_74 = arith.constant 0 : index
      %c0_75 = arith.constant 0 : index
      %129 = vector.load %arg29[%c0_74, %c0_75] : memref<128x128xf32, #tpu.memory_space<vmem>>, vector<128x128xf32>
      %cst_76 = arith.constant dense<0.000000e+00> : vector<8x128xf32>
      %130 = tpu.matmul %128, %129, %cst_76 {dimension_numbers = #tpu.dot_dimension_numbers<[1], [0], [0], [1], [0, 0, 1, 1], [], []>} : vector<8x128xf32>, vector<128x128xf32>, vector<8x128xf32> -> vector<8x128xf32>
      %c0_77 = arith.constant 0 : index
      %c0_78 = arith.constant 0 : index
      %131 = vector.load %arg30[%c0_77, %c0_78] : memref<1x128xf32, #tpu.memory_space<vmem>>, vector<1x128xf32>
      %132 = vector.broadcast %131 : vector<1x128xf32> to vector<8x128xf32>
      %133 = arith.addf %130, %132 : vector<8x128xf32>
      %134 = tpu.iota {dimensions = array<i32: 1>} : vector<8x128xi32>
      %cst_79 = arith.constant 2.000000e-01 : f32
      %135 = vector.broadcast %cst_79 : f32 to vector<8x128xf32>
      %136 = arith.mulf %133, %135 : vector<8x128xf32>
      %137 = math.tanh %136 : vector<8x128xf32>
      %cst_80 = arith.constant 5.000000e+00 : f32
      %138 = vector.broadcast %cst_80 : f32 to vector<8x128xf32>
      %139 = arith.mulf %138, %137 : vector<8x128xf32>
      %cst_81 = arith.constant 1.000000e+00 : f32
      %140 = vector.broadcast %cst_81 : f32 to vector<8x128xf32>
      %141 = arith.addf %133, %140 : vector<8x128xf32>
      %cst_82 = arith.constant 0.000000e+00 : f32
      %142 = vector.broadcast %cst_82 : f32 to vector<8x128xf32>
      %143 = arith.maximumf %141, %142 : vector<8x128xf32>
      %144 = math.absf %141 : vector<8x128xf32>
      %cst_83 = arith.constant 0.000000e+00 : f32
      %145 = vector.broadcast %cst_83 : f32 to vector<8x128xf32>
      %146 = arith.subf %145, %144 : vector<8x128xf32>
      %147 = math.exp %146 : vector<8x128xf32>
      %cst_84 = arith.constant 1.000000e+00 : f32
      %148 = vector.broadcast %cst_84 : f32 to vector<8x128xf32>
      %149 = arith.addf %148, %147 : vector<8x128xf32>
      %150 = math.log %149 : vector<8x128xf32>
      %151 = arith.addf %143, %150 : vector<8x128xf32>
      %cst_85 = arith.constant 1.000000e-01 : f32
      %152 = vector.broadcast %cst_85 : f32 to vector<8x128xf32>
      %153 = arith.addf %151, %152 : vector<8x128xf32>
      %c4_i32 = arith.constant 4 : i32
      %154 = vector.broadcast %c4_i32 : i32 to vector<8x128xi32>
      %155 = arith.cmpi slt, %134, %154 : vector<8x128xi32>
      %156 = arith.select %155, %139, %153 : vector<8x128xi1>, vector<8x128xf32>
      %c0_86 = arith.constant 0 : index
      %c0_87 = arith.constant 0 : index
      %157 = vector.load %arg32[%c0_86, %c0_87] : memref<8x128xf32, #tpu.memory_space<vmem>>, vector<8x128xf32>
      tpu.vector_store %arg32[%c0_86, %c0_87], %156 {strides = array<i32>} : memref<8x128xf32, #tpu.memory_space<vmem>>, vector<8x128xf32>,
    } else {
    }
    return
  }
  func.func @transform_0(%arg0: i32, %arg1: i32) -> (i32, i32) {
    %c1_i32 = arith.constant 1 : i32
    %0 = arith.subi %c1_i32, %arg0 : i32
    %1 = arith.muli %0, %arg1 : i32
    %c0_i32 = arith.constant 0 : i32
    %c0_i32_0 = arith.constant 0 : i32
    return %1, %c0_i32 : i32, i32
  }
  func.func @transform_1(%arg0: i32, %arg1: i32) -> (i32, i32) {
    %c0_i32 = arith.constant 0 : i32
    %c0_i32_0 = arith.constant 0 : i32
    %c0_i32_1 = arith.constant 0 : i32
    return %c0_i32, %c0_i32_0 : i32, i32
  }
  func.func @transform_2(%arg0: i32, %arg1: i32) -> (i32, i32) {
    %c0_i32 = arith.constant 0 : i32
    %c0_i32_0 = arith.constant 0 : i32
    %c0_i32_1 = arith.constant 0 : i32
    return %c0_i32, %c0_i32_0 : i32, i32
  }
  func.func @transform_3(%arg0: i32, %arg1: i32) -> (i32, i32) {
    %c0_i32 = arith.constant 0 : i32
    %c0_i32_0 = arith.constant 0 : i32
    %c0_i32_1 = arith.constant 0 : i32
    return %c0_i32, %c0_i32_0 : i32, i32
  }
  func.func @transform_4(%arg0: i32, %arg1: i32) -> (i32, i32) {
    %c0_i32 = arith.constant 0 : i32
    %c0_i32_0 = arith.constant 0 : i32
    %c0_i32_1 = arith.constant 0 : i32
    return %c0_i32, %c0_i32_0 : i32, i32
  }
  func.func @transform_5(%arg0: i32, %arg1: i32) -> (i32, i32) {
    %c0_i32 = arith.constant 0 : i32
    %c0_i32_0 = arith.constant 0 : i32
    %c0_i32_1 = arith.constant 0 : i32
    return %c0_i32, %c0_i32_0 : i32, i32
  }
  func.func @transform_6(%arg0: i32, %arg1: i32) -> (i32, i32) {
    %c0_i32 = arith.constant 0 : i32
    %c0_i32_0 = arith.constant 0 : i32
    %c0_i32_1 = arith.constant 0 : i32
    return %c0_i32, %c0_i32_0 : i32, i32
  }
  func.func @transform_7(%arg0: i32, %arg1: i32) -> (i32, i32) {
    %c0_i32 = arith.constant 0 : i32
    %c0_i32_0 = arith.constant 0 : i32
    %c0_i32_1 = arith.constant 0 : i32
    return %c0_i32, %c0_i32_0 : i32, i32
  }
  func.func @transform_8(%arg0: i32, %arg1: i32) -> (i32, i32) {
    %c0_i32 = arith.constant 0 : i32
    %c0_i32_0 = arith.constant 0 : i32
    %c0_i32_1 = arith.constant 0 : i32
    return %c0_i32, %c0_i32_0 : i32, i32
  }
  func.func @transform_9(%arg0: i32, %arg1: i32) -> (i32, i32) {
    %c0_i32 = arith.constant 0 : i32
    %c0_i32_0 = arith.constant 0 : i32
    %c0_i32_1 = arith.constant 0 : i32
    return %c0_i32, %c0_i32_0 : i32, i32
  }
  func.func @transform_10(%arg0: i32, %arg1: i32) -> (i32, i32) {
    %c0_i32 = arith.constant 0 : i32
    %c0_i32_0 = arith.constant 0 : i32
    %c0_i32_1 = arith.constant 0 : i32
    return %c0_i32, %c0_i32_0 : i32, i32
  }
  func.func @transform_11(%arg0: i32, %arg1: i32) -> (i32, i32) {
    %c0_i32 = arith.constant 0 : i32
    %c0_i32_0 = arith.constant 0 : i32
    %c0_i32_1 = arith.constant 0 : i32
    return %c0_i32, %c0_i32_0 : i32, i32
  }
  func.func @transform_12(%arg0: i32, %arg1: i32) -> (i32, i32) {
    %c0_i32 = arith.constant 0 : i32
    %c0_i32_0 = arith.constant 0 : i32
    %c0_i32_1 = arith.constant 0 : i32
    return %c0_i32, %c0_i32_0 : i32, i32
  }
  func.func @transform_13(%arg0: i32, %arg1: i32) -> (i32, i32) {
    %c0_i32 = arith.constant 0 : i32
    %c0_i32_0 = arith.constant 0 : i32
    %c0_i32_1 = arith.constant 0 : i32
    return %c0_i32, %c0_i32_0 : i32, i32
  }
  func.func @transform_14(%arg0: i32, %arg1: i32) -> (i32, i32) {
    %c0_i32 = arith.constant 0 : i32
    %c0_i32_0 = arith.constant 0 : i32
    %c0_i32_1 = arith.constant 0 : i32
    return %c0_i32, %c0_i32_0 : i32, i32
  }
  func.func @transform_15(%arg0: i32, %arg1: i32) -> (i32, i32) {
    %c0_i32 = arith.constant 0 : i32
    %c0_i32_0 = arith.constant 0 : i32
    %c0_i32_1 = arith.constant 0 : i32
    return %c0_i32, %c0_i32_0 : i32, i32
  }
  func.func @transform_16(%arg0: i32, %arg1: i32) -> (i32, i32) {
    %c0_i32 = arith.constant 0 : i32
    %c0_i32_0 = arith.constant 0 : i32
    %c0_i32_1 = arith.constant 0 : i32
    return %c0_i32, %c0_i32_0 : i32, i32
  }
  func.func @transform_17(%arg0: i32, %arg1: i32) -> (i32, i32, i32) {
    %c0_i32 = arith.constant 0 : i32
    %c0_i32_0 = arith.constant 0 : i32
    %c0_i32_1 = arith.constant 0 : i32
    %c0_i32_2 = arith.constant 0 : i32
    return %c0_i32, %c0_i32_0, %c0_i32_1 : i32, i32, i32
  }
  func.func @transform_18(%arg0: i32, %arg1: i32) -> (i32, i32, i32) {
    %c0_i32 = arith.constant 0 : i32
    %c0_i32_0 = arith.constant 0 : i32
    %c0_i32_1 = arith.constant 0 : i32
    %c0_i32_2 = arith.constant 0 : i32
    return %c0_i32, %c0_i32_0, %c0_i32_1 : i32, i32, i32
  }
  func.func @transform_19(%arg0: i32, %arg1: i32) -> (i32, i32, i32) {
    %c0_i32 = arith.constant 0 : i32
    %c0_i32_0 = arith.constant 0 : i32
    %c0_i32_1 = arith.constant 0 : i32
    %c0_i32_2 = arith.constant 0 : i32
    return %c0_i32, %c0_i32_0, %c0_i32_1 : i32, i32, i32
  }
  func.func @transform_20(%arg0: i32, %arg1: i32) -> (i32, i32, i32) {
    %c0_i32 = arith.constant 0 : i32
    %c0_i32_0 = arith.constant 0 : i32
    %c0_i32_1 = arith.constant 0 : i32
    %c0_i32_2 = arith.constant 0 : i32
    return %c0_i32, %c0_i32_0, %c0_i32_1 : i32, i32, i32
  }
  func.func @transform_21(%arg0: i32, %arg1: i32) -> (i32, i32, i32) {
    %c0_i32 = arith.constant 0 : i32
    %c0_i32_0 = arith.constant 0 : i32
    %c0_i32_1 = arith.constant 0 : i32
    %c0_i32_2 = arith.constant 0 : i32
    return %c0_i32, %c0_i32_0, %c0_i32_1 : i32, i32, i32
  }
  func.func @transform_22(%arg0: i32, %arg1: i32) -> (i32, i32, i32) {
    %c0_i32 = arith.constant 0 : i32
    %c0_i32_0 = arith.constant 0 : i32
    %c0_i32_1 = arith.constant 0 : i32
    %c0_i32_2 = arith.constant 0 : i32
    return %c0_i32, %c0_i32_0, %c0_i32_1 : i32, i32, i32
  }
  func.func @transform_23(%arg0: i32, %arg1: i32) -> (i32, i32) {
    %c0_i32 = arith.constant 0 : i32
    %c0_i32_0 = arith.constant 0 : i32
    %c0_i32_1 = arith.constant 0 : i32
    return %c0_i32, %c0_i32_0 : i32, i32
  }
  func.func @transform_24(%arg0: i32, %arg1: i32) -> (i32, i32) {
    %c0_i32 = arith.constant 0 : i32
    %c0_i32_0 = arith.constant 0 : i32
    %c0_i32_1 = arith.constant 0 : i32
    return %c0_i32, %c0_i32_0 : i32, i32
  }
  func.func @transform_25(%arg0: i32, %arg1: i32) -> (i32, i32) {
    %c0_i32 = arith.constant 0 : i32
    %c0_i32_0 = arith.constant 0 : i32
    %c0_i32_1 = arith.constant 0 : i32
    return %c0_i32, %c0_i32_0 : i32, i32
  }
  func.func @transform_26(%arg0: i32, %arg1: i32) -> (i32, i32) {
    %c0_i32 = arith.constant 0 : i32
    %c0_i32_0 = arith.constant 0 : i32
    %c0_i32_1 = arith.constant 0 : i32
    return %c0_i32, %c0_i32_0 : i32, i32
  }
  func.func @transform_27(%arg0: i32, %arg1: i32) -> (i32, i32) {
    %c0_i32 = arith.constant 0 : i32
    %c0_i32_0 = arith.constant 0 : i32
    %c0_i32_1 = arith.constant 0 : i32
    return %c0_i32, %c0_i32_0 : i32, i32
  }
  func.func @transform_28(%arg0: i32, %arg1: i32) -> (i32, i32) {
    %c0_i32 = arith.constant 0 : i32
    %c0_i32_0 = arith.constant 0 : i32
    %c0_i32_1 = arith.constant 0 : i32
    return %c0_i32, %c0_i32_0 : i32, i32
  }
  func.func @transform_29(%arg0: i32, %arg1: i32) -> (i32, i32, i32) {
    %c0_i32 = arith.constant 0 : i32
    %c0_i32_0 = arith.constant 0 : i32
    %c0_i32_1 = arith.constant 0 : i32
    return %c0_i32, %arg1, %c0_i32_0 : i32, i32, i32
  }
  func.func @transform_30(%arg0: i32, %arg1: i32) -> (i32, i32) {
    %c0_i32 = arith.constant 0 : i32
    %c0_i32_0 = arith.constant 0 : i32
    return %arg1, %c0_i32 : i32, i32
  }
}

</mosaic_0001>

<bundles_post_ra>
// kernel: tpu_custom_call.1
= control target key start
LH: loop header
LB: loop body
LE: loop exit
PB: predicated region body
PF: predicated region fallthrough
CT: control target
= control target key end

     0   :  { %s4219_s6 = smov 1   ;;  %s4220_s10 = smov 2   ;;  %s5062_s0 = inlined_call_operand.smem [shape: u32[31], index: -1, kind: input, shape index: {}] }
   0x1   :  { %s4282_s5 = sld [smem:[%s5062_s0]]   ;;  %s4221_s14 = smov 3  }
   0x2   :  { %s4287_s9 = sld [smem:[%s5062_s0 + %s4219_s6]]   ;;  %s4222_s18 = smov 4  }
   0x3   :  { %s4292_s13 = sld [smem:[%s5062_s0 + %s4220_s10]]   ;;  %s4223_s22 = smov 5  }
   0x4   :  { %s4297_s17 = sld [smem:[%s5062_s0 + %s4221_s14]]   ;;  %s4224_s26 = smov 6  }
   0x5   :  { %s4302_s21 = sld [smem:[%s5062_s0 + %s4222_s18]]   ;;  %s4225_s30 = smov 7  }
   0x6   :  { %s4307_s25 = sld [smem:[%s5062_s0 + %s4223_s22]]   ;;  %s4226_s4 = smov 8  }
   0x7   :  { %5092 = sst [smem:[#allocation36_spill]] %s4282_s5  ;;  %s4227_s10 = smov 9  }
   0x8   :  { %5093 = sst [smem:[#allocation37_spill]] %s4287_s9  ;;  %s4228_s15 = smov 10  }
   0x9   :  { %5094 = sst [smem:[#allocation38_spill]] %s4292_s13  ;;  %s4229_s20 = smov 11  }
   0xa   :  { %5095 = sst [smem:[#allocation39_spill]] %s4297_s17  ;;  %s4231_s1 = smov 13  }
   0xb   :  { %5096 = sst [smem:[#allocation40_spill]] %s4302_s21  ;;  %s4232_s7 = smov 14  }
   0xc   :  { %5097 = sst [smem:[#allocation41_spill]] %s4307_s25  ;;  %s4234_s22 = smov 16  }
   0xd   :  { %s4312_s29 = sld [smem:[%s5062_s0 + %s4224_s26]]   ;;  %s4230_s26 = smov 12  }
   0xe   :  { %s4317_s3 = sld [smem:[%s5062_s0 + %s4225_s30]]   ;;  %s4235_s28 = smov 17  }
   0xf   :  { %s4322_s8 = sld [smem:[%s5062_s0 + %s4226_s4]]  }
  0x10   :  { %s4327_s14 = sld [smem:[%s5062_s0 + %s4227_s10]]  }
  0x11   :  { %s4332_s19 = sld [smem:[%s5062_s0 + %s4228_s15]]   ;;  %s4233_s15 = smov 15  }
  0x12   :  { %s4337_s24 = sld [smem:[%s5062_s0 + %s4229_s20]]  }
  0x13   :  { %5098 = sst [smem:[#allocation42_spill]] %s4312_s29 }
  0x14   :  { %5099 = sst [smem:[#allocation43_spill]] %s4317_s3 }
  0x15   :  { %5100 = sst [smem:[#allocation44_spill]] %s4322_s8 }
  0x16   :  { %5101 = sst [smem:[#allocation45_spill]] %s4327_s14 }
  0x17   :  { %5102 = sst [smem:[#allocation46_spill]] %s4332_s19 }
  0x18   :  { %5103 = sst [smem:[#allocation47_spill]] %s4337_s24 }
  0x19   :  { %s4342_s30 = sld [smem:[%s5062_s0 + %s4230_s26]]  }
  0x1a   :  { %s4347_s6 = sld [smem:[%s5062_s0 + %s4231_s1]]  }
  0x1b   :  { %s4352_s12 = sld [smem:[%s5062_s0 + %s4232_s7]]   ;;  %s4236_s7 = smov 18  }
  0x1c   :  { %s4357_s20 = sld [smem:[%s5062_s0 + %s4233_s15]]   ;;  %s4237_s15 = smov 19  }
  0x1d   :  { %s4362_s27 = sld [smem:[%s5062_s0 + %s4234_s22]]   ;;  %s4238_s22 = smov 20  }
  0x1e   :  { %s4367_s4 = sld [smem:[%s5062_s0 + %s4235_s28]]   ;;  %s4239_s28 = smov 21  }
  0x1f   :  { %5104 = sst [smem:[#allocation48_spill]] %s4342_s30 }
  0x20   :  { %5105 = sst [smem:[#allocation49_spill]] %s4347_s6 }
  0x21   :  { %5106 = sst [smem:[#allocation50_spill]] %s4352_s12 }
  0x22   :  { %5107 = sst [smem:[#allocation51_spill]] %s4357_s20 }
  0x23   :  { %5108 = sst [smem:[#allocation52_spill]] %s4362_s27 }
  0x24   :  { %5109 = sst [smem:[#allocation53_spill]] %s4367_s4 }
  0x25   :  { %s4372_s8 = sld [smem:[%s5062_s0 + %s4236_s7]]   ;;  %s4240_s7 = smov 22  }
  0x26   :  { %s4377_s20 = sld [smem:[%s5062_s0 + %s4237_s15]]   ;;  %s4241_s15 = smov 23  }
  0x27   :  { %s4382_s27 = sld [smem:[%s5062_s0 + %s4238_s22]]   ;;  %s4242_s22 = smov 24  }
  0x28   :  { %s4387_s3 = sld [smem:[%s5062_s0 + %s4239_s28]]   ;;  %s4243_s28 = smov 25  }
  0x29   :  { %s4407_s12 = sld [smem:[%s5062_s0 + %s4243_s28]]   ;;  %s4247_s28 = smov 29  }
  0x2b   :  { %5110 = sst [smem:[#allocation54_spill]] %s4372_s8 }
  0x2c   :  { %5111 = sst [smem:[#allocation55_spill]] %s4377_s20 }
  0x2d   :  { %5112 = sst [smem:[#allocation56_spill]] %s4382_s27 }
  0x2e   :  { %5113 = sst [smem:[#allocation57_spill]] %s4387_s3 }
  0x2f   :  { %s4392_s8 = sld [smem:[%s5062_s0 + %s4240_s7]]   ;;  %s4244_s7 = smov 26  }
  0x30   :  { %s4397_s20 = sld [smem:[%s5062_s0 + %s4241_s15]]   ;;  %s4245_s15 = smov 27  }
  0x31   :  { %s4402_s27 = sld [smem:[%s5062_s0 + %s4242_s22]]   ;;  %s4246_s22 = smov 28  }
  0x32   :  { %5117 = sst [smem:[#allocation61_spill]] %s4407_s12 }
  0x33   :  { %s4417_s29 = sld [smem:[%s5062_s0 + %s4245_s15]]  }
  0x34   :  { %s4427_s12 = sld [smem:[%s5062_s0 + %s4247_s28]]  }
  0x35   :  { %5114 = sst [smem:[#allocation58_spill]] %s4392_s8 }
  0x36   :  { %5115 = sst [smem:[#allocation59_spill]] %s4397_s20 }
  0x37   :  { %5116 = sst [smem:[#allocation60_spill]] %s4402_s27 }
  0x38   :  { %s4412_s8 = sld [smem:[%s5062_s0 + %s4244_s7]]   ;;  %s4248_s7 = smov 30  }
  0x39   :  { %5119 = sst [smem:[#allocation63_spill]] %s4417_s29 }
  0x3a   :  { %s4422_s27 = sld [smem:[%s5062_s0 + %s4246_s22]]  }
  0x3b   :  { %5121 = sst [smem:[#allocation65_spill]] %s4427_s12 }
  0x3e   :  { %5118 = sst [smem:[#allocation62_spill]] %s4412_s8 }
  0x3f   :  { %s4432_s8 = sld [smem:[%s5062_s0 + %s4248_s7]]  }
  0x40   :  { %5120 = sst [smem:[#allocation64_spill]] %s4422_s27 }
  0x45   :  { %5122 = sst [smem:[#allocation66_spill]] %s4432_s8 }
  0x46   :  { %67 = vsyncpa [#allocation9], 0 }
  0x47   :  { %69 = vsyncpa [#allocation9 + $0x1], 0 }
  0x48   :  { %70 = vsyncpa [#allocation12], 0 }
  0x49   :  { %71 = vsyncpa [#allocation15], 0 }
  0x4a   :  { %72 = vsyncpa [#allocation18], 0 }
  0x4b   :  { %73 = vsyncpa [#allocation21], 0 }
  0x4c   :  { %74 = vsyncpa [#allocation24], 0 }
  0x4d   :  { %75 = vsyncpa [#allocation10], 0 }
  0x4e   :  { %77 = vsyncpa [#allocation10 + $0x1], 0 }
  0x4f   :  { %78 = vsyncpa [#allocation27], 0 }
  0x50   :  { %80 = vsyncpa [#allocation27 + $0x1], 0  ;;  %s4434_s15 = smov 0   ;;  %s4436_s16 = smov 0  }
  0x51   :  { %s4438_s18 = smov 0   ;;  %s4440_s22 = smov 0  }
  0x52   :  { %s4442_s0 = smov 0   ;;  %s4444_s23 = smov 0  }
  0x53   :  { %s4446_s26 = smov 0   ;;  %s4448_s28 = smov 0  }
  0x54   :  { %s4450_s1 = smov 0   ;;  %s4452_s2 = smov 0  }
  0x55   :  { %s4454_s7 = smov 0  }
  0x56 LB: > { %s5123_s29 = sld [smem:[#allocation63_spill]]  ;;  %s5125_s5 = sld [smem:[#allocation36_spill]]  ;;  %s4213_s2 = sphi %s4452_s2, %s5187_s2   ;;  %s4209_s1 = sphi %s4450_s1, %s5186_s1   ;;  %s4205_s28 = sphi %s4448_s28, %s5185_s28   ;;  %s4201_s26 = sphi %s4446_s26, %s5184_s26   ;;  %s4197_s23 = sphi %s4444_s23, %s5183_s23   ;;  %s4193_s0 = sphi %s4442_s0, %s5182_s0   ;;  %s4189_s22 = sphi %s4440_s22, %s5181_s22   ;;  %s4185_s18 = sphi %s4438_s18, %s5180_s18   ;;  %s4181_s16 = sphi %s4436_s16, %s5179_s16   ;;  %s4177_s15 = sphi %s4434_s15, %s5178_s15   ;;  %s4217_s7 = sphi %s4454_s7, %s86_s7  }
  0x57   : > { %s5124_s24 = sld [smem:[#allocation47_spill]]  ;;  %s5126_s20 = sld [smem:[#allocation59_spill]] }
  0x58   : > { %s5127_s17 = sld [smem:[#allocation39_spill]]  ;;  %s5128_s6 = sld [smem:[#allocation49_spill]] }
  0x59   : > { %s5129_s4 = sld [smem:[#allocation53_spill]]  ;;  %s5130_s3 = sld [smem:[#allocation57_spill]] }
  0x5a   : > { %s5131_s25 = sld [smem:[#allocation41_spill]]  ;;  %s5132_s13 = sld [smem:[#allocation38_spill]] }
  0x5b   : > { %5133 = sst [smem:[#allocation67_spill]] %s4205_s28  ;;  %s5069_s10 = sadd.s32 4294967295, %s4217_s7  }
  0x5c   : > { %p2673_p0 = scmp.ge.s32.totalorder %s4217_s7, 1  ;;  %p4493_p1 = scmp.eq.s32.totalorder %s5069_s10, 0 }
  0x5d   : > { %p773_p2 = scmp.lt.s32.totalorder %s4217_s7, 5  ;;  %s4249_s12 = smov [#allocation11]  }
  0x5e   : > { %s5134_s11 = scalar_select %p4493_p1, 1, 0 }
  0x5f   : > { %p4498_p3 = pnand %p2673_p0, %p773_p2  ;;  %s789_s27 = sshll.u32 %s4249_s12, 4  ;;  %s790_s27 = int_to_ptr.vmem [resolvable:$true] %s789_s27 }
  0x60   : > { %s4250_s10 = smov [#allocation14]   ;;  %s4251_s19 = smov [#allocation17]  }
  0x61   : > { %s5135_s8 = scalar_select %p4498_p3, 1, 0 }
  0x62   : > { %p3544_p4 = pneg %p4498_p3  ;;  %s815_s21 = sshll.u32 %s4250_s10, 4  ;;  %s4510_s21 = int_to_ptr.vmem [resolvable:$true] %s815_s21 }
  0x63   : > { %s4512_s14 = sshll.u32 %s4251_s19, 4  ;;  %s3761_s9 = scalar_lea.hbm %s5132_s13, 16  ;;  %s860_s14 = int_to_ptr.vmem [resolvable:$true] %s4512_s14 }
  0x64   : > { %p4506_p5 = pnand %p3544_p4, %p4493_p1  ;;  %p3762_p6 = scmp.ne.s32.totalorder %s5132_s13, %s3761_s9 }
  0x65   : > { %p3768_p10 = scmp.lt.u32.totalorder %s3761_s9, %s5132_s13 }
  0x66   : > { %p4518_p7 = pneg %p4506_p5 }
  0x68   : > { %p3764_p8 = pnand %p4518_p7, %p3762_p6 }
  0x6a   : > { %p3765_p9 = pneg %p3764_p8 }
  0x6c   : > { %p3770_p11 = pnand %p3768_p10, %p3765_p9 }
  0x6e   : > { %3773 = shalt.err (!%p3770_p11)
}
  0x6f   : > { %s3774_s10 = scalar_lea.vmem %s790_s27, 16  ;;  %s3781_s19 = scalar_lea.vmem %s790_s27, 32 }
  0x70   : > { %p3775_p12 = scmp.ne.s32.totalorder %s790_s27, %s3774_s10  ;;  %p3782_p2 = scmp.lt.s32.totalorder %s790_s27, %s790_s27 }
  0x71   : > { %p3783_p4 = scmp.lt.s32.totalorder %s3781_s19, %s3774_s10 }
  0x72   : > { %p3777_p13 = pnand %p3775_p12, %p4518_p7 }
  0x73   : > { %p3784_p3 = por %p3783_p4, %p3782_p2 }
  0x74   : > { %p3778_p0 = pneg %p3777_p13 }
  0x76   : > { %p3785_p1 = pnand %p3784_p3, %p3778_p0 }
  0x78   : > { %3788 = shalt.err (!%p3785_p1)
}
  0x79   : > { %3547 = dma.hbm_to_vmem [thread:$0]  (!%p4506_p5), %s5132_s13, 16, %s790_s27, [#allocation12]  }
  0x7a   : > { %s3789_s9 = scalar_lea.hbm %s5131_s25, 2048 }
  0x7b   : > { %p3790_p6 = scmp.ne.s32.totalorder %s5131_s25, %s3789_s9  ;;  %p3796_p10 = scmp.lt.u32.totalorder %s3789_s9, %s5131_s25 }
  0x7d   : > { %p3792_p8 = pnand %p3790_p6, %p4518_p7 }
  0x7f   : > { %p3793_p9 = pneg %p3792_p8 }
  0x81   : > { %p3798_p11 = pnand %p3796_p10, %p3793_p9 }
  0x83   : > { %3801 = shalt.err (!%p3798_p11)
}
  0x84   : > { %s3802_s10 = scalar_lea.vmem %s4510_s21, 2048  ;;  %p3810_p13 = scmp.lt.s32.totalorder %s4510_s21, %s4510_s21 }
  0x85   : > { %p3803_p1 = scmp.ne.s32.totalorder %s4510_s21, %s3802_s10  ;;  %p3811_p0 = scmp.lt.s32.totalorder %s3802_s10, %s3802_s10 }
  0x87   : > { %p3805_p3 = pnand %p3803_p1, %p4518_p7  ;;  %p3812_p2 = por %p3811_p0, %p3810_p13 }
  0x89   : > { %p3806_p12 = pneg %p3805_p3 }
  0x8b   : > { %p3813_p4 = pnand %p3812_p2, %p3806_p12 }
  0x8d   : > { %3816 = shalt.err (!%p3813_p4)
}
  0x8e   : > { %s4252_s27 = smov 128   ;;  %s4253_s19 = smov 8  }
  0x8f   : > { %3553 = dma.hbm_to_vmem [thread:$0]  (!%p4506_p5), %s5131_s25, 2048, %s4510_s21, [#allocation15], %s4252_s27, %s4252_s27, %s4253_s19  }
  0x90   : > { %s3817_s9 = scalar_lea.hbm %s5128_s6, 2048 }
  0x91   : > { %p3818_p6 = scmp.ne.s32.totalorder %s5128_s6, %s3817_s9  ;;  %p3824_p10 = scmp.lt.u32.totalorder %s3817_s9, %s5128_s6 }
  0x93   : > { %p3820_p8 = pnand %p3818_p6, %p4518_p7 }
  0x95   : > { %p3821_p9 = pneg %p3820_p8 }
  0x97   : > { %p3826_p11 = pnand %p3824_p10, %p3821_p9 }
  0x99   : > { %3829 = shalt.err (!%p3826_p11)
}
  0x9a   : > { %s3830_s10 = scalar_lea.vmem %s860_s14, 2048  ;;  %p3838_p13 = scmp.lt.s32.totalorder %s860_s14, %s860_s14 }
  0x9b   : > { %p3831_p1 = scmp.ne.s32.totalorder %s860_s14, %s3830_s10  ;;  %p3839_p0 = scmp.lt.s32.totalorder %s3830_s10, %s3830_s10 }
  0x9d   : > { %p3833_p3 = pnand %p3831_p1, %p4518_p7  ;;  %p3840_p2 = por %p3839_p0, %p3838_p13 }
  0x9f   : > { %p3834_p12 = pneg %p3833_p3 }
  0xa1   : > { %p3841_p4 = pnand %p3840_p2, %p3834_p12 }
  0xa3   : > { %3844 = shalt.err (!%p3841_p4)
}
  0xa4   : > { %3559 = dma.hbm_to_vmem [thread:$0]  (!%p4506_p5), %s5128_s6, 2048, %s860_s14, [#allocation18], %s4252_s27, %s4252_s27, %s4253_s19  }
  0xa5   : > { %s4254_s21 = smov [#allocation20]   ;;  %s4255_s13 = smov [#allocation13]  }
  0xa6   : > { %s903_s9 = sshll.u32 %s4254_s21, 4  ;;  %s799_s25 = sshll.u32 %s4255_s13, 4  ;;  %s904_s9 = int_to_ptr.vmem [resolvable:$true] %s903_s9  ;;  %s800_s25 = int_to_ptr.vmem [resolvable:$true] %s799_s25 }
  0xa7   : > { %s3845_s10 = scalar_lea.hbm %s5130_s3, 4096 }
  0xa8   : > { %p3846_p6 = scmp.ne.s32.totalorder %s5130_s3, %s3845_s10  ;;  %p3852_p10 = scmp.lt.u32.totalorder %s3845_s10, %s5130_s3 }
  0xaa   : > { %p3848_p8 = pnand %p3846_p6, %p4518_p7 }
  0xac   : > { %p3849_p9 = pneg %p3848_p8 }
  0xae   : > { %p3854_p11 = pnand %p3852_p10, %p3849_p9 }
  0xb0   : > { %3857 = shalt.err (!%p3854_p11)
}
  0xb1   : > { %s3858_s28 = scalar_lea.vmem %s904_s9, 4096  ;;  %p3866_p13 = scmp.lt.s32.totalorder %s904_s9, %s904_s9 }
  0xb2   : > { %p3859_p1 = scmp.ne.s32.totalorder %s904_s9, %s3858_s28  ;;  %p3867_p0 = scmp.lt.s32.totalorder %s3858_s28, %s3858_s28 }
  0xb4   : > { %p3861_p3 = pnand %p3859_p1, %p4518_p7  ;;  %p3868_p2 = por %p3867_p0, %p3866_p13 }
  0xb6   : > { %p3862_p12 = pneg %p3861_p3 }
  0xb8   : > { %p3869_p4 = pnand %p3868_p2, %p3862_p12 }
  0xba   : > { %3872 = shalt.err (!%p3869_p4)
}
  0xbb   : > { %3565 = dma.hbm_to_vmem [thread:$0]  (!%p4506_p5), %s5130_s3, 4096, %s904_s9, [#allocation21], %s4252_s27, %s4252_s27, %s4253_s19  }
  0xbc   : > { %s3873_s13 = scalar_lea.hbm %s5127_s17, 2048 }
  0xbd   : > { %p3874_p6 = scmp.ne.s32.totalorder %s5127_s17, %s3873_s13  ;;  %p3880_p10 = scmp.lt.u32.totalorder %s3873_s13, %s5127_s17 }
  0xbf   : > { %p3876_p8 = pnand %p3874_p6, %p4518_p7 }
  0xc1   : > { %p3877_p9 = pneg %p3876_p8 }
  0xc3   : > { %p3882_p11 = pnand %p3880_p10, %p3877_p9 }
  0xc5   : > { %3885 = shalt.err (!%p3882_p11)
}
  0xc6   : > { %s3886_s14 = scalar_lea.vmem %s800_s25, 2048  ;;  %p3894_p13 = scmp.lt.s32.totalorder %s800_s25, %s800_s25 }
  0xc7   : > { %p3887_p1 = scmp.ne.s32.totalorder %s800_s25, %s3886_s14  ;;  %p3895_p0 = scmp.lt.s32.totalorder %s3886_s14, %s3886_s14 }
  0xc9   : > { %p3889_p3 = pnand %p3887_p1, %p4518_p7  ;;  %p3896_p2 = por %p3895_p0, %p3894_p13 }
  0xcb   : > { %p3890_p12 = pneg %p3889_p3 }
  0xcd   : > { %p3897_p4 = pnand %p3896_p2, %p3890_p12 }
  0xcf   : > { %3900 = shalt.err (!%p3897_p4)
}
  0xd0   : > { %3550 = dma.hbm_to_vmem [thread:$0]  (!%p4506_p5), %s5127_s17, 2048, %s800_s25, [#allocation12], %s4252_s27, %s4252_s27, %s4253_s19  }
  0xd1   : > { %s4256_s28 = smov [#allocation16]   ;;  %s4257_s9 = smov [#allocation19]  }
  0xd2   : > { %s843_s21 = sshll.u32 %s4256_s28, 4  ;;  %s881_s10 = sshll.u32 %s4257_s9, 4  ;;  %s844_s21 = int_to_ptr.vmem [resolvable:$true] %s843_s21  ;;  %s882_s10 = int_to_ptr.vmem [resolvable:$true] %s881_s10 }
  0xd3   : > { %s3901_s13 = scalar_lea.hbm %s5124_s24, 2048 }
  0xd4   : > { %p3902_p6 = scmp.ne.s32.totalorder %s5124_s24, %s3901_s13  ;;  %p3908_p10 = scmp.lt.u32.totalorder %s3901_s13, %s5124_s24 }
  0xd6   : > { %p3904_p8 = pnand %p3902_p6, %p4518_p7 }
  0xd8   : > { %p3905_p9 = pneg %p3904_p8 }
  0xda   : > { %p3910_p11 = pnand %p3908_p10, %p3905_p9 }
  0xdc   : > { %3913 = shalt.err (!%p3910_p11)
}
  0xdd   : > { %s3914_s14 = scalar_lea.vmem %s844_s21, 2048  ;;  %p3922_p13 = scmp.lt.s32.totalorder %s844_s21, %s844_s21 }
  0xde   : > { %p3915_p1 = scmp.ne.s32.totalorder %s844_s21, %s3914_s14  ;;  %p3923_p0 = scmp.lt.s32.totalorder %s3914_s14, %s3914_s14 }
  0xe0   : > { %p3917_p3 = pnand %p3915_p1, %p4518_p7  ;;  %p3924_p2 = por %p3923_p0, %p3922_p13 }
  0xe2   : > { %p3918_p12 = pneg %p3917_p3 }
  0xe4   : > { %p3925_p4 = pnand %p3924_p2, %p3918_p12 }
  0xe6   : > { %3928 = shalt.err (!%p3925_p4)
}
  0xe7   : > { %3556 = dma.hbm_to_vmem [thread:$0]  (!%p4506_p5), %s5124_s24, 2048, %s844_s21, [#allocation15], %s4252_s27, %s4252_s27, %s4253_s19  }
  0xe8   : > { %s3929_s25 = scalar_lea.hbm %s5129_s4, 4096 }
  0xe9   : > { %p3930_p6 = scmp.ne.s32.totalorder %s5129_s4, %s3929_s25  ;;  %p3936_p10 = scmp.lt.u32.totalorder %s3929_s25, %s5129_s4 }
  0xeb   : > { %p3932_p8 = pnand %p3930_p6, %p4518_p7 }
  0xed   : > { %p3933_p9 = pneg %p3932_p8 }
  0xef   : > { %p3938_p11 = pnand %p3936_p10, %p3933_p9 }
  0xf1   : > { %3941 = shalt.err (!%p3938_p11)
}
  0xf2   : > { %s3942_s28 = scalar_lea.vmem %s882_s10, 4096  ;;  %p3950_p13 = scmp.lt.s32.totalorder %s882_s10, %s882_s10 }
  0xf3   : > { %p3943_p1 = scmp.ne.s32.totalorder %s882_s10, %s3942_s28  ;;  %p3951_p0 = scmp.lt.s32.totalorder %s3942_s28, %s3942_s28 }
  0xf5   : > { %p3945_p3 = pnand %p3943_p1, %p4518_p7  ;;  %p3952_p2 = por %p3951_p0, %p3950_p13 }
  0xf7   : > { %p3946_p12 = pneg %p3945_p3 }
  0xf9   : > { %p3953_p4 = pnand %p3952_p2, %p3946_p12 }
  0xfb   : > { %3956 = shalt.err (!%p3953_p4)
}
  0xfc   : > { %3562 = dma.hbm_to_vmem [thread:$0]  (!%p4506_p5), %s5129_s4, 4096, %s882_s10, [#allocation18], %s4252_s27, %s4252_s27, %s4253_s19  }
  0xfd   : > { %s4258_s21 = smov [#allocation22]   ;;  %s4259_s13 = smov [#allocation23]  }
  0xfe   : > { %s919_s9 = sshll.u32 %s4258_s21, 4  ;;  %s941_s14 = sshll.u32 %s4259_s13, 4  ;;  %s920_s9 = int_to_ptr.vmem [resolvable:$true] %s919_s9  ;;  %s942_s14 = int_to_ptr.vmem [resolvable:$true] %s941_s14 }
  0xff   : > { %s3957_s25 = scalar_lea.hbm %s5126_s20, 2048 }
 0x100   : > { %p3958_p6 = scmp.ne.s32.totalorder %s5126_s20, %s3957_s25  ;;  %p3964_p10 = scmp.lt.u32.totalorder %s3957_s25, %s5126_s20 }
 0x102   : > { %p3960_p8 = pnand %p3958_p6, %p4518_p7 }
 0x104   : > { %p3961_p9 = pneg %p3960_p8 }
 0x106   : > { %p3966_p11 = pnand %p3964_p10, %p3961_p9 }
 0x108   : > { %3969 = shalt.err (!%p3966_p11)
}
 0x109   : > { %s3970_s28 = scalar_lea.vmem %s920_s9, 2048  ;;  %p3978_p13 = scmp.lt.s32.totalorder %s920_s9, %s920_s9 }
 0x10a   : > { %p3971_p1 = scmp.ne.s32.totalorder %s920_s9, %s3970_s28  ;;  %p3979_p0 = scmp.lt.s32.totalorder %s3970_s28, %s3970_s28 }
 0x10c   : > { %p3973_p3 = pnand %p3971_p1, %p4518_p7  ;;  %p3980_p2 = por %p3979_p0, %p3978_p13 }
 0x10e   : > { %p3974_p12 = pneg %p3973_p3 }
 0x110   : > { %p3981_p4 = pnand %p3980_p2, %p3974_p12 }
 0x112   : > { %3984 = shalt.err (!%p3981_p4)
}
 0x113   : > { %3568 = dma.hbm_to_vmem [thread:$0]  (!%p4506_p5), %s5126_s20, 2048, %s920_s9, [#allocation21], %s4252_s27, %s4252_s27, %s4253_s19  }
 0x114   : > { %s3985_s10 = scalar_lea.hbm %s5123_s29, 2048 }
 0x115   : > { %p3986_p6 = scmp.ne.s32.totalorder %s5123_s29, %s3985_s10  ;;  %p3992_p10 = scmp.lt.u32.totalorder %s3985_s10, %s5123_s29 }
 0x117   : > { %p3988_p8 = pnand %p3986_p6, %p4518_p7 }
 0x119   : > { %p3989_p9 = pneg %p3988_p8 }
 0x11b   : > { %p3994_p11 = pnand %p3992_p10, %p3989_p9 }
 0x11d   : > { %3997 = shalt.err (!%p3994_p11)
}
 0x11e   : > { %s3998_s21 = scalar_lea.vmem %s942_s14, 2048  ;;  %p4006_p13 = scmp.lt.s32.totalorder %s942_s14, %s942_s14 }
 0x11f   : > { %p3999_p1 = scmp.ne.s32.totalorder %s942_s14, %s3998_s21  ;;  %p4007_p0 = scmp.lt.s32.totalorder %s3998_s21, %s3998_s21 }
 0x121   : > { %p4001_p3 = pnand %p3999_p1, %p4518_p7  ;;  %p4008_p2 = por %p4007_p0, %p4006_p13 }
 0x123   : > { %p4002_p12 = pneg %p4001_p3 }
 0x125   : > { %p4009_p4 = pnand %p4008_p2, %p4002_p12 }
 0x127   : > { %4012 = shalt.err (!%p4009_p4)
}
 0x128   : > { %3571 = dma.hbm_to_vmem [thread:$0]  (!%p4506_p5), %s5123_s29, 2048, %s942_s14, [#allocation24], %s4252_s27, %s4252_s27, %s4253_s19  }
 0x129   : > { %s2672_s12 = sadd.s32 4294967294, %s4217_s7   ;;  %s95_s30 = sadd.s32 1, %s4209_s1 }
 0x12a   : > { %s98_s9 = sadd.s32 1, %s4213_s2  ;;  %p96_p7 = scmp.ge.s32.totalorder %s95_s30, 2 }
 0x12b   : > { %s102_s13 = ssub.s32 1, %s4213_s2  ;;  %s109_s28 = sadd.s32 1, %s4197_s23 }
 0x12c   : > { %s4645_s25 = smul.u32 %s4209_s1, %s102_s13  ;;  %s5189_s30 = smov (%p96_p7, %s95_s30), 0 }
 0x12d   : > { %s5191_s9 = smov (!%p96_p7, %s98_s9), %s4213_s2  ;;  %p116_p5 = scmp.ne.s32.totalorder %s4197_s23, %s4193_s0 }
 0x12e   : > { %p117_p6 = scmp.eq.s32.totalorder %s4217_s7, 0  ;;  %p100_p8 = scmp.ge.s32.totalorder %s5191_s9, 2 }
 0x12f   : > { %p122_p9 = scmp.ne.s32.totalorder %s4193_s0, %s4189_s22  ;;  %s720_s19 = ssub.s32 %s4209_s1, %s5189_s30 }
 0x130   : > { %p4656_p10 = por %p117_p6, %p116_p5  ;;  %s5193_s9 = smov (%p100_p8, %s5191_s9), 0 }
 0x131   : > { %5139 = sst [smem:[#allocation68_spill]] %s5193_s9  ;;  %p5140_p11 = scmp.ne.s32.totalorder %s5134_s11, 0 }
 0x132   : > { %p721_p3 = scmp.eq.s32.totalorder %s720_s19, 0  ;;  %s104_s10 = ssub.s32 1, %s5193_s9 }
 0x133   : > { %p4666_p1 = por %p5140_p11, %p122_p9  ;;  %s723_s22 = sadd.s32 1, %s4185_s18 }
 0x134   : > { %s105_s21 = smul.u32 %s104_s10, %s5189_s30  ;;  %p733_p12 = scmp.ne.s32.totalorder %s4185_s18, %s4181_s16 }
 0x135   : > { %s5141_s14 = scalar_select %p4666_p1, 1, 0 }
 0x136   : > { %s4676_s13 = scalar_select %p721_p3, %s4185_s18, %s723_s22  }
 0x137   : > { %s106_s3 = ssub.s32 %s4645_s25, %s105_s21  ;;  %s5142_s4 = sadd.s32 4294967295, %s4217_s7  }
 0x138   : > { %p734_p13 = scmp.eq.s32.totalorder %s5142_s4, 3  ;;  %p107_p0 = scmp.eq.s32.totalorder %s106_s3, 0 }
 0x139   : > { %p739_p2 = scmp.ne.s32.totalorder %s4181_s16, %s4177_s15  ;;  %p740_p7 = scmp.eq.s32.totalorder %s2672_s12, 3 }
 0x13a   : > { %p4683_p4 = por %p734_p13, %p733_p12  ;;  %p3592_p6 = scmp.lt.s32.totalorder %s4217_s7, 4 }
 0x13b   : > { %s4688_s19 = scalar_select %p107_p0, %s4197_s23, %s109_s28  }
 0x13c   : > { %s5143_s6 = scalar_select %p4683_p4, 1, 0 }
 0x13d   : > { %p4690_p5 = por %p740_p7, %p739_p2  ;;  %s958_s10 = sand.u32 1, %s4197_s23  }
 0x13e   : > { %s2685_s22 = sshll.u32 %s4645_s25, 7  ;;  %s2684_s21 = sshll.u32 %s958_s10, 3 }
 0x13f   : > { %s5144_s17 = scalar_select %p4690_p5, 1, 0 }
 0x140   : > { %s4698_s4 = scalar_lea.hbm %s5125_s5, %s2685_s22  ;;  %s962_s3 = scalar_lea.vmem [#allocation8], %s2684_s21 }
 0x141   : > { %s971_s12 = sshll.u32 %s962_s3, 4  ;;  %p4702_p8 = pnand %p3592_p6, %p4656_p10  ;;  %s4706_s12 = int_to_ptr.vmem [resolvable:$true] %s971_s12 }
 0x142   : > { %s959_s20 = scalar_lea.sflag [#allocation9], %s958_s10  ;;  %s4013_s25 = scalar_lea.hbm %s4698_s4, 128 }
 0x143   : > { %p4014_p9 = scmp.ne.s32.totalorder %s4698_s4, %s4013_s25  ;;  %p4015_p11 = pneg %p4702_p8 }
 0x144   : > { %s4018_s22 = scalar_lea.hbm %s5125_s5, 256  ;;  %p4019_p13 = scmp.lt.u32.totalorder %s4698_s4, %s5125_s5 }
 0x145   : > { %p4016_p3 = pnand %p4015_p11, %p4014_p9  ;;  %p4020_p0 = scmp.lt.u32.totalorder %s4018_s22, %s4013_s25 }
 0x146   : > { %p4022_p2 = scmp.lt.u32.totalorder %s4013_s25, %s4698_s4 }
 0x147   : > { %p4017_p12 = pneg %p4016_p3  ;;  %p4021_p10 = por %p4020_p0, %p4019_p13 }
 0x149   : > { %p4023_p7 = por %p4022_p2, %p4021_p10 }
 0x14b   : > { %p4024_p6 = pnand %p4023_p7, %p4017_p12 }
 0x14d   : > { %4027 = shalt.err (!%p4024_p6)
}
 0x14e   : > { %s4028_s27 = scalar_lea.vmem %s4706_s12, 128  ;;  %s4260_s10 = smov [#allocation8]  }
 0x14f   : > { %p4029_p5 = scmp.ne.s32.totalorder %s4706_s12, %s4028_s27  ;;  %s4033_s21 = sshll.u32 %s4260_s10, 4  ;;  %s4034_s21 = int_to_ptr.vmem [resolvable:$false] %s4033_s21 }
 0x150   : > { %s4035_s3 = scalar_lea.vmem %s4034_s21, 256  ;;  %p4036_p9 = scmp.lt.s32.totalorder %s4706_s12, %s4034_s21 }
 0x151   : > { %p4031_p4 = pnand %p4029_p5, %p4015_p11  ;;  %p4037_p3 = scmp.lt.s32.totalorder %s4035_s3, %s4028_s27 }
 0x153   : > { %p4032_p1 = pneg %p4031_p4  ;;  %p4038_p13 = por %p4037_p3, %p4036_p9 }
 0x155   : > { %p4039_p0 = pnand %p4038_p13, %p4032_p1 }
 0x157   : > { %4042 = shalt.err (!%p4039_p0)
}
 0x158   : > { %3575 = dma.hbm_to_vmem [thread:$0]  (!%p4702_p8), %s4698_s4, 128, %s4706_s12, %s959_s20  }
 0x159   : > { %p5146_p12 = scmp.ne.s32.totalorder %s5135_s8, 0 }
 0x15a   : > { %s982_s25 = sand.u32 (!%p5146_p12), 1, %s4193_s0   ;;  %p5147_p4 = scmp.ne.s32.totalorder (!%p5146_p12), %s5141_s14, 0 }
 0x15b   : > { %980 = sbr.rel (%p5146_p12) target bundleno = 2095 (0x82f), region = 136  ;;  %s4732_s22 = sshll.u32 (!%p5146_p12), %s982_s25, 3 }
 0x15c   : > { %s983_s10 = scalar_lea.sflag (!%p5146_p12), [#allocation9], %s982_s25  ;;  %s986_s21 = scalar_lea.vmem (!%p5146_p12), [#allocation8], %s4732_s22 }
 0x162   : > { %4144 = dma.done.wait (%p5147_p4), %s983_s10, 128  }
 0x163   : > { %4146 = vsyncadd (%p5147_p4), %s983_s10, 4294967168  ;;  %p5148_p1 = scmp.ne.s32.totalorder %s5134_s11, 0 }
 0x165   : > { %4148 = dma.done.wait (%p5148_p1), [#allocation12], 2064  }
 0x166   : > { %4150 = vsyncadd (%p5148_p1), [#allocation12], 4294965232 }
 0x167   : > { %4152 = dma.done.wait (%p5148_p1), [#allocation15], 4096  }
 0x168   : > { %4154 = vsyncadd (%p5148_p1), [#allocation15], 4294963200 }
 0x169   : > { %4156 = dma.done.wait (%p5148_p1), [#allocation18], 6144  }
 0x16a   : > { %4158 = vsyncadd (%p5148_p1), [#allocation18], 4294961152 }
 0x16b   : > { %4160 = dma.done.wait (%p5148_p1), [#allocation21], 6144  }
 0x16c   : > { %4162 = vsyncadd (%p5148_p1), [#allocation21], 4294961152 }
 0x16d   : > { %4164 = dma.done.wait (%p5148_p1), [#allocation24], 2048  }
 0x16e   : > { %4166 = vsyncadd (%p5148_p1), [#allocation24], 4294965248  ;;  %s5149_s8 = sld [smem:[#allocation67_spill]]  ;;  %s4760_s20 = sand.u32 1, %s4181_s16   ;;  %v1107_v0 = vlaneseq  ;;  %v4261_v2 = vmov 0.0  }
 0x16f   : > { %s4763_s14 = sshll.u32 %s4201_s26, 3  ;;  %s2697_s4 = sshll.u32 %s4760_s20, 4 }
 0x170   : > { %s2698_s12 = sshll.u32 %s4760_s20, 3  ;;  %v4768_v1 = vand.u32 127, %v1107_v0  ;;  %p1113_p8 = scmp.eq.s32.totalorder %s4201_s26, 0 }
 0x171   : > { %s4775_s11 = scalar_lea.vmem [#allocation25], %s2697_s4  ;;  %s4777_s28 = scalar_lea.vmem [#allocation26], %s2698_s12 }
 0x172   : > { %vm1109_vm0 = vcmp.lt.s32.totalorder %v4768_v1, 32 }
 0x173   : > { %v4773_v3 = vsel %vm1109_vm0, 1.0, %v4261_v2 }
 0x174   : > { %p1112_p5 = scmp.eq.s32.totalorder %s5149_s8, 0 }
 0x176   : > { %p1114_p11 = pnand %p1113_p8, %p1112_p5 }
 0x177   : > { %v4262_v4 = vmov (!%p1114_p11), 0.0  }
 0x178   : > { %1117 = sbr.rel (%p1114_p11) target bundleno = 383 (0x17f), region = 180  ;;  %1118 = vst [vmem:[#allocation4] sm:$0x1] (!%p1114_p11), %v4262_v4  ;;  %1119 = vst [vmem:[#allocation4 + $0x1] sm:$0x1] (!%p1114_p11), %v4262_v4 }
 0x179   : > { %1120 = vst [vmem:[#allocation5] sm:$0x1] (!%p1114_p11), %v4262_v4  ;;  %1121 = vst [vmem:[#allocation5 + $0x1] sm:$0x1] (!%p1114_p11), %v4262_v4 }
 0x17a   : > { %1122 = vst [vmem:[#allocation6] sm:$0x1] (!%p1114_p11), %v4262_v4  ;;  %1123 = vst [vmem:[#allocation7] sm:$0x1] (!%p1114_p11), %v4262_v4 }
 0x17f PF: > { %s5150_s27 = sld [smem:[#allocation67_spill]] }
 0x185   : > { %p2701_p10 = scmp.ne.s32.totalorder %s5150_s27, 0 }
 0x186   : > { %v4782_v5 = vld [vmem:[%s986_s21] sm:$0xff] (!%p2701_p10)  ;;  %v1158_v7 = vld [vmem:[#allocation13] sm:$0xff] (!%p2701_p10)  ;;  %v4263_v10 = vmov (!%p2701_p10), 0.0|0.0   ;;  %vm4264_vm1 = vmmov (!%p2701_p10), 0   ;;  %v4265_v31 = vmov (!%p2701_p10), 0.0   ;;  %s5151_s3 = sld [smem:[#allocation37_spill]] (!%p2701_p10) }
 0x187   : > { %1126 = sbr.rel (%p2701_p10) target bundleno = 1716 (0x6b4), region = 184  ;;  %v1130_v6 = vmul.f32 (!%p2701_p10), %v4773_v3, %v4782_v5  ;;  %v1159_v8 = vld [vmem:[#allocation13 + $0x8] sm:$0xff] (!%p2701_p10)  ;;  %v1160_v9 = vld [vmem:[#allocation13 + $0x10] sm:$0xff] (!%p2701_p10)  ;;  %3262 = vmatprep.subr.bf16.mxu0 (!%p2701_p10), %v4263_v10  ;;  %v1161_v12 = vld [vmem:[#allocation13 + $0x18] sm:$0xff] (!%p2701_p10)  ;;  %3286 = vmatprep.subr.bf16.mxu1 (!%p2701_p10), %v4263_v10  ;;  %1955 = vst [vmem:[%s4775_s11] sm:$0xff] (!%p2701_p10), %v4265_v31  ;;  %s5152_s25 = sld [smem:[#allocation45_spill]] (!%p2701_p10) }
 0x188   : > { %v3263_v11 = vpack.c.bf16 (!%p2701_p10), %v1159_v8, %v1158_v7  ;;  %v3266_v13 = vpack.c.bf16 (!%p2701_p10), %v1161_v12, %v1160_v9  ;;  %v1162_v14 = vld [vmem:[#allocation13 + $0x20] sm:$0xff] (!%p2701_p10)  ;;  %v1163_v15 = vld [vmem:[#allocation13 + $0x28] sm:$0xff] (!%p2701_p10)  ;;  %v1164_v22 = vld [vmem:[#allocation13 + $0x30] sm:$0xff] (!%p2701_p10)  ;;  %2944 = vmatprep.mubr.msk.f32.mxu0 (!%p2701_p10), %vm4264_vm1, %v4265_v31  ;;  %1956 = vst [vmem:[%s4775_s11 + $0x8] sm:$0xff] (!%p2701_p10), %v4265_v31  ;;  %2979 = vmatprep.mubr.msk.f32.mxu1 (!%p2701_p10), %vm4264_vm1, %v4265_v31  ;;  %s5153_s22 = sld [smem:[#allocation46_spill]] (!%p2701_p10)  ;;  %s5154_s10 = sld [smem:[#allocation40_spill]] (!%p2701_p10) }
 0x189   : > { %1131 = vadd.xlane.f32.xlu0 (!%p2701_p10), %v1130_v6  ;;  %v3269_v16 = vpack.c.bf16 (!%p2701_p10), %v1163_v15, %v1162_v14  ;;  %v1165_v23 = vld [vmem:[#allocation13 + $0x38] sm:$0xff] (!%p2701_p10)  ;;  %v1166_v25 = vld [vmem:[#allocation13 + $0x40] sm:$0xff] (!%p2701_p10)  ;;  %v1167_v26 = vld [vmem:[#allocation13 + $0x48] sm:$0xff] (!%p2701_p10)  ;;  %1957 = vst [vmem:[%s4777_s28] sm:$0xff] (!%p2701_p10), %v4265_v31  ;;  %s5155_s21 = sld [smem:[#allocation48_spill]] (!%p2701_p10)  ;;  %s5156_s8 = sld [smem:[#allocation42_spill]] (!%p2701_p10) }
 0x18a   : > { %3264 = vmatpush3.bf16.msra.mxu0 (!%p2701_p10), %v3263_v11  ;;  %v3272_v24 = vpack.c.bf16 (!%p2701_p10), %v1165_v23, %v1164_v22  ;;  %v3275_v27 = vpack.c.bf16 (!%p2701_p10), %v1167_v26, %v1166_v25  ;;  %v1168_v28 = vld [vmem:[#allocation13 + $0x50] sm:$0xff] (!%p2701_p10)  ;;  %v1169_v29 = vld [vmem:[#allocation13 + $0x58] sm:$0xff] (!%p2701_p10)  ;;  %v1170_v32 = vld [vmem:[#allocation13 + $0x60] sm:$0xff] (!%p2701_p10)  ;;  %s5157_s4 = sld [smem:[#allocation50_spill]] (!%p2701_p10)  ;;  %s5158_s12 = sld [smem:[#allocation43_spill]] (!%p2701_p10) }
 0x18b   : > { %3265 = vmatprep.subr.bf16.mxu0 (!%p2701_p10), %v4263_v10  ;;  %v3278_v30 = vpack.c.bf16 (!%p2701_p10), %v1169_v29, %v1168_v28  ;;  %v1171_v33 = vld [vmem:[#allocation13 + $0x68] sm:$0xff] (!%p2701_p10)  ;;  %v1172_v35 = vld [vmem:[#allocation13 + $0x70] sm:$0xff] (!%p2701_p10)  ;;  %v1173_v36 = vld [vmem:[#allocation13 + $0x78] sm:$0xff] (!%p2701_p10)  ;;  %s5159_s27 = sld [smem:[#allocation44_spill]] (!%p2701_p10) }
 0x18c   : > { %v3281_v34 = vpack.c.bf16 (!%p2701_p10), %v1171_v33, %v1170_v32  ;;  %v3284_v37 = vpack.c.bf16 (!%p2701_p10), %v1173_v36, %v1172_v35  ;;  %v1252_v38 = vld [vmem:[#allocation14] sm:$0xff] (!%p2701_p10)  ;;  %v1253_v39 = vld [vmem:[#allocation14 + $0x8] sm:$0xff] (!%p2701_p10)  ;;  %v1254_v40 = vld [vmem:[#allocation14 + $0x10] sm:$0xff] (!%p2701_p10) }
 0x18d   : > { %v3287_v41 = vpack.c.bf16 (!%p2701_p10), %v1253_v39, %v1252_v38  ;;  %v1255_v42 = vld [vmem:[#allocation14 + $0x18] sm:$0xff] (!%p2701_p10)  ;;  %v1256_v44 = vld [vmem:[#allocation14 + $0x20] sm:$0xff] (!%p2701_p10)  ;;  %v1257_v45 = vld [vmem:[#allocation14 + $0x28] sm:$0xff] (!%p2701_p10) }
 0x18e   : > { %3267 = vmatpush3.bf16.msra.mxu0 %v3266_v13  ;;  %v3290_v43 = vpack.c.bf16 %v1255_v42, %v1254_v40  ;;  %v3293_v46 = vpack.c.bf16 %v1257_v45, %v1256_v44  ;;  %v1258_v47 = vld [vmem:[#allocation14 + $0x30] sm:$0xff]  ;;  %v1259_v48 = vld [vmem:[#allocation14 + $0x38] sm:$0xff]  ;;  %v1260_v50 = vld [vmem:[#allocation14 + $0x40] sm:$0xff] }
 0x18f   : > { %3268 = vmatprep.subr.bf16.mxu0 %v4263_v10  ;;  %3288 = vmatpush3.bf16.msra.mxu1 %v3287_v41  ;;  %v3296_v49 = vpack.c.bf16 %v1259_v48, %v1258_v47  ;;  %v1261_v51 = vld [vmem:[#allocation14 + $0x48] sm:$0xff]  ;;  %v1262_v53 = vld [vmem:[#allocation14 + $0x50] sm:$0xff]  ;;  %v1263_v54 = vld [vmem:[#allocation14 + $0x58] sm:$0xff] }
 0x190   : > { %3289 = vmatprep.subr.bf16.mxu1 %v4263_v10  ;;  %v3299_v52 = vpack.c.bf16 %v1261_v51, %v1260_v50  ;;  %v3302_v55 = vpack.c.bf16 %v1263_v54, %v1262_v53  ;;  %v1264_v56 = vld [vmem:[#allocation14 + $0x60] sm:$0xff]  ;;  %v1265_v57 = vld [vmem:[#allocation14 + $0x68] sm:$0xff]  ;;  %v2702_v63 = vld [vmem:[%s5151_s3] ss:$0 sm:$0xff]  ;;  %s5160_s3 = sld [smem:[#allocation51_spill]] }
 0x191   : > { %v3305_v58 = vpack.c.bf16 %v1265_v57, %v1264_v56  ;;  %v1391_v4 = vld [vmem:[#allocation16] sm:$0xff]  ;;  %v1392_v6 = vld [vmem:[#allocation16 + $0x8] sm:$0xff]  ;;  %v2703_v7 = vld [vmem:[#allocation11] ss:$0 sm:$0xff] }
 0x192   : > { %3270 = vmatpush3.bf16.msra.mxu0 %v3269_v16  ;;  %v3311_v9 = vpack.c.bf16 %v1392_v6, %v1391_v4  ;;  %v1393_v12 = vld [vmem:[#allocation16 + $0x10] sm:$0xff]  ;;  %v1394_v13 = vld [vmem:[#allocation16 + $0x18] sm:$0xff]  ;;  %v1395_v15 = vld [vmem:[#allocation16 + $0x20] sm:$0xff] }
 0x193   : > { %3271 = vmatprep.subr.bf16.mxu0 %v4263_v10  ;;  %3291 = vmatpush3.bf16.msra.mxu1 %v3290_v43  ;;  %v3314_v14 = vpack.c.bf16 %v1394_v13, %v1393_v12  ;;  %v1396_v16 = vld [vmem:[#allocation16 + $0x28] sm:$0xff]  ;;  %v1402_v25 = vld [vmem:[#allocation16 + $0x58] sm:$0xff]  ;;  %v1266_v38 = vld [vmem:[#allocation14 + $0x70] sm:$0xff] }
 0x194   : > { %3292 = vmatprep.subr.bf16.mxu1 %v4263_v10  ;;  %v1400_v22 = vld [vmem:[#allocation16 + $0x48] sm:$0xff]  ;;  %v1406_v32 = vld [vmem:[#allocation16 + $0x78] sm:$0xff]  ;;  %v1485_v42 = vld [vmem:[#allocation17] sm:$0xff] }
 0x195   : > { %v1404_v28 = vld [vmem:[#allocation16 + $0x68] sm:$0xff]  ;;  %v2708_v33 = vld [vmem:[%s5152_s25] ss:$0 sm:$0xff]  ;;  %s5161_s25 = sld [smem:[#allocation52_spill]] }
 0x196   : > { %3273 = vmatpush3.bf16.msra.mxu0 %v3272_v24  ;;  %v1401_v24 = vld [vmem:[#allocation16 + $0x50] sm:$0xff]  ;;  %v2709_v36 = vld [vmem:[%s5153_s22] ss:$0 sm:$0xff]  ;;  %v1486_v43 = vld [vmem:[#allocation17 + $0x8] sm:$0xff]  ;;  %s5162_s22 = sld [smem:[#allocation54_spill]] }
 0x197   : > { %3274 = vmatprep.subr.bf16.mxu0 %v4263_v10  ;;  %3294 = vmatpush3.bf16.msra.mxu1 %v3293_v46  ;;  %v3326_v26 = vpack.c.bf16 %v1402_v25, %v1401_v24  ;;  %v1267_v39 = vld [vmem:[#allocation14 + $0x78] sm:$0xff]  ;;  %v3335_v47 = vpack.c.bf16 %v1486_v43, %v1485_v42  ;;  %v1490_v53 = vld [vmem:[#allocation17 + $0x28] sm:$0xff]  ;;  %v1727_v42 = vld [vmem:[#allocation19 + $0xa0] sm:$0xff] }
 0x198   : > { %3295 = vmatprep.subr.bf16.mxu1 %v4263_v10  ;;  %v3308_v40 = vpack.c.bf16 %v1267_v39, %v1266_v38  ;;  %v2704_v41 = vld [vmem:[%s5154_s10] ss:$0 sm:$0xff]  ;;  %v1498_v4 = vld [vmem:[#allocation17 + $0x68] sm:$0xff] }
 0x199   : > { %v1488_v50 = vld [vmem:[#allocation17 + $0x18] sm:$0xff]  ;;  %v1728_v43 = vld [vmem:[#allocation19 + $0xa8] sm:$0xff] }
 0x19a   : > { %3276 = vmatpush3.bf16.msra.mxu0 %v3275_v27  ;;  %v1403_v27 = vld [vmem:[#allocation16 + $0x60] sm:$0xff]  ;;  %v1492_v56 = vld [vmem:[#allocation17 + $0x38] sm:$0xff] }
 0x19b   : > { %3277 = vmatprep.subr.bf16.mxu0 %v4263_v10  ;;  %3297 = vmatpush3.bf16.msra.mxu1 %v3296_v49  ;;  %v3329_v29 = vpack.c.bf16 %v1404_v28, %v1403_v27  ;;  %v1487_v49 = vld [vmem:[#allocation17 + $0x10] sm:$0xff]  ;;  %v1608_v28 = vld [vmem:[#allocation19] sm:$0xff]  ;;  %v1726_v38 = vld [vmem:[#allocation19 + $0x98] sm:$0xff] }
 0x19c   : > { %3298 = vmatprep.subr.bf16.mxu1 %v4263_v10  ;;  %v3338_v51 = vpack.c.bf16 %v1488_v50, %v1487_v49  ;;  %s5163_s10 = smov %s5162_s22 }
 0x19e   : > { %3279 = vmatpush3.bf16.msra.mxu0 %v3278_v30  ;;  %v1405_v30 = vld [vmem:[#allocation16 + $0x70] sm:$0xff] }
 0x19f   : > { %3280 = vmatprep.subr.bf16.mxu0 %v4263_v10  ;;  %3300 = vmatpush3.bf16.msra.mxu1 %v3299_v52  ;;  %v1489_v52 = vld [vmem:[#allocation17 + $0x20] sm:$0xff] }
 0x1a0   : > { %3301 = vmatprep.subr.bf16.mxu1 %v4263_v10  ;;  %v3341_v54 = vpack.c.bf16 %v1490_v53, %v1489_v52  ;;  %v1615_v52 = vld [vmem:[#allocation19 + $0x38] sm:$0xff] }
 0x1a2   : > { %3282 = vmatpush3.bf16.msra.mxu0 %v3281_v34  ;;  %v3332_v34 = vpack.c.bf16 %v1406_v32, %v1405_v30  ;;  %v1723_v30 = vld [vmem:[#allocation19 + $0x80] sm:$0xff] }
 0x1a3   : > { %3283 = vmatprep.subr.bf16.mxu0 %v4263_v10  ;;  %3303 = vmatpush3.bf16.msra.mxu1 %v3302_v55  ;;  %v1491_v55 = vld [vmem:[#allocation17 + $0x30] sm:$0xff] }
 0x1a4   : > { %3304 = vmatprep.subr.bf16.mxu1 %v4263_v10  ;;  %v3344_v57 = vpack.c.bf16 %v1492_v56, %v1491_v55  ;;  %v1730_v55 = vld [vmem:[#allocation19 + $0xb8] sm:$0xff] }
 0x1a6   : > { %3285 = vmatpush3.bf16.msra.mxu0 %v3284_v37 }
 0x1a7   : > { %3310 = vmatprep.subr.bf16.mxu0 %v4263_v10  ;;  %3306 = vmatpush3.bf16.msra.mxu1 %v3305_v58  ;;  %v1493_v58 = vld [vmem:[#allocation17 + $0x40] sm:$0xff] }
 0x1a8   : > { %3307 = vmatprep.subr.bf16.mxu1 %v4263_v10 }
 0x1ab   : > { %3309 = vmatpush3.bf16.msra.mxu1 %v3308_v40  ;;  %v1612_v40 = vld [vmem:[#allocation19 + $0x20] sm:$0xff] }
 0x1ac   : > { %3334 = vmatprep.subr.bf16.mxu1 %v4263_v10 }
 0x216   : > { %v1132_v17 = vpop.xlane.xlu0 %1131 }
 0x217   : > { %v1134_v18 = vmul.f32 0.03125, %v1132_v17  ;;  %v3317_v17 = vpack.c.bf16 %v1396_v16, %v1395_v15  ;;  %v2705_v16 = vld [vmem:[%s5156_s8] ss:$0 sm:$0xff]  ;;  %s5164_s8 = sld [smem:[#allocation60_spill]] }
 0x219   : > { %v4792_v19 = vsub.f32 %v4782_v5, %v1134_v18  ;;  %v1397_v18 = vld [vmem:[#allocation16 + $0x30] sm:$0xff] }
 0x21b   : > { %v1136_v20 = vmul.f32 %v4773_v3, %v4792_v19 }
 0x21d   : > { %v1137_v21 = vmul.f32 %v1136_v20, %v1136_v20 }
 0x21f   : > { %1138 = vadd.xlane.f32.xlu0 %v1137_v21  ;;  %v1399_v21 = vld [vmem:[#allocation16 + $0x40] sm:$0xff] }
 0x220   : > { %v3323_v23 = vpack.c.bf16 %v1400_v22, %v1399_v21  ;;  %v2711_v22 = vld [vmem:[%s5157_s4] ss:$0 sm:$0xff]  ;;  %s1934_s4 = scalar_lea.vmem [#allocation3], %s4763_s14 }
 0x2ac   : > { %v1139_v59 = vpop.xlane.xlu0 %1138 }
 0x2ad   : > { %v1140_v60 = vmul.f32 0.03125, %v1139_v59  ;;  %v1494_v59 = vld [vmem:[#allocation17 + $0x48] sm:$0xff] }
 0x2af   : > { %v1141_v61 = vadd.f32 1e-05, %v1140_v60  ;;  %v3347_v60 = vpack.c.bf16 %v1494_v59, %v1493_v58  ;;  %v1617_v58 = vld [vmem:[#allocation19 + $0x48] sm:$0xff] }
 0x2b1   : > { %3743 = vrsqrt.f32 %v1141_v61  ;;  %v1495_v61 = vld [vmem:[#allocation17 + $0x50] sm:$0xff] }
 0x2bb   : > { %v3744_v62 = vpop.eup %3743 }
 0x2bc   : > { %v1143_v2 = vmul.f32 %v3744_v62, %v4792_v19  ;;  %v1398_v19 = vld [vmem:[#allocation16 + $0x38] sm:$0xff] }
 0x2bd   : > { %v3320_v20 = vpack.c.bf16 %v1398_v19, %v1397_v18  ;;  %v1496_v62 = vld [vmem:[#allocation17 + $0x58] sm:$0xff] }
 0x2be   : > { %v1150_v8 = vmul.f32 %v2702_v63, %v1143_v2  ;;  %v1383_v35 = vmul.f32 %v2708_v33, %v1143_v2  ;;  %v3350_v63 = vpack.c.bf16 %v1496_v62, %v1495_v61  ;;  %v1497_v2 = vld [vmem:[#allocation17 + $0x60] sm:$0xff]  ;;  %v1724_v33 = vld [vmem:[#allocation19 + $0x88] sm:$0xff]  ;;  %v1618_v62 = vld [vmem:[#allocation19 + $0x50] sm:$0xff] }
 0x2bf   : > { %v3353_v6 = vpack.c.bf16 %v1498_v4, %v1497_v2  ;;  %v1732_v61 = vld [vmem:[#allocation19 + $0xc8] sm:$0xff]  ;;  %v1619_v2 = vld [vmem:[#allocation19 + $0x58] sm:$0xff]  ;;  %v1733_v4 = vld [vmem:[#allocation19 + $0xd0] sm:$0xff] }
 0x2c0   : > { %v1157_v11 = vadd.f32 %v2703_v7, %v1150_v8  ;;  %v1390_v37 = vadd.f32 %v2709_v36, %v1383_v35  ;;  %v1499_v7 = vld [vmem:[#allocation17 + $0x70] sm:$0xff]  ;;  %v1500_v8 = vld [vmem:[#allocation17 + $0x78] sm:$0xff]  ;;  %v3383_v36 = vpack.c.bf16 %v1724_v33, %v1723_v30  ;;  %v1841_v33 = vld [vmem:[#allocation22] sm:$0xff] }
 0x2c1   : > { %v1611_v35 = vld [vmem:[#allocation19 + $0x18] sm:$0xff] }
 0x2c2   : > { %2945 = vmatmul.mubr.f32.vlgmr.msra.gmra.mrb[0].mxu0 %v1157_v11  ;;  %v3356_v11 = vpack.c.bf16 %v1500_v8, %v1499_v7  ;;  %v3374_v7 = vpack.c.bf16 %v1619_v2, %v1618_v62  ;;  %v2706_v30 = vld [vmem:[%s5158_s12] ss:$0 sm:$0xff] }
 0x2c3   : > { %3312 = vmatpush3.bf16.msra.mxu0 %v3311_v9  ;;  %3014 = vmatprep.mubr.msk.f32.mxu0 %vm4264_vm1, %v4265_v31  ;;  %v2710_v9 = vld [vmem:[%s5155_s21] ss:$0 sm:$0xff]  ;;  %s1701_s21 = scalar_lea.vmem [#allocation2], %s4763_s14 }
 0x2c4   : > { %3313 = vmatprep.subr.bf16.mxu0 %v4263_v10  ;;  %v2712_v62 = vld [vmem:[%s5160_s3] ss:$0 sm:$0xff] }
 0x2c5   : > { %v2713_v2 = vld [vmem:[%s5161_s25] ss:$0 sm:$0xff] }
 0x2c7   : > { %3315 = vmatpush3.bf16.msra.mxu0 %v3314_v14 }
 0x2c8   : > { %3316 = vmatprep.subr.bf16.mxu0 %v4263_v10 }
 0x2cb   : > { %3318 = vmatpush3.bf16.msra.mxu0 %v3317_v17 }
 0x2cc   : > { %3319 = vmatprep.subr.bf16.mxu0 %v4263_v10 }
 0x2cf   : > { %3321 = vmatpush3.bf16.msra.mxu0 %v3320_v20 }
 0x2d0   : > { %3322 = vmatprep.subr.bf16.mxu0 %v4263_v10 }
 0x2d3   : > { %3324 = vmatpush3.bf16.msra.mxu0 %v3323_v23 }
 0x2d4   : > { %3325 = vmatprep.subr.bf16.mxu0 %v4263_v10 }
 0x2d7   : > { %3327 = vmatpush3.bf16.msra.mxu0 %v3326_v26 }
 0x2d8   : > { %3328 = vmatprep.subr.bf16.mxu0 %v4263_v10 }
 0x2db   : > { %3330 = vmatpush3.bf16.msra.mxu0 %v3329_v29  ;;  %v1609_v29 = vld [vmem:[#allocation19 + $0x8] sm:$0xff] }
 0x2dc   : > { %3331 = vmatprep.subr.bf16.mxu0 %v4263_v10  ;;  %v3359_v32 = vpack.c.bf16 %v1609_v29, %v1608_v28 }
 0x2df   : > { %3333 = vmatpush3.bf16.msra.mxu0 %v3332_v34  ;;  %v1610_v34 = vld [vmem:[#allocation19 + $0x10] sm:$0xff] }
 0x2e0   : > { %3358 = vmatprep.subr.bf16.mxu0 %v4263_v10  ;;  %v3362_v39 = vpack.c.bf16 %v1611_v35, %v1610_v34  ;;  %v1842_v34 = vld [vmem:[#allocation22 + $0x8] sm:$0xff]  ;;  %v2707_v35 = vld [vmem:[%s5159_s27] ss:$0 sm:$0xff] }
 0x2e2   : > { %3015 = vmatmul.mubr.f32.vlgmr.msra.gmra.mrb[2].mxu0 %v1390_v37  ;;  %v1725_v37 = vld [vmem:[#allocation19 + $0x90] sm:$0xff] }
 0x2e3   : > { %3084 = vmatprep.mubr.msk.f32.mxu0 %vm4264_vm1, %v4265_v31  ;;  %3360 = vmatpush3.bf16.msra.mxu0 %v3359_v32 }
 0x2e4   : > { %3361 = vmatprep.subr.bf16.mxu0 %v4263_v10 }
 0x2e7   : > { %3363 = vmatpush3.bf16.msra.mxu0 %v3362_v39  ;;  %v1843_v39 = vld [vmem:[#allocation22 + $0x10] sm:$0xff] }
 0x2e8   : > { %3364 = vmatprep.subr.bf16.mxu0 %v4263_v10 }
 0x395   : > { %v1247_v44 = vpop.f32.mrb[0].mxu0 }
 0x396   : > { %v1248_v45 = vadd.f32 %v2704_v41, %v1247_v44  ;;  %v2946_v46 = vpop.f32.mrb[1].mxu0  ;;  %v1613_v41 = vld [vmem:[#allocation19 + $0x28] sm:$0xff] }
 0x397   : > { %v3365_v44 = vpack.c.bf16 %v1613_v41, %v1612_v40  ;;  %v1845_v41 = vld [vmem:[#allocation22 + $0x20] sm:$0xff] }
 0x398   : > { %v1251_v48 = vmax.f32 %v1248_v45, 0.0  ;;  %v3389_v45 = vpack.c.bf16 %v1728_v43, %v1727_v42  ;;  %v1846_v42 = vld [vmem:[#allocation22 + $0x28] sm:$0xff] }
 0x399   : > { %3366 = vmatpush3.bf16.msra.mxu0 %v3365_v44  ;;  %v3413_v43 = vpack.c.bf16 %v1846_v42, %v1845_v41  ;;  %v1847_v44 = vld [vmem:[#allocation22 + $0x30] sm:$0xff]  ;;  %v1831_v41 = vld [vmem:[#allocation5 + $0x1] sm:$0x1] }
 0x39a   : > { %2980 = vmatmul.mubr.f32.vlgmr.msra.gmra.mrb[0].mxu1 %v1251_v48  ;;  %3367 = vmatprep.subr.bf16.mxu0 %v4263_v10 }
 0x39b   : > { %3336 = vmatpush3.bf16.msra.mxu1 %v3335_v47  ;;  %3049 = vmatprep.mubr.msk.f32.mxu1 %vm4264_vm1, %v4265_v31 }
 0x39c   : > { %3337 = vmatprep.subr.bf16.mxu1 %v4263_v10 }
 0x39f   : > { %3339 = vmatpush3.bf16.msra.mxu1 %v3338_v51  ;;  %v1614_v51 = vld [vmem:[#allocation19 + $0x30] sm:$0xff] }
 0x3a0   : > { %3340 = vmatprep.subr.bf16.mxu1 %v4263_v10  ;;  %v3368_v53 = vpack.c.bf16 %v1615_v52, %v1614_v51  ;;  %v1851_v52 = vld [vmem:[#allocation22 + $0x50] sm:$0xff] }
 0x3a2   : > { %3369 = vmatpush3.bf16.msra.mxu0 %v3368_v53  ;;  %v1852_v53 = vld [vmem:[#allocation22 + $0x58] sm:$0xff] }
 0x3a3   : > { %3342 = vmatpush3.bf16.msra.mxu1 %v3341_v54  ;;  %v1729_v54 = vld [vmem:[#allocation19 + $0xb0] sm:$0xff]  ;;  %3370 = vmatprep.subr.bf16.mxu0 %v4263_v10 }
 0x3a4   : > { %3343 = vmatprep.subr.bf16.mxu1 %v4263_v10  ;;  %v3392_v56 = vpack.c.bf16 %v1730_v55, %v1729_v54  ;;  %v3422_v54 = vpack.c.bf16 %v1852_v53, %v1851_v52  ;;  %v1853_v55 = vld [vmem:[#allocation22 + $0x60] sm:$0xff] }
 0x3a7   : > { %3345 = vmatpush3.bf16.msra.mxu1 %v3344_v57  ;;  %v1616_v57 = vld [vmem:[#allocation19 + $0x40] sm:$0xff] }
 0x3a8   : > { %3346 = vmatprep.subr.bf16.mxu1 %v4263_v10  ;;  %v3371_v59 = vpack.c.bf16 %v1617_v58, %v1616_v57  ;;  %v1855_v58 = vld [vmem:[#allocation22 + $0x70] sm:$0xff] }
 0x3aa   : > { %3372 = vmatpush3.bf16.msra.mxu0 %v3371_v59  ;;  %v1856_v59 = vld [vmem:[#allocation22 + $0x78] sm:$0xff] }
 0x3ab   : > { %3348 = vmatpush3.bf16.msra.mxu1 %v3347_v60  ;;  %v1731_v60 = vld [vmem:[#allocation19 + $0xc0] sm:$0xff]  ;;  %3373 = vmatprep.subr.bf16.mxu0 %v4263_v10 }
 0x3ac   : > { %3349 = vmatprep.subr.bf16.mxu1 %v4263_v10 }
 0x3ae   : > { %3375 = vmatpush3.bf16.msra.mxu0 %v3374_v7  ;;  %v2714_v7 = vld [vmem:[%s5162_s22] ss:$0 sm:$0xff] }
 0x3af   : > { %3351 = vmatpush3.bf16.msra.mxu1 %v3350_v63  ;;  %v3395_v63 = vpack.c.bf16 %v1732_v61, %v1731_v60  ;;  %3376 = vmatprep.subr.bf16.mxu0 %v4263_v10  ;;  %v3428_v61 = vpack.c.bf16 %v1856_v59, %v1855_v58 }
 0x3b0   : > { %3352 = vmatprep.subr.bf16.mxu1 %v4263_v10 }
 0x3b3   : > { %3354 = vmatpush3.bf16.msra.mxu1 %v3353_v6  ;;  %v1734_v6 = vld [vmem:[#allocation19 + $0xd8] sm:$0xff] }
 0x3b4   : > { %3355 = vmatprep.subr.bf16.mxu1 %v4263_v10  ;;  %v3398_v8 = vpack.c.bf16 %v1734_v6, %v1733_v4 }
 0x3b5   : > { %v1480_v12 = vpop.f32.mrb[2].mxu0 }
 0x3b6   : > { %v1481_v13 = vadd.f32 %v2710_v9, %v1480_v12  ;;  %v3016_v14 = vpop.f32.mrb[3].mxu0  ;;  %v1620_v9 = vld [vmem:[#allocation19 + $0x60] sm:$0xff] }
 0x3b7   : > { %3357 = vmatpush3.bf16.msra.mxu1 %v3356_v11  ;;  %v1621_v11 = vld [vmem:[#allocation19 + $0x68] sm:$0xff]  ;;  %v1735_v12 = vld [vmem:[#allocation19 + $0xe0] sm:$0xff] }
 0x3b8   : > { %v1484_v15 = vmax.f32 %v1481_v13, 0.0  ;;  %3382 = vmatprep.subr.bf16.mxu1 %v4263_v10  ;;  %v1736_v13 = vld [vmem:[#allocation19 + $0xe8] sm:$0xff] }
 0x3ba   : > { %3050 = vmatmul.mubr.f32.vlgmr.msra.gmra.mrb[2].mxu1 %v1484_v15 }
 0x3bb   : > { %3119 = vmatprep.mubr.msk.f32.mxu1 %vm4264_vm1, %v4265_v31  ;;  %3384 = vmatpush3.bf16.msra.mxu1 %v3383_v36 }
 0x3bc   : > { %3385 = vmatprep.subr.bf16.mxu1 %v4263_v10 }
 0x46d   : > { %v1341_v17 = vpop.f32.mrb[0].mxu1 }
 0x46e   : > { %v1342_v18 = vadd.f32 %v2705_v16, %v1341_v17  ;;  %v2981_v19 = vpop.f32.mrb[1].mxu1  ;;  %v3377_v16 = vpack.c.bf16 %v1621_v11, %v1620_v9  ;;  %v3401_v17 = vpack.c.bf16 %v1736_v13, %v1735_v12 }
 0x46f   : > { %v1623_v19 = vld [vmem:[#allocation19 + $0x78] sm:$0xff] }
 0x470   : > { %v1345_v20 = vadd.f32 %v1342_v18, %v4782_v5  ;;  %v1622_v18 = vld [vmem:[#allocation19 + $0x70] sm:$0xff]  ;;  %3378 = vmatpush3.bf16.msra.mxu0 %v3377_v16 }
 0x471   : > { %3379 = vmatprep.subr.bf16.mxu0 %v4263_v10 }
 0x472   : > { %v1348_v21 = vmul.f32 %v4773_v3, %v1345_v20 }
 0x474   : > { %1349 = vadd.xlane.f32.xlu1 %v1348_v21  ;;  %v1737_v21 = vld [vmem:[#allocation19 + $0xf0] sm:$0xff] }
 0x48d   : > { %v1574_v23 = vpop.f32.mrb[2].mxu1 }
 0x48e   : > { %v1575_v24 = vadd.f32 %v2711_v22, %v1574_v23  ;;  %v3051_v25 = vpop.f32.mrb[3].mxu1  ;;  %v1738_v22 = vld [vmem:[#allocation19 + $0xf8] sm:$0xff] }
 0x48f   : > { %v3404_v25 = vpack.c.bf16 %v1738_v22, %v1737_v21 }
 0x490   : > { %v4854_v26 = vadd.f32 %v1575_v24, %v4782_v5  ;;  %v3386_v5 = vpack.c.bf16 %v1726_v38, %v1725_v37  ;;  %v3380_v24 = vpack.c.bf16 %v1623_v19, %v1622_v18  ;;  %v3407_v37 = vpack.c.bf16 %v1842_v34, %v1841_v33 }
 0x492   : > { %v1581_v27 = vmul.f32 %v4773_v3, %v4854_v26  ;;  %3387 = vmatpush3.bf16.msra.mxu1 %v3386_v5  ;;  %3381 = vmatpush3.bf16.msra.mxu0 %v3380_v24  ;;  %v1844_v5 = vld [vmem:[#allocation22 + $0x18] sm:$0xff] }
 0x493   : > { %3388 = vmatprep.subr.bf16.mxu1 %v4263_v10  ;;  %3406 = vmatprep.subr.bf16.mxu0 %v4263_v10  ;;  %v3410_v40 = vpack.c.bf16 %v1844_v5, %v1843_v39 }
 0x494   : > { %1582 = vadd.xlane.f32.xlu1 %v1581_v27 }
 0x496   : > { %3390 = vmatpush3.bf16.msra.mxu1 %v3389_v45  ;;  %v1848_v45 = vld [vmem:[#allocation22 + $0x38] sm:$0xff] }
 0x497   : > { %3391 = vmatprep.subr.bf16.mxu1 %v4263_v10 }
 0x49a   : > { %3393 = vmatpush3.bf16.msra.mxu1 %v3392_v56  ;;  %v1854_v56 = vld [vmem:[#allocation22 + $0x68] sm:$0xff] }
 0x49b   : > { %3394 = vmatprep.subr.bf16.mxu1 %v4263_v10  ;;  %v3425_v57 = vpack.c.bf16 %v1854_v56, %v1853_v55 }
 0x49e   : > { %3396 = vmatpush3.bf16.msra.mxu1 %v3395_v63 }
 0x49f   : > { %3397 = vmatprep.subr.bf16.mxu1 %v4263_v10 }
 0x4a2   : > { %3399 = vmatpush3.bf16.msra.mxu1 %v3398_v8  ;;  %v2716_v8 = vld [vmem:[%s5163_s10 + $0x1] ss:$0 sm:$0xff] }
 0x4a3   : > { %3400 = vmatprep.subr.bf16.mxu1 %v4263_v10 }
 0x4a6   : > { %3402 = vmatpush3.bf16.msra.mxu1 %v3401_v17 }
 0x4a7   : > { %3403 = vmatprep.subr.bf16.mxu1 %v4263_v10 }
 0x4aa   : > { %3405 = vmatpush3.bf16.msra.mxu1 %v3404_v25 }
 0x501   : > { %v1350_v46 = vpop.xlane.xlu1 %1349 }
 0x502   : > { %v1351_v47 = vmul.f32 0.03125, %v1350_v46  ;;  %v3416_v46 = vpack.c.bf16 %v1848_v45, %v1847_v44 }
 0x504   : > { %v4864_v48 = vsub.f32 %v1345_v20, %v1351_v47 }
 0x506   : > { %v1353_v49 = vmul.f32 %v4773_v3, %v4864_v48 }
 0x508   : > { %v1354_v50 = vmul.f32 %v1353_v49, %v1353_v49  ;;  %v1850_v49 = vld [vmem:[#allocation22 + $0x48] sm:$0xff] }
 0x50a   : > { %1355 = vadd.xlane.f32.xlu0 %v1354_v50 }
 0x521   : > { %v1583_v14 = vpop.xlane.xlu1 %1582 }
 0x522   : > { %v1584_v15 = vmul.f32 0.03125, %v1583_v14 }
 0x524   : > { %v4874_v20 = vsub.f32 %v4854_v26, %v1584_v15 }
 0x526   : > { %v1586_v23 = vmul.f32 %v4773_v3, %v4874_v20 }
 0x528   : > { %v1587_v27 = vmul.f32 %v1586_v23, %v1586_v23 }
 0x52a   : > { %1588 = vadd.xlane.f32.xlu1 %v1587_v27 }
 0x597   : > { %v1356_v26 = vpop.xlane.xlu0 %1355 }
 0x598   : > { %v1357_v28 = vmul.f32 0.03125, %v1356_v26 }
 0x59a   : > { %v1358_v29 = vadd.f32 1e-05, %v1357_v28 }
 0x59c   : > { %3745 = vrsqrt.f32 %v1358_v29 }
 0x5a6   : > { %v3746_v3 = vpop.eup %3745 }
 0x5a7   : > { %v1360_v32 = vmul.f32 %v3746_v3, %v4864_v48  ;;  %v1849_v48 = vld [vmem:[#allocation22 + $0x40] sm:$0xff] }
 0x5a9   : > { %v1367_v36 = vmul.f32 %v2706_v30, %v1360_v32 }
 0x5ab   : > { %v1374_v38 = vadd.f32 %v2707_v35, %v1367_v36  ;;  %v1703_v35 = vld [vmem:[#allocation4] sm:$0x1]  ;;  %v1821_v36 = vld [vmem:[#allocation4 + $0x1] sm:$0x1] }
 0x5ad   : > { %3085 = vmatmul.mubr.f32.vlgmr.msra.gmra.mrb[4].mxu0 %v1374_v38  ;;  %3120 = vmatmul.mubr.f32.vlgmr.msra.gmra.mrb[4].mxu1 %v1374_v38 }
 0x5ae   : > { %3408 = vmatpush3.bf16.msra.mxu0 %v3407_v37  ;;  %3154 = vmatprep.mubr.msk.f32.mxu0 %vm4264_vm1, %v4265_v31  ;;  %v3419_v31 = vpack.c.bf16 %v1850_v49, %v1849_v48  ;;  %v2719_v48 = vld [vmem:[%s5164_s8] ss:$0 sm:$0xff] }
 0x5af   : > { %3409 = vmatprep.subr.bf16.mxu0 %v4263_v10 }
 0x5b2   : > { %3411 = vmatpush3.bf16.msra.mxu0 %v3410_v40  ;;  %v1712_v40 = vld [vmem:[#allocation5] sm:$0x1] }
 0x5b3   : > { %3412 = vmatprep.subr.bf16.mxu0 %v4263_v10 }
 0x5b6   : > { %3414 = vmatpush3.bf16.msra.mxu0 %v3413_v43 }
 0x5b7   : > { %v1589_v47 = vpop.xlane.xlu1 %1588  ;;  %3415 = vmatprep.subr.bf16.mxu0 %v4263_v10 }
 0x5b8   : > { %v1590_v50 = vmul.f32 0.03125, %v1589_v47 }
 0x5ba   : > { %v1591_v51 = vadd.f32 1e-05, %v1590_v50  ;;  %3417 = vmatpush3.bf16.msra.mxu0 %v3416_v46 }
 0x5bb   : > { %3418 = vmatprep.subr.bf16.mxu0 %v4263_v10 }
 0x5bc   : > { %3747 = vrsqrt.f32 %v1591_v51 }
 0x5be   : > { %3420 = vmatpush3.bf16.msra.mxu0 %v3419_v31 }
 0x5bf   : > { %3421 = vmatprep.subr.bf16.mxu0 %v4263_v10 }
 0x5c2   : > { %3423 = vmatpush3.bf16.msra.mxu0 %v3422_v54 }
 0x5c3   : > { %3424 = vmatprep.subr.bf16.mxu0 %v4263_v10 }
 0x5c6   : > { %v3748_v60 = vpop.eup %3747  ;;  %3426 = vmatpush3.bf16.msra.mxu0 %v3425_v57 }
 0x5c7   : > { %3427 = vmatprep.subr.bf16.mxu0 %v4263_v10  ;;  %v1593_v63 = vmul.f32 %v3748_v60, %v4874_v20 }
 0x5c9   : > { %v1600_v4 = vmul.f32 %v2712_v62, %v1593_v63 }
 0x5ca   : > { %3429 = vmatpush3.bf16.msra.mxu0 %v3428_v61  ;;  %v1936_v61 = vld [vmem:[#allocation6] sm:$0x1] }
 0x5cb   : > { %v1607_v6 = vadd.f32 %v2713_v2, %v1600_v4  ;;  %v1945_v2 = vld [vmem:[#allocation7] sm:$0x1] }
 0x5cd   : > { %3155 = vmatmul.mubr.f32.vlgmr.msra.gmra.mrb[6].mxu0 %v1607_v6 }
 0x680   : > { %v1697_v9 = vpop.f32.mrb[4].mxu0  ;;  %v1813_v11 = vpop.f32.mrb[4].mxu1 }
 0x681   : > { %v1698_v12 = vadd.f32 %v2714_v7, %v1697_v9  ;;  %v1814_v13 = vadd.f32 %v2716_v8, %v1813_v11  ;;  %v3086_v14 = vpop.f32.mrb[5].mxu0  ;;  %v3121_v15 = vpop.f32.mrb[5].mxu1 }
 0x683   : > { %1702 = vst [vmem:[%s1701_s21] sm:$0xff] %v1698_v12  ;;  %v1704_v16 = vrot.slane %v1698_v12, 4  ;;  %v1713_v17 = vmul.f32 %v1698_v12, %v1698_v12  ;;  %2718 = vst [vmem:[%s1701_s21 + $0x10] sm:$0xff] %v1814_v13  ;;  %v1822_v10 = vrot.slane %v1814_v13, 4  ;;  %v1832_v18 = vmul.f32 %v1814_v13, %v1814_v13 }
 0x685   : > { %v1705_v19 = vadd.f32 %v1704_v16, %v1698_v12  ;;  %v1714_v20 = vrot.slane %v1713_v17, 4  ;;  %v1823_v21 = vadd.f32 %v1822_v10, %v1814_v13  ;;  %v1833_v22 = vrot.slane %v1832_v18, 4 }
 0x687   : > { %v1706_v23 = vrot.slane %v1705_v19, 2  ;;  %v1715_v24 = vadd.f32 %v1714_v20, %v1713_v17  ;;  %v1824_v25 = vrot.slane %v1823_v21, 2  ;;  %v1834_v27 = vadd.f32 %v1833_v22, %v1832_v18 }
 0x689   : > { %v1707_v26 = vadd.f32 %v1706_v23, %v1705_v19  ;;  %v1716_v28 = vrot.slane %v1715_v24, 2  ;;  %v1825_v29 = vadd.f32 %v1824_v25, %v1823_v21  ;;  %v1835_v3 = vrot.slane %v1834_v27, 2 }
 0x68b   : > { %v1708_v30 = vrot.slane %v1707_v26, 1  ;;  %v1717_v32 = vadd.f32 %v1716_v28, %v1715_v24  ;;  %v1826_v33 = vrot.slane %v1825_v29, 1  ;;  %v1836_v34 = vadd.f32 %v1835_v3, %v1834_v27 }
 0x68d   : > { %v1709_v37 = vadd.f32 %v1708_v30, %v1707_v26  ;;  %v1718_v38 = vrot.slane %v1717_v32, 1  ;;  %v1827_v39 = vadd.f32 %v1826_v33, %v1825_v29  ;;  %v1837_v5 = vrot.slane %v1836_v34, 1 }
 0x68f   : > { %v1710_v42 = vadd.f32 %v1709_v37, %v1703_v35  ;;  %v1719_v43 = vadd.f32 %v1718_v38, %v1717_v32  ;;  %v1828_v44 = vadd.f32 %v1827_v39, %v1821_v36  ;;  %v1838_v45 = vadd.f32 %v1837_v5, %v1836_v34 }
 0x691   : > { %1711 = vst [vmem:[#allocation4] sm:$0x1] %v1710_v42  ;;  %v1720_v46 = vadd.f32 %v1719_v43, %v1712_v40  ;;  %1829 = vst [vmem:[#allocation4 + $0x1] sm:$0x1] %v1828_v44  ;;  %v1839_v47 = vadd.f32 %v1838_v45, %v1831_v41 }
 0x693   : > { %1721 = vst [vmem:[#allocation5] sm:$0x1] %v1720_v46  ;;  %1840 = vst [vmem:[#allocation5 + $0x1] sm:$0x1] %v1839_v47 }
 0x6a0   : > { %v1930_v49 = vpop.f32.mrb[6].mxu0 }
 0x6a1   : > { %v1931_v50 = vadd.f32 %v2719_v48, %v1930_v49  ;;  %v3156_v51 = vpop.f32.mrb[7].mxu0 }
 0x6a3   : > { %1935 = vst [vmem:[%s1934_s4] sm:$0xff] %v1931_v50  ;;  %v1937_v31 = vrot.slane %v1931_v50, 4  ;;  %v1946_v52 = vmul.f32 %v1931_v50, %v1931_v50 }
 0x6a5   : > { %v1938_v53 = vadd.f32 %v1937_v31, %v1931_v50  ;;  %v1947_v54 = vrot.slane %v1946_v52, 4 }
 0x6a7   : > { %v1939_v55 = vrot.slane %v1938_v53, 2  ;;  %v1948_v56 = vadd.f32 %v1947_v54, %v1946_v52 }
 0x6a9   : > { %v1940_v57 = vadd.f32 %v1939_v55, %v1938_v53  ;;  %v1949_v58 = vrot.slane %v1948_v56, 2 }
 0x6ab   : > { %v1941_v59 = vrot.slane %v1940_v57, 1  ;;  %v1950_v60 = vadd.f32 %v1949_v58, %v1948_v56 }
 0x6ad   : > { %v1942_v62 = vadd.f32 %v1941_v59, %v1940_v57  ;;  %v1951_v63 = vrot.slane %v1950_v60, 1 }
 0x6af   : > { %v1943_v4 = vadd.f32 %v1942_v62, %v1936_v61  ;;  %v1952_v6 = vadd.f32 %v1951_v63, %v1950_v60 }
 0x6b1   : > { %1944 = vst [vmem:[#allocation6] sm:$0x1] %v1943_v4  ;;  %v1953_v7 = vadd.f32 %v1952_v6, %v1945_v2 }
 0x6b3   : > { %1954 = vst [vmem:[#allocation7] sm:$0x1] %v1953_v7 }
 0x6b4 PF: > { %s5165_s12 = sld [smem:[#allocation67_spill]] }
 0x6ba   : > { %p2720_p2 = scmp.ne.s32.totalorder %s5165_s12, 1 }
 0x6bb   : > { %v2004_v8 = vld [vmem:[#allocation20] sm:$0xff] (!%p2720_p2)  ;;  %v2005_v9 = vld [vmem:[#allocation20 + $0x8] sm:$0xff] (!%p2720_p2)  ;;  %v2006_v11 = vld [vmem:[#allocation20 + $0x10] sm:$0xff] (!%p2720_p2)  ;;  %v4266_v12 = vmov (!%p2720_p2), 0.0|0.0   ;;  %vm4267_vm2 = vmmov (!%p2720_p2), 0   ;;  %v4268_v15 = vmov (!%p2720_p2), 0.0  }
 0x6bc   : > { %1961 = sbr.rel (%p2720_p2) target bundleno = 2043 (0x7fb), region = 188  ;;  %3430 = vmatprep.subr.bf16.mxu0 (!%p2720_p2), %v4266_v12  ;;  %v3431_v13 = vpack.c.bf16 (!%p2720_p2), %v2005_v9, %v2004_v8  ;;  %v2007_v14 = vld [vmem:[#allocation20 + $0x18] sm:$0xff] (!%p2720_p2)  ;;  %3189 = vmatprep.mubr.msk.f32.mxu0 (!%p2720_p2), %vm4267_vm2, %v4268_v15  ;;  %v2008_v17 = vld [vmem:[#allocation20 + $0x20] sm:$0xff] (!%p2720_p2)  ;;  %v2009_v10 = vld [vmem:[#allocation20 + $0x28] sm:$0xff] (!%p2720_p2)  ;;  %v1973_v30 = vshrl.u32 (!%p2720_p2), %v1107_v0, 7  ;;  %s1962_s27 = scalar_lea.vmem (!%p2720_p2), [#allocation2], %s4763_s14 }
 0x6bd   : > { %3454 = vmatprep.subr.bf16.mxu1 (!%p2720_p2), %v4266_v12  ;;  %3224 = vmatprep.mubr.msk.f32.mxu1 (!%p2720_p2), %vm4267_vm2, %v4268_v15  ;;  %v3434_v16 = vpack.c.bf16 (!%p2720_p2), %v2007_v14, %v2006_v11  ;;  %v1964_v18 = vld [vmem:[#allocation4] sm:$0x1] (!%p2720_p2)  ;;  %v1966_v20 = vld [vmem:[#allocation5] sm:$0x1] (!%p2720_p2)  ;;  %v3437_v21 = vpack.c.bf16 (!%p2720_p2), %v2009_v10, %v2008_v17  ;;  %v2010_v23 = vld [vmem:[#allocation20 + $0x30] sm:$0xff] (!%p2720_p2)  ;;  %s5166_s3 = sld [smem:[#allocation55_spill]] (!%p2720_p2) }
 0x6be   : > { %3432 = vmatpush3.bf16.msra.mxu0 (!%p2720_p2), %v3431_v13  ;;  %v4910_v19 = vmul.f32 (!%p2720_p2), 0.0625, %v1964_v18  ;;  %v1967_v22 = vmul.f32 (!%p2720_p2), 0.0625, %v1966_v20  ;;  %v2011_v24 = vld [vmem:[#allocation20 + $0x38] sm:$0xff] (!%p2720_p2)  ;;  %v2012_v28 = vld [vmem:[#allocation20 + $0x40] sm:$0xff] (!%p2720_p2)  ;;  %v2013_v29 = vld [vmem:[#allocation20 + $0x48] sm:$0xff] (!%p2720_p2)  ;;  %v4920_v42 = vsub.s32 (!%p2720_p2), 0, %v1973_v30 }
 0x6bf   : > { %3433 = vmatprep.subr.bf16.mxu0 (!%p2720_p2), %v4266_v12  ;;  %v3440_v26 = vpack.c.bf16 (!%p2720_p2), %v2011_v24, %v2010_v23  ;;  %v2244_v32 = vld [vmem:[#allocation6] sm:$0x1] (!%p2720_p2)  ;;  %v2146_v33 = vld [vmem:[#allocation20 + $0x80] sm:$0xff] (!%p2720_p2)  ;;  %v3443_v36 = vpack.c.bf16 (!%p2720_p2), %v2013_v29, %v2012_v28  ;;  %v2148_v38 = vld [vmem:[#allocation20 + $0x90] sm:$0xff] (!%p2720_p2)  ;;  %s5167_s25 = sld [smem:[#allocation56_spill]] (!%p2720_p2)  ;;  %s2242_s22 = scalar_lea.vmem (!%p2720_p2), [#allocation3], %s4763_s14 }
 0x6c0   : > { %v1968_v25 = vmul.f32 (!%p2720_p2), %v4910_v19, %v4910_v19  ;;  %v2147_v35 = vld [vmem:[#allocation20 + $0x88] sm:$0xff] (!%p2720_p2)  ;;  %v2149_v39 = vld [vmem:[#allocation20 + $0x98] sm:$0xff] (!%p2720_p2)  ;;  %v2014_v5 = vld [vmem:[#allocation20 + $0x50] sm:$0xff] (!%p2720_p2)  ;;  %v4918_v41 = vmul.f32 (!%p2720_p2), 0.0625, %v2244_v32  ;;  %v1975_v52 = vrot.slane (!%p2720_p2), %v4910_v19, %v4920_v42  ;;  %s5168_s21 = sld [smem:[#allocation61_spill]] (!%p2720_p2)  ;;  %s5169_s8 = sld [smem:[#allocation62_spill]] (!%p2720_p2) }
 0x6c1   : > { %v3455_v37 = vpack.c.bf16 (!%p2720_p2), %v2147_v35, %v2146_v33  ;;  %v2015_v40 = vld [vmem:[#allocation20 + $0x58] sm:$0xff] (!%p2720_p2)  ;;  %v2246_v43 = vld [vmem:[#allocation7] sm:$0x1] (!%p2720_p2)  ;;  %v3458_v0 = vpack.c.bf16 (!%p2720_p2), %v2149_v39, %v2148_v38  ;;  %v2150_v44 = vld [vmem:[#allocation20 + $0xa0] sm:$0xff] (!%p2720_p2)  ;;  %s5170_s14 = sld [smem:[#allocation58_spill]] (!%p2720_p2)  ;;  %s5171_s4 = sld [smem:[#allocation64_spill]] (!%p2720_p2) }
 0x6c2   : > { %3435 = vmatpush3.bf16.msra.mxu0 (!%p2720_p2), %v3434_v16  ;;  %v1969_v27 = vsub.f32 (!%p2720_p2), %v1967_v22, %v1968_v25  ;;  %v2151_v45 = vld [vmem:[#allocation20 + $0xa8] sm:$0xff] (!%p2720_p2)  ;;  %v3446_v46 = vpack.c.bf16 (!%p2720_p2), %v2015_v40, %v2014_v5  ;;  %v2016_v47 = vld [vmem:[#allocation20 + $0x60] sm:$0xff] (!%p2720_p2)  ;;  %v2247_v49 = vmul.f32 (!%p2720_p2), 0.0625, %v2246_v43  ;;  %v2248_v50 = vmul.f32 (!%p2720_p2), %v4918_v41, %v4918_v41  ;;  %v1963_v56 = vld [vmem:[%s1962_s27] sm:$0xff] (!%p2720_p2) }
 0x6c3   : > { %3436 = vmatprep.subr.bf16.mxu0 %v4266_v12  ;;  %3456 = vmatpush3.bf16.msra.mxu1 %v3455_v37  ;;  %v2017_v48 = vld [vmem:[#allocation20 + $0x68] sm:$0xff]  ;;  %v3461_v53 = vpack.c.bf16 %v2151_v45, %v2150_v44  ;;  %v2152_v57 = vld [vmem:[#allocation20 + $0xb0] sm:$0xff]  ;;  %v2153_v58 = vld [vmem:[#allocation20 + $0xb8] sm:$0xff]  ;;  %v1977_v2 = vsub.f32 %v1963_v56, %v1975_v52  ;;  %vm2391_vm3 = vcmp.lt.s32.totalorder %v4768_v1, 4 }
 0x6c4   : > { %v1970_v3 = vmax.f32 %v1969_v27, 0.0  ;;  %3457 = vmatprep.subr.bf16.mxu1 %v4266_v12  ;;  %v2102_v51 = vld [vmem:[#allocation4 + $0x1] sm:$0x1]  ;;  %v2105_v31 = vld [vmem:[#allocation5 + $0x1] sm:$0x1]  ;;  %v3449_v59 = vpack.c.bf16 %v2017_v48, %v2016_v47  ;;  %v2018_v61 = vld [vmem:[#allocation20 + $0x70] sm:$0xff]  ;;  %v2249_v63 = vsub.f32 %v2247_v49, %v2248_v50  ;;  %v3464_v4 = vpack.c.bf16 %v2153_v58, %v2152_v57 }
 0x6c5   : > { %v4928_v54 = vmul.f32 0.0625, %v2102_v51  ;;  %v2106_v55 = vmul.f32 0.0625, %v2105_v31  ;;  %v2019_v62 = vld [vmem:[#allocation20 + $0x78] sm:$0xff]  ;;  %v2154_v8 = vld [vmem:[#allocation20 + $0xc0] sm:$0xff]  ;;  %v2155_v9 = vld [vmem:[#allocation20 + $0xc8] sm:$0xff]  ;;  %v2255_v51 = vrot.slane %v4918_v41, %v4920_v42 }
 0x6c6   : > { %3438 = vmatpush3.bf16.msra.mxu0 %v3437_v21  ;;  %v1978_v34 = vadd.f32 1e-05, %v1970_v3  ;;  %v3452_v11 = vpack.c.bf16 %v2019_v62, %v2018_v61  ;;  %v2721_v16 = vld [vmem:[%s5166_s3] ss:$0 sm:$0xff]  ;;  %v2250_v17 = vmax.f32 %v2249_v63, 0.0  ;;  %v3467_v18 = vpack.c.bf16 %v2155_v9, %v2154_v8  ;;  %v2156_v21 = vld [vmem:[#allocation20 + $0xd0] sm:$0xff] }
 0x6c7   : > { %3439 = vmatprep.subr.bf16.mxu0 %v4266_v12  ;;  %3459 = vmatpush3.bf16.msra.mxu1 %v3458_v0  ;;  %v2107_v60 = vmul.f32 %v4928_v54, %v4928_v54  ;;  %v2722_v20 = vld [vmem:[%s5167_s25] ss:$0 sm:$0xff]  ;;  %v2284_v24 = vld [vmem:[#allocation23] sm:$0xff]  ;;  %v2285_v25 = vld [vmem:[#allocation23 + $0x8] sm:$0xff]  ;;  %v2114_v35 = vrot.slane %v4928_v54, %v4920_v42 }
 0x6c8   : > { %3749 = vrsqrt.f32 %v1978_v34  ;;  %3460 = vmatprep.subr.bf16.mxu1 %v4266_v12  ;;  %v2157_v22 = vld [vmem:[#allocation20 + $0xd8] sm:$0xff]  ;;  %v2258_v27 = vadd.f32 1e-05, %v2250_v17  ;;  %v3479_v29 = vpack.c.bf16 %v2285_v25, %v2284_v24  ;;  %v2158_v3 = vld [vmem:[#allocation20 + $0xe0] sm:$0xff]  ;;  %v2159_v30 = vld [vmem:[#allocation20 + $0xe8] sm:$0xff] }
 0x6c9   : > { %v2108_v6 = vsub.f32 %v2106_v55, %v2107_v60  ;;  %v3470_v28 = vpack.c.bf16 %v2157_v22, %v2156_v21  ;;  %v2286_v33 = vld [vmem:[#allocation23 + $0x10] sm:$0xff]  ;;  %v2287_v34 = vld [vmem:[#allocation23 + $0x18] sm:$0xff]  ;;  %v2725_v37 = vld [vmem:[%s1962_s27 + $0x10] sm:$0xff] }
 0x6ca   : > { %3441 = vmatpush3.bf16.msra.mxu0 %v3440_v26  ;;  %v3482_v38 = vpack.c.bf16 %v2287_v34, %v2286_v33  ;;  %v2160_v39 = vld [vmem:[#allocation20 + $0xf0] sm:$0xff]  ;;  %v2161_v5 = vld [vmem:[#allocation20 + $0xf8] sm:$0xff]  ;;  %v2288_v40 = vld [vmem:[#allocation23 + $0x20] sm:$0xff]  ;;  %v2116_v0 = vsub.f32 %v2725_v37, %v2114_v35 }
 0x6cb   : > { %3442 = vmatprep.subr.bf16.mxu0 %v4266_v12  ;;  %3462 = vmatpush3.bf16.msra.mxu1 %v3461_v53  ;;  %v2109_v14 = vmax.f32 %v2108_v6, 0.0  ;;  %v2289_v43 = vld [vmem:[#allocation23 + $0x28] sm:$0xff]  ;;  %v3476_v45 = vpack.c.bf16 %v2161_v5, %v2160_v39  ;;  %v2290_v47 = vld [vmem:[#allocation23 + $0x30] sm:$0xff]  ;;  %v2291_v48 = vld [vmem:[#allocation23 + $0x38] sm:$0xff] }
 0x6cc   : > { %3463 = vmatprep.subr.bf16.mxu1 %v4266_v12  ;;  %v2727_v49 = vld [vmem:[%s5166_s3 + $0x1] ss:$0 sm:$0xff]  ;;  %v3488_v53 = vpack.c.bf16 %v2291_v48, %v2290_v47  ;;  %v2292_v56 = vld [vmem:[#allocation23 + $0x40] sm:$0xff]  ;;  %v2293_v57 = vld [vmem:[#allocation23 + $0x48] sm:$0xff] }
 0x6cd   : > { %v2117_v19 = vadd.f32 1e-05, %v2109_v14  ;;  %v2729_v31 = vld [vmem:[%s5167_s25 + $0x1] ss:$0 sm:$0xff]  ;;  %v3491_v61 = vpack.c.bf16 %v2293_v57, %v2292_v56  ;;  %v2294_v62 = vld [vmem:[#allocation23 + $0x50] sm:$0xff]  ;;  %v2297_v8 = vld [vmem:[#allocation23 + $0x68] sm:$0xff] }
 0x6ce   : > { %3444 = vmatpush3.bf16.msra.mxu0 %v3443_v36  ;;  %v3473_v36 = vpack.c.bf16 %v2159_v30, %v2158_v3  ;;  %v2243_v54 = vld [vmem:[%s2242_s22] sm:$0xff] }
 0x6cf   : > { %3445 = vmatprep.subr.bf16.mxu0 %v4266_v12  ;;  %3465 = vmatpush3.bf16.msra.mxu1 %v3464_v4  ;;  %3751 = vrsqrt.f32 %v2117_v19  ;;  %v2295_v63 = vld [vmem:[#allocation23 + $0x58] sm:$0xff] }
 0x6d0   : > { %3466 = vmatprep.subr.bf16.mxu1 %v4266_v12  ;;  %3753 = vrsqrt.f32 %v2258_v27  ;;  %v3494_v4 = vpack.c.bf16 %v2295_v63, %v2294_v62  ;;  %v2733_v6 = vld [vmem:[%s5168_s21] ss:$0 sm:$0xff]  ;;  %v2731_v22 = vld [vmem:[%s5170_s14 + $0x1] ss:$0 sm:$0xff] }
 0x6d1   : > { %v2299_v14 = vld [vmem:[#allocation23 + $0x78] sm:$0xff] }
 0x6d2   : > { %3447 = vmatpush3.bf16.msra.mxu0 %v3446_v46  ;;  %v3750_v7 = vpop.eup %3749  ;;  %v3485_v46 = vpack.c.bf16 %v2289_v43, %v2288_v40  ;;  %v2735_v27 = vld [vmem:[%s5171_s4] ss:$0 sm:$0xff] }
 0x6d3   : > { %3448 = vmatprep.subr.bf16.mxu0 %v4266_v12  ;;  %v1984_v13 = vrot.slane %v3750_v7, %v4920_v42  ;;  %3468 = vmatpush3.bf16.msra.mxu1 %v3467_v18  ;;  %v2296_v7 = vld [vmem:[#allocation23 + $0x60] sm:$0xff]  ;;  %v2723_v18 = vld [vmem:[%s5170_s14] ss:$0 sm:$0xff] }
 0x6d4   : > { %3469 = vmatprep.subr.bf16.mxu1 %v4266_v12 }
 0x6d5   : > { %v1986_v10 = vmul.f32 %v1984_v13, %v1977_v2  ;;  %v2298_v13 = vld [vmem:[#allocation23 + $0x70] sm:$0xff] }
 0x6d6   : > { %3450 = vmatpush3.bf16.msra.mxu0 %v3449_v59  ;;  %v2257_v59 = vsub.f32 %v2243_v54, %v2255_v51  ;;  %v3500_v17 = vpack.c.bf16 %v2299_v14, %v2298_v13 }
 0x6d7   : > { %3451 = vmatprep.subr.bf16.mxu0 %v4266_v12  ;;  %v1994_v23 = vmul.f32 %v2721_v16, %v1986_v10  ;;  %3471 = vmatpush3.bf16.msra.mxu1 %v3470_v28 }
 0x6d8   : > { %3472 = vmatprep.subr.bf16.mxu1 %v4266_v12 }
 0x6d9   : > { %v2002_v26 = vadd.f32 %v2722_v20, %v1994_v23  ;;  %v3752_v44 = vpop.eup %3751 }
 0x6da   : > { %3453 = vmatpush3.bf16.msra.mxu0 %v3452_v11  ;;  %v3754_v52 = vpop.eup %3753  ;;  %v2734_v11 = vld [vmem:[%s5169_s8] ss:$0 sm:$0xff] }
 0x6db   : > { %3478 = vmatprep.subr.bf16.mxu0 %v4266_v12  ;;  %v2003_v32 = vmax.f32 %v2002_v26, 0.0  ;;  %3474 = vmatpush3.bf16.msra.mxu1 %v3473_v36  ;;  %v2264_v60 = vrot.slane %v3754_v52, %v4920_v42 }
 0x6dc   : > { %3475 = vmatprep.subr.bf16.mxu1 %v4266_v12 }
 0x6dd   : > { %3190 = vmatmul.mubr.f32.vlgmr.msra.gmra.mrb[0].mxu0 %v2003_v32  ;;  %v2266_v2 = vmul.f32 %v2264_v60, %v2257_v59 }
 0x6de   : > { %3480 = vmatpush3.bf16.msra.mxu0 %v3479_v29  ;;  %3259 = vmatprep.mubr.msk.f32.mxu0 %vm4267_vm2, %v4268_v15  ;;  %v2123_v15 = vrot.slane %v3752_v44, %v4920_v42  ;;  %v3497_v42 = vpack.c.bf16 %v2297_v8, %v2296_v7 }
 0x6df   : > { %3481 = vmatprep.subr.bf16.mxu0 %v4266_v12  ;;  %3477 = vmatpush3.bf16.msra.mxu1 %v3476_v45  ;;  %v2274_v9 = vmul.f32 %v2733_v6, %v2266_v2 }
 0x6e0   : > { %v2125_v50 = vmul.f32 %v2123_v15, %v2116_v0 }
 0x6e1   : > { %v2282_v16 = vadd.f32 %v2734_v11, %v2274_v9 }
 0x6e2   : > { %3483 = vmatpush3.bf16.msra.mxu0 %v3482_v38  ;;  %v2134_v55 = vmul.f32 %v2727_v49, %v2125_v50 }
 0x6e3   : > { %3484 = vmatprep.subr.bf16.mxu0 %v4266_v12  ;;  %v2283_v10 = vmax.f32 %v2282_v16, 0.0 }
 0x6e4   : > { %v2143_v58 = vadd.f32 %v2729_v31, %v2134_v55 }
 0x6e6   : > { %3486 = vmatpush3.bf16.msra.mxu0 %v3485_v46  ;;  %v2144_v41 = vmax.f32 %v2143_v58, 0.0 }
 0x6e7   : > { %3487 = vmatprep.subr.bf16.mxu0 %v4266_v12 }
 0x6e8   : > { %3225 = vmatmul.mubr.f32.vlgmr.msra.gmra.mrb[0].mxu1 %v2144_v41 }
 0x6ea   : > { %3489 = vmatpush3.bf16.msra.mxu0 %v3488_v53 }
 0x6eb   : > { %3490 = vmatprep.subr.bf16.mxu0 %v4266_v12 }
 0x6ee   : > { %3492 = vmatpush3.bf16.msra.mxu0 %v3491_v61 }
 0x6ef   : > { %3493 = vmatprep.subr.bf16.mxu0 %v4266_v12 }
 0x6f2   : > { %3495 = vmatpush3.bf16.msra.mxu0 %v3494_v4 }
 0x6f3   : > { %3496 = vmatprep.subr.bf16.mxu0 %v4266_v12 }
 0x6f6   : > { %3498 = vmatpush3.bf16.msra.mxu0 %v3497_v42 }
 0x6f7   : > { %3499 = vmatprep.subr.bf16.mxu0 %v4266_v12 }
 0x6fa   : > { %3501 = vmatpush3.bf16.msra.mxu0 %v3500_v17 }
 0x6fd   : > { %3260 = vmatmul.mubr.f32.vlgmr.msra.gmra.mrb[2].mxu0 %v2283_v10 }
 0x7b0   : > { %v2093_v19 = vpop.f32.mrb[0].mxu0 }
 0x7b1   : > { %v2094_v20 = vadd.f32 %v2723_v18, %v2093_v19  ;;  %v3191_v21 = vpop.f32.mrb[1].mxu0 }
 0x7b3   : > { %2097 = vst [vmem:[%s4775_s11] sm:$0xff] %v2094_v20 }
 0x7bb   : > { %v2236_v23 = vpop.f32.mrb[0].mxu1 }
 0x7bc   : > { %v2237_v24 = vadd.f32 %v2731_v22, %v2236_v23  ;;  %v3226_v25 = vpop.f32.mrb[1].mxu1 }
 0x7be   : > { %2732 = vst [vmem:[%s4775_s11 + $0x8] sm:$0xff] %v2237_v24 }
 0x7d0   : > { %v2373_v26 = vpop.f32.mrb[2].mxu0 }
 0x7d1   : > { %v2374_v28 = vadd.f32 %v2735_v27, %v2373_v26  ;;  %v3261_v29 = vpop.f32.mrb[3].mxu0 }
 0x7d3   : > { %v2380_v3 = vadd.f32 1.0, %v2374_v28  ;;  %v2377_v34 = vmul.f32 0.2, %v2374_v28 }
 0x7d5   : > { %v2382_v30 = vand.u32 2147483647, %v2380_v3  ;;  %v2381_v37 = vmax.f32 %v2380_v3, 0.0 }
 0x7d7   : > { %v2383_v12 = vsub.f32 0.0, %v2382_v30 }
 0x7d9   : > { %v2384_v32 = vmul.f32 1.442695, %v2383_v12 }
 0x7db   : > { %3755 = vpow2.f32 %v2384_v32 }
 0x7e5   : > { %v3756_v33 = vpop.eup %3755 }
 0x7e6   : > { %v2386_v35 = vadd.f32 1.0, %v3756_v33 }
 0x7e8   : > { %3757 = vlog2.f32 %v2386_v35 }
 0x7e9   : > { %3759 = vtanh.f32 %v2377_v34 }
 0x7f2   : > { %v3758_v36 = vpop.eup %3757 }
 0x7f3   : > { %v2388_v38 = vmul.f32 0.6931472, %v3758_v36  ;;  %v3760_v39 = vpop.eup %3759 }
 0x7f4   : > { %v2379_v40 = vmul.f32 5.0, %v3760_v39 }
 0x7f5   : > { %v2389_v5 = vadd.f32 %v2388_v38, %v2381_v37 }
 0x7f7   : > { %v2390_v43 = vadd.f32 0.1, %v2389_v5 }
 0x7f9   : > { %v2392_v0 = vsel %vm2391_vm3, %v2379_v40, %v2390_v43 }
 0x7fa   : > { %2393 = vst [vmem:[%s4777_s28] sm:$0xff] %v2392_v0 }
 0x7fb PF: > { %s5172_s12 = sld [smem:[#allocation65_spill]]  ;;  %s5085_s27 = sshll.u32 %s4201_s26, 7 }
 0x7fc   : > { %s2412_s21 = sshll.u32 %s4775_s11, 4  ;;  %s2395_s8 = scalar_lea.sflag [#allocation10], %s4760_s20  ;;  %s4983_s21 = int_to_ptr.vmem [resolvable:$true] %s2412_s21 }
 0x7fd   : > { %s4043_s4 = scalar_lea.vmem %s4983_s21, 256  ;;  %p5173_p6 = scmp.ne.s32.totalorder %s5143_s6, 0 }
 0x7fe   : > { %p4044_p7 = scmp.ne.s32.totalorder %s4983_s21, %s4043_s4  ;;  %s4269_s3 = smov [#allocation25]  }
 0x7ff   : > { %s4047_s5 = sshll.u32 %s4269_s3, 4  ;;  %s4048_s5 = int_to_ptr.vmem [resolvable:$false] %s4047_s5 }
 0x800   : > { %p4045_p9 = pnand %p4044_p7, %p5173_p6  ;;  %s4049_s10 = scalar_lea.vmem %s4048_s5, 512 }
 0x801   : > { %s4980_s22 = scalar_lea.hbm %s5172_s12, %s5085_s27  ;;  %p4050_p13 = scmp.lt.s32.totalorder %s4983_s21, %s4048_s5 }
 0x802   : > { %p4046_p3 = pneg %p4045_p9  ;;  %p4051_p0 = scmp.lt.s32.totalorder %s4049_s10, %s4043_s4 }
 0x804   : > { %p4052_p12 = por %p4051_p0, %p4050_p13 }
 0x806   : > { %p4053_p4 = pnand %p4052_p12, %p4046_p3 }
 0x808   : > { %4056 = shalt.err (!%p4053_p4)
}
 0x809   : > { %s4057_s11 = scalar_lea.hbm %s4980_s22, 256  ;;  %s4061_s3 = scalar_lea.hbm %s5172_s12, 512 }
 0x80a   : > { %p4058_p1 = scmp.ne.s32.totalorder %s4980_s22, %s4057_s11  ;;  %p4062_p11 = scmp.lt.u32.totalorder %s4980_s22, %s5172_s12 }
 0x80b   : > { %p4063_p10 = scmp.lt.u32.totalorder %s4061_s3, %s4057_s11  ;;  %p4065_p7 = scmp.lt.u32.totalorder %s4057_s11, %s4980_s22 }
 0x80c   : > { %p4059_p5 = pnand %p4058_p1, %p5173_p6 }
 0x80d   : > { %p4064_p2 = por %p4063_p10, %p4062_p11 }
 0x80e   : > { %p4060_p8 = pneg %p4059_p5 }
 0x80f   : > { %p4066_p9 = por %p4065_p7, %p4064_p2 }
 0x811   : > { %p4067_p3 = pnand %p4066_p9, %p4060_p8 }
 0x813   : > { %4070 = shalt.err (!%p4067_p3)
}
 0x814   : > { %s4270_s5 = smov 128   ;;  %s5174_s10 = sld [smem:[#allocation66_spill]] }
 0x815   : > { %s4271_s4 = smov 256   ;;  %s4272_s27 = smov 8  }
 0x816   : > { %3540 = dma.vmem_to_hbm [thread:$0]  (%p5173_p6), %s4983_s21, 256, %s4980_s22, %s2395_s8, %s4270_s5, %s4271_s4, %s4272_s27  }
 0x817   : > { %s5175_s3 = sshll.u32 %s4201_s26, 7  ;;  %s2428_s12 = sshll.u32 %s4777_s28, 4  ;;  %s2429_s12 = int_to_ptr.vmem [resolvable:$true] %s2428_s12 }
 0x818   : > { %s2400_s14 = scalar_lea.sflag [#allocation27], %s4760_s20  ;;  %s4071_s24 = scalar_lea.vmem %s2429_s12, 128 }
 0x819   : > { %p4072_p13 = scmp.ne.s32.totalorder %s2429_s12, %s4071_s24  ;;  %s4273_s25 = smov [#allocation26]  }
 0x81a   : > { %s5008_s11 = scalar_lea.hbm %s5174_s10, %s5175_s3  ;;  %s4075_s29 = sshll.u32 %s4273_s25, 4  ;;  %s4076_s29 = int_to_ptr.vmem [resolvable:$false] %s4075_s29 }
 0x81b   : > { %p4073_p0 = pnand %p4072_p13, %p5173_p6  ;;  %s4077_s9 = scalar_lea.vmem %s4076_s29, 256 }
 0x81c   : > { %p4078_p4 = scmp.lt.s32.totalorder %s2429_s12, %s4076_s29  ;;  %p4079_p1 = scmp.lt.s32.totalorder %s4077_s9, %s4071_s24 }
 0x81d   : > { %p4074_p12 = pneg %p4073_p0 }
 0x81e   : > { %p4080_p5 = por %p4079_p1, %p4078_p4 }
 0x820   : > { %p4081_p8 = pnand %p4080_p5, %p4074_p12 }
 0x822   : > { %4084 = shalt.err (!%p4081_p8)
}
 0x823   : > { %s4085_s26 = scalar_lea.hbm %s5008_s11, 128  ;;  %s4089_s20 = scalar_lea.hbm %s5174_s10, 256 }
 0x824   : > { %p4086_p11 = scmp.ne.s32.totalorder %s5008_s11, %s4085_s26  ;;  %p4090_p7 = scmp.lt.u32.totalorder %s5008_s11, %s5174_s10 }
 0x825   : > { %p4091_p9 = scmp.lt.u32.totalorder %s4089_s20, %s4085_s26  ;;  %p4093_p13 = scmp.lt.u32.totalorder %s4085_s26, %s5008_s11 }
 0x826   : > { %p4087_p10 = pnand %p4086_p11, %p5173_p6 }
 0x827   : > { %p4092_p3 = por %p4091_p9, %p4090_p7 }
 0x828   : > { %p4088_p2 = pneg %p4087_p10 }
 0x829   : > { %p4094_p0 = por %p4093_p13, %p4092_p3 }
 0x82b   : > { %p4095_p12 = pnand %p4094_p0, %p4088_p2 }
 0x82d   : > { %4098 = shalt.err (!%p4095_p12)
}
 0x82e   : > { %3541 = dma.vmem_to_hbm [thread:$0]  (%p5173_p6), %s2429_s12, 128, %s5008_s11, %s2400_s14  }
 0x82f PF: > { %p3602_p4 = scmp.ge.s32.totalorder %s4217_s7, 2  ;;  %s2440_s29 = sand.u32 1, %s4177_s15  }
 0x830   : > { %p5176_p1 = scmp.ne.s32.totalorder %s5144_s17, 0  ;;  %s2441_s24 = scalar_lea.sflag [#allocation10], %s2440_s29 }
 0x832   : > { %p3577_p5 = pnand %p3602_p4, %p5176_p1 }
 0x834   : > { %4168 = dma.done.wait (!%p3577_p5), %s2441_s24, 256  }
 0x835   : > { %4170 = vsyncadd (!%p3577_p5), %s2441_s24, 4294967040  ;;  %s2450_s9 = scalar_lea.sflag [#allocation27], %s2440_s29 }
 0x836   : > { %4172 = dma.done.wait (!%p3577_p5), %s2450_s9, 128  }
 0x837   : > { %4174 = vsyncadd (!%p3577_p5), %s2450_s9, 4294967168  ;;  %s86_s7 = sadd.s32 1, %s4217_s7   ;;  %s5177_s17 = sld [smem:[#allocation68_spill]] }
 0x838   : > { %p83_p8 = scmp.ge.s32.totalorder %s86_s7, 6   ;;  %s5178_s15 = smov %s4181_s16 }
 0x839   : > { %s5179_s16 = smov %s4185_s18  ;;  %s5180_s18 = smov %s4676_s13 }
 0x83a   : > { %s5181_s22 = smov %s4193_s0  ;;  %s5182_s0 = smov %s4197_s23 }
 0x83b   : > { %s5183_s23 = smov %s4688_s19  ;;  %s5184_s26 = smov %s4209_s1 }
 0x83c   : > { %s5185_s28 = smov %s4213_s2  ;;  %s5186_s1 = smov %s5189_s30 }
 0x83d   : > { %s5187_s2 = smov %s5177_s17  ;;  %85 = sbr.rel (!%p83_p8) target bundleno = 86 (0x56), region = 293 }
 0x844   :  { %2455 = vsyncpa [#allocation9], 1 }
 0x845   :  { %2457 = vsyncpa [#allocation9 + $0x1], 1 }
 0x846   :  { %2458 = vsyncpa [#allocation12], 1 }
 0x847   :  { %2459 = vsyncpa [#allocation15], 1 }
 0x848   :  { %2460 = vsyncpa [#allocation18], 1 }
 0x849   :  { %2461 = vsyncpa [#allocation21], 1 }
 0x84a   :  { %2462 = vsyncpa [#allocation24], 1 }
 0x84b   :  { %2463 = vsyncpa [#allocation10], 1 }
 0x84c   :  { %2465 = vsyncpa [#allocation10 + $0x1], 1 }
 0x84d   :  { %2466 = vsyncpa [#allocation27], 1 }
 0x84e   :  { %2468 = vsyncpa [#allocation27 + $0x1], 1 }

</bundles_post_ra>
